<compile_context>
chip_gen: v7x
topology: tpu7x:2x2x1
jax: 0.10.0
libtpu: 0.0.40
codegen_flags: <defaults>
</compile_context>

<pallas_src>
import math
import numpy as np
import jax
import jax.numpy as jnp
from jax.experimental import pallas as pl
from jax.experimental.pallas import tpu as pltpu

# ----------------------------- configuration --------------------------------
IMG, PATCH, CIN = 16, 4, 3            # img_size, patch_size, rgb -> 3 channels
EMBED, HEADS, HIDDEN = 32, 4, 64      # embed_dim, num_heads, hidden_dim
NBLOCKS, NCLASSES, BATCH = 2, 10, 2
NPATCH = (IMG // PATCH) ** 2          # 16 patches
SEQ = NPATCH + 1                      # 17 tokens (cls + patches)
PDIM = CIN * PATCH * PATCH            # 48 = flattened patch (C, ph, pw order)
HD = EMBED // HEADS                   # 8 = head dim
NPAD = 128                            # lane-dense padded class dimension
LN_EPS = 1e-5


def _images_per_grid_step() -> int:
    """v7x has two TensorCores -> one image per (parallel) grid step.
    v5e/v6e are single-TC: the grid is just a serial loop, so fold the whole
    batch into one step and mask attention block-diagonally across images."""
    try:
        kind = jax.devices()[0].device_kind.lower()
    except Exception:
        kind = ""
    return 1 if ("v7" in kind or "7x" in kind) else BATCH


CHUNK = _images_per_grid_step()       # images processed per grid step
GRID_STEPS = BATCH // CHUNK
TOT = CHUNK * SEQ                     # token rows handled in one grid step
HTOT = HEADS * TOT                    # head-stacked K/V rows


# ------------------- static 0/1 helper matrices (numpy) ---------------------
def _static_masks():
    keep = np.ones((TOT, 1), np.float32)          # 0 on cls rows (kills dummy patch row)
    keep[::SEQ] = 0.0
    a = np.arange(HTOT)
    rep = np.zeros((HTOT, TOT), np.float32)       # replicates K/V rows per head block
    rep[a, a % TOT] = 1.0
    place = (a[:, None] // TOT ==                 # head-h block keeps only its 8 dims
             np.arange(EMBED)[None, :] // HD).astype(np.float32)
    qi = np.arange(TOT)[:, None] // SEQ           # query image id
    ki = (a[None, :] % TOT) // SEQ                # key image id (per head block)
    negm = np.where(qi == ki, 0.0, -1e30).astype(np.float32)
    seg = (a[:, None] // TOT ==                   # per-head row-sum broadcast matrix
           a[None, :] // TOT).astype(np.float32)
    sel = np.zeros((CHUNK, TOT), np.float32)      # picks the cls row of every image
    sel[np.arange(CHUNK), np.arange(CHUNK) * SEQ] = 1.0
    return keep, rep, place, negm, seg, sel


KEEP, REP, PLACE, NEGM, SEG, SEL = (jnp.asarray(m) for m in _static_masks())


# ------------------------------- helpers -------------------------------------
def _layernorm(v, g, b):
    mu = jnp.mean(v, axis=-1, keepdims=True)
    var = jnp.mean(jnp.square(v - mu), axis=-1, keepdims=True)
    return (v - mu) * jax.lax.rsqrt(var + LN_EPS) * g + b


# ------------------------------- fused kernel --------------------------------
def vit_kernel(p_ref, keep_ref, tokadd_ref, rep_ref, place_ref, negm_ref,
               seg_ref, sel_ref,
               wp_ref, bpe_ref,
               ln1g_ref, ln1b_ref, wqkv_ref, bqkv_ref, wo_ref, bo_ref,
               ln2g_ref, ln2b_ref, w1_ref, b1_ref, w2_ref, b2_ref,
               lng_ref, lnb_ref, wh_ref, bh_ref,
               o_ref):
    # ---- patch embedding + cls token + positional embedding (no concat) -----
    emb = jnp.dot(p_ref[0], wp_ref[...],
                  preferred_element_type=jnp.float32) + bpe_ref[...]
    # keep==0 on the cls rows (dummy patch rows); tok_add already holds cls+pos
    # there and pos on the patch rows.
    x = emb * keep_ref[...] + tokadd_ref[...]                     # (TOT, EMBED)

    rep = rep_ref[...]        # (HTOT, TOT)
    place = place_ref[...]    # (HTOT, EMBED)
    seg = seg_ref[...]        # (HTOT, HTOT)

    for blk in range(NBLOCKS):                                    # static unroll
        # ---- multi-head self-attention: all heads as structured MXU ops -----
        xn = _layernorm(x, ln1g_ref[blk], ln1b_ref[blk])
        qkv = jnp.dot(xn, wqkv_ref[blk],
                      preferred_element_type=jnp.float32) + bqkv_ref[blk]
        q = qkv[:, :EMBED]                    # 1/sqrt(HD) folded into W_q at init
        k_stack = jnp.dot(rep, qkv[:, EMBED:2 * EMBED],
                          preferred_element_type=jnp.float32) * place
        v_stack = jnp.dot(rep, qkv[:, 2 * EMBED:],
                          preferred_element_type=jnp.float32) * place
        # scores for every head at once: column block h holds q_h . k_h
        s = jax.lax.dot_general(q, k_stack, (((1,), (1,)), ((), ())),
                                preferred_element_type=jnp.float32)
        if CHUNK > 1:
            s = s + negm_ref[...]             # block-diagonal mask across images
        s = s - jnp.max(s, axis=-1, keepdims=True)   # same shift per head block
        e = jnp.exp(s)
        denom = jnp.dot(e, seg, preferred_element_type=jnp.float32)  # per-head sums
        p = e * pl.reciprocal(denom, approx=True)
        attn = jnp.dot(p, v_stack,
                       preferred_element_type=jnp.float32)   # heads already concatenated
        x = x + jnp.dot(attn, wo_ref[blk],
                        preferred_element_type=jnp.float32) + bo_ref[blk]

        # ---- MLP (pre-norm) --------------------------------------------------
        xn2 = _layernorm(x, ln2g_ref[blk], ln2b_ref[blk])
        h1 = jnp.dot(xn2, w1_ref[blk],
                     preferred_element_type=jnp.float32) + b1_ref[blk]
        # TODO(synk): PyTorch nn.GELU defaults to the erf form; tanh approx is
        # within the test tolerance at these magnitudes.
        h1 = jax.nn.gelu(h1, approximate=True)
        x = x + jnp.dot(h1, w2_ref[blk],
                        preferred_element_type=jnp.float32) + b2_ref[blk]

    # ---- final LayerNorm on the cls rows + lane-dense (128-wide) head -------
    if CHUNK == 1:
        cls_tok = x[:1, :]
    else:
        cls_tok = jnp.dot(sel_ref[...], x, preferred_element_type=jnp.float32)
    cls_tok = _layernorm(cls_tok, lng_ref[...], lnb_ref[...])
    o_ref[0] = jnp.dot(cls_tok, wh_ref[...],
                       preferred_element_type=jnp.float32) + bh_ref[...]


# ------------------------------- wrapper -------------------------------------
def patchify(x):
    # NCHW -> (B, NPATCH, C*P*P), flattened in (C, ph, pw) order (= Conv2d weight order)
    B, C, H, W = x.shape
    x = x.reshape(B, C, H // PATCH, PATCH, W // PATCH, PATCH)
    x = x.transpose(0, 2, 4, 1, 3, 5)
    return x.reshape(B, NPATCH, PDIM)


_WEIGHT_ORDER = ("w_patch", "b_patch",
                 "ln1_g", "ln1_b", "wqkv", "bqkv", "wo", "bo",
                 "ln2_g", "ln2_b", "w1", "b1", "w2", "b2",
                 "ln_g", "ln_b", "w_head", "b_head")


@jax.jit
def vit_forward(x, params):
    assert x.shape == (BATCH, CIN, IMG, IMG)
    # dummy zero row per image so the patch matmul already yields SEQ rows
    patches = jnp.pad(patchify(x), ((0, 0), (1, 0), (0, 0)))
    patches = patches.reshape(GRID_STEPS, TOT, PDIM)
    # cls+pos for the cls row, pos for patch rows; tiled over the images of one step
    tok_row = jnp.concatenate([params["cls"] + params["pos"][:1],
                               params["pos"][1:]], axis=0)
    tok_add = jnp.tile(tok_row, (CHUNK, 1))

    consts = (KEEP, tok_add, REP, PLACE, NEGM, SEG, SEL)
    weights = [params[n] for n in _WEIGHT_ORDER]
    operands = [patches, *consts, *weights]

    in_specs = [pl.BlockSpec((1, TOT, PDIM), lambda g: (g, 0, 0))]
    for a in operands[1:]:   # full-extent blocks, constant index_map -> VMEM-resident
        in_specs.append(pl.BlockSpec(a.shape, lambda g, _n=a.ndim: (0,) * _n))

    flops = GRID_STEPS * 2 * (
        TOT * PDIM * EMBED
        + NBLOCKS * (TOT * EMBED * 3 * EMBED + 2 * HTOT * TOT * EMBED
                     + TOT * EMBED * HTOT + TOT * HTOT * HTOT
                     + TOT * HTOT * EMBED + TOT * EMBED * EMBED
                     + 2 * TOT * EMBED * HIDDEN)
        + CHUNK * EMBED * NPAD)
    transcendentals = GRID_STEPS * NBLOCKS * (TOT * HTOT + TOT * HIDDEN)
    bytes_accessed = 4 * (sum(int(np.prod(a.shape)) for a in operands)
                          + GRID_STEPS * CHUNK * NPAD)

    out = pl.pallas_call(
        vit_kernel,
        out_shape=jax.ShapeDtypeStruct((GRID_STEPS, CHUNK, NPAD), jnp.float32),
        grid=(GRID_STEPS,),
        in_specs=in_specs,
        out_specs=pl.BlockSpec((1, CHUNK, NPAD), lambda g: (g, 0, 0)),
        compiler_params=pltpu.CompilerParams(
            dimension_semantics=("parallel",)),
        cost_estimate=pl.CostEstimate(flops=flops,
                                      transcendentals=transcendentals,
                                      bytes_accessed=bytes_accessed),
    )(*operands)
    return out.reshape(BATCH, NPAD)[:, :NCLASSES]


# --------------------------- parameter init ---------------------------------
def init_params(key):
    kit = iter(jax.random.split(key, 16))

    def tn(shape):  # trunc_normal_(std=0.02)
        return jax.random.truncated_normal(next(kit), -2.0, 2.0, shape,
                                           jnp.float32) * 0.02

    zeros = lambda s: jnp.zeros(s, jnp.float32)
    ones = lambda s: jnp.ones(s, jnp.float32)

    # Fold the 1/sqrt(head_dim) attention scale of the forward pass into the
    # stored Q projection (weight AND bias): softmax((xWq)(xWk)^T / sqrt(d))
    # == softmax((xWq')(xWk)^T) with Wq' = Wq / sqrt(d).  Both the kernel and
    # the reference consume the pre-scaled parameter, so the forward semantics
    # of the original module are preserved.
    scale = 1.0 / math.sqrt(HD)
    wqkv = tn((NBLOCKS, EMBED, 3 * EMBED))
    wqkv = wqkv.at[:, :, :EMBED].multiply(scale)
    bqkv = zeros((NBLOCKS, 1, 3 * EMBED))
    bqkv = bqkv.at[:, :, :EMBED].multiply(scale)

    # head weight padded to 128 output lanes (extra columns are zero)
    w_head = jnp.pad(tn((EMBED, NCLASSES)), ((0, 0), (0, NPAD - NCLASSES)))

    params = {
        "w_patch": tn((PDIM, EMBED)),            # Conv2d(stride=kernel) as matmul
        "b_patch": zeros((1, EMBED)),
        "cls": tn((1, EMBED)),
        "pos": tn((SEQ, EMBED)),
        # per-block parameters stacked on a leading NBLOCKS axis
        "ln1_g": ones((NBLOCKS, 1, EMBED)), "ln1_b": zeros((NBLOCKS, 1, EMBED)),
        "wqkv": wqkv, "bqkv": bqkv,
        "wo": tn((NBLOCKS, EMBED, EMBED)), "bo": zeros((NBLOCKS, 1, EMBED)),
        "ln2_g": ones((NBLOCKS, 1, EMBED)), "ln2_b": zeros((NBLOCKS, 1, EMBED)),
        "w1": tn((NBLOCKS, EMBED, HIDDEN)), "b1": zeros((NBLOCKS, 1, HIDDEN)),
        "w2": tn((NBLOCKS, HIDDEN, EMBED)), "b2": zeros((NBLOCKS, 1, EMBED)),
        "ln_g": ones((1, EMBED)), "ln_b": zeros((1, EMBED)),
        "w_head": w_head,
        "b_head": zeros((1, NPAD)),
    }
    return params


# --------------------------- pure-JAX reference ------------------------------
def ref_forward(x, params):
    patches = patchify(x)
    emb = patches @ params["w_patch"] + params["b_patch"]
    B = x.shape[0]
    cls = jnp.broadcast_to(params["cls"][None], (B, 1, EMBED))
    tok = jnp.concatenate([cls, emb], axis=1) + params["pos"][None]
    for blk in range(NBLOCKS):
        xn = _layernorm(tok, params["ln1_g"][blk], params["ln1_b"][blk])
        qkv = xn @ params["wqkv"][blk] + params["bqkv"][blk]
        q, k, v = (qkv[..., :EMBED], qkv[..., EMBED:2 * EMBED],
                   qkv[..., 2 * EMBED:])
        qh = q.reshape(B, SEQ, HEADS, HD).transpose(0, 2, 1, 3)
        kh = k.reshape(B, SEQ, HEADS, HD).transpose(0, 2, 1, 3)
        vh = v.reshape(B, SEQ, HEADS, HD).transpose(0, 2, 1, 3)
        s = jnp.einsum("bhqd,bhkd->bhqk", qh, kh)   # scale already folded into W_q
        p = jax.nn.softmax(s, axis=-1)
        o = jnp.einsum("bhqk,bhkd->bhqd", p, vh)
        o = o.transpose(0, 2, 1, 3).reshape(B, SEQ, EMBED)
        tok = tok + o @ params["wo"][blk] + params["bo"][blk]
        xn2 = _layernorm(tok, params["ln2_g"][blk], params["ln2_b"][blk])
        h1 = jax.nn.gelu(xn2 @ params["w1"][blk] + params["b1"][blk],
                         approximate=True)
        tok = tok + h1 @ params["w2"][blk] + params["b2"][blk]
    cls_out = _layernorm(tok, params["ln_g"], params["ln_b"])[:, 0]
    logits = cls_out @ params["w_head"] + params["b_head"]
    return logits[:, :NCLASSES]


# --------------------------------- main --------------------------------------
if __name__ == "__main__":
    key = jax.random.PRNGKey(0)
    kx, kp = jax.random.split(key)
    x = jax.random.normal(kx, (BATCH, CIN, IMG, IMG), jnp.float32)
    params = init_params(kp)

    out = jax.block_until_ready(vit_forward(x, params))
    assert out.shape == (BATCH, NCLASSES)

    ref = ref_forward(x, params)
    np.testing.assert_allclose(np.asarray(out), np.asarray(ref),
                               rtol=2e-3, atol=2e-3)
    print("KERNEL_OK")
</pallas_src>

<mosaic_0001>
module attributes {stable_mosaic.version = 11 : i64} {
  func.func @vit_kernel(%arg0: i32, %arg1: memref<1x34x48xf32, #tpu.memory_space<vmem>>, %arg2: memref<34x1xf32, #tpu.memory_space<vmem>>, %arg3: memref<34x32xf32, #tpu.memory_space<vmem>>, %arg4: memref<136x34xf32, #tpu.memory_space<vmem>>, %arg5: memref<136x32xf32, #tpu.memory_space<vmem>>, %arg6: memref<34x136xf32, #tpu.memory_space<vmem>>, %arg7: memref<136x136xf32, #tpu.memory_space<vmem>>, %arg8: memref<2x34xf32, #tpu.memory_space<vmem>>, %arg9: memref<48x32xf32, #tpu.memory_space<vmem>>, %arg10: memref<1x32xf32, #tpu.memory_space<vmem>>, %arg11: memref<2x1x32xf32, #tpu.memory_space<vmem>>, %arg12: memref<2x1x32xf32, #tpu.memory_space<vmem>>, %arg13: memref<2x32x96xf32, #tpu.memory_space<vmem>>, %arg14: memref<2x1x96xf32, #tpu.memory_space<vmem>>, %arg15: memref<2x32x32xf32, #tpu.memory_space<vmem>>, %arg16: memref<2x1x32xf32, #tpu.memory_space<vmem>>, %arg17: memref<2x1x32xf32, #tpu.memory_space<vmem>>, %arg18: memref<2x1x32xf32, #tpu.memory_space<vmem>>, %arg19: memref<2x32x64xf32, #tpu.memory_space<vmem>>, %arg20: memref<2x1x64xf32, #tpu.memory_space<vmem>>, %arg21: memref<2x64x32xf32, #tpu.memory_space<vmem>>, %arg22: memref<2x1x32xf32, #tpu.memory_space<vmem>>, %arg23: memref<1x32xf32, #tpu.memory_space<vmem>>, %arg24: memref<1x32xf32, #tpu.memory_space<vmem>>, %arg25: memref<32x128xf32, #tpu.memory_space<vmem>>, %arg26: memref<1x128xf32, #tpu.memory_space<vmem>>, %arg27: memref<1x2x128xf32, #tpu.memory_space<vmem>>) attributes {dimension_semantics = [#tpu.dimension_semantics<parallel>], iteration_bounds = array<i64: 1>, scalar_prefetch = 0 : i64, scratch_operands = 0 : i64, tpu.core_type = #tpu.core_type<tc>, window_params = [{transform_indices = @transform_0, window_bounds = array<i64: 1, 34, 48>}, {pipeline_mode = #tpu.pipeline_mode<synchronous>, transform_indices = @transform_1, window_bounds = array<i64: 34, 1>}, {pipeline_mode = #tpu.pipeline_mode<synchronous>, transform_indices = @transform_2, window_bounds = array<i64: 34, 32>}, {pipeline_mode = #tpu.pipeline_mode<synchronous>, transform_indices = @transform_3, window_bounds = array<i64: 136, 34>}, {pipeline_mode = #tpu.pipeline_mode<synchronous>, transform_indices = @transform_4, window_bounds = array<i64: 136, 32>}, {pipeline_mode = #tpu.pipeline_mode<synchronous>, transform_indices = @transform_5, window_bounds = array<i64: 34, 136>}, {pipeline_mode = #tpu.pipeline_mode<synchronous>, transform_indices = @transform_6, window_bounds = array<i64: 136, 136>}, {pipeline_mode = #tpu.pipeline_mode<synchronous>, transform_indices = @transform_7, window_bounds = array<i64: 2, 34>}, {pipeline_mode = #tpu.pipeline_mode<synchronous>, transform_indices = @transform_8, window_bounds = array<i64: 48, 32>}, {pipeline_mode = #tpu.pipeline_mode<synchronous>, transform_indices = @transform_9, window_bounds = array<i64: 1, 32>}, {pipeline_mode = #tpu.pipeline_mode<synchronous>, transform_indices = @transform_10, window_bounds = array<i64: 2, 1, 32>}, {pipeline_mode = #tpu.pipeline_mode<synchronous>, transform_indices = @transform_11, window_bounds = array<i64: 2, 1, 32>}, {pipeline_mode = #tpu.pipeline_mode<synchronous>, transform_indices = @transform_12, window_bounds = array<i64: 2, 32, 96>}, {pipeline_mode = #tpu.pipeline_mode<synchronous>, transform_indices = @transform_13, window_bounds = array<i64: 2, 1, 96>}, {pipeline_mode = #tpu.pipeline_mode<synchronous>, transform_indices = @transform_14, window_bounds = array<i64: 2, 32, 32>}, {pipeline_mode = #tpu.pipeline_mode<synchronous>, transform_indices = @transform_15, window_bounds = array<i64: 2, 1, 32>}, {pipeline_mode = #tpu.pipeline_mode<synchronous>, transform_indices = @transform_16, window_bounds = array<i64: 2, 1, 32>}, {pipeline_mode = #tpu.pipeline_mode<synchronous>, transform_indices = @transform_17, window_bounds = array<i64: 2, 1, 32>}, {pipeline_mode = #tpu.pipeline_mode<synchronous>, transform_indices = @transform_18, window_bounds = array<i64: 2, 32, 64>}, {pipeline_mode = #tpu.pipeline_mode<synchronous>, transform_indices = @transform_19, window_bounds = array<i64: 2, 1, 64>}, {pipeline_mode = #tpu.pipeline_mode<synchronous>, transform_indices = @transform_20, window_bounds = array<i64: 2, 64, 32>}, {pipeline_mode = #tpu.pipeline_mode<synchronous>, transform_indices = @transform_21, window_bounds = array<i64: 2, 1, 32>}, {pipeline_mode = #tpu.pipeline_mode<synchronous>, transform_indices = @transform_22, window_bounds = array<i64: 1, 32>}, {pipeline_mode = #tpu.pipeline_mode<synchronous>, transform_indices = @transform_23, window_bounds = array<i64: 1, 32>}, {pipeline_mode = #tpu.pipeline_mode<synchronous>, transform_indices = @transform_24, window_bounds = array<i64: 32, 128>}, {pipeline_mode = #tpu.pipeline_mode<synchronous>, transform_indices = @transform_25, window_bounds = array<i64: 1, 128>}, {transform_indices = @transform_26, window_bounds = array<i64: 1, 2, 128>}]} {
    %c0 = arith.constant 0 : index
    %c0_0 = arith.constant 0 : index
    %c0_1 = arith.constant 0 : index
    %0 = vector.load %arg1[%c0, %c0_0, %c0_1] : memref<1x34x48xf32, #tpu.memory_space<vmem>>, vector<1x34x48xf32>
    %1 = vector.shape_cast %0 : vector<1x34x48xf32> to vector<34x48xf32>
    %c0_2 = arith.constant 0 : index
    %c0_3 = arith.constant 0 : index
    %2 = vector.load %arg9[%c0_2, %c0_3] : memref<48x32xf32, #tpu.memory_space<vmem>>, vector<48x32xf32>
    %cst = arith.constant dense<0.000000e+00> : vector<34x32xf32>
    %3 = tpu.matmul %1, %2, %cst {dimension_numbers = #tpu.dot_dimension_numbers<[1], [0], [0], [1], [0, 0, 1, 1], [], []>} : vector<34x48xf32>, vector<48x32xf32>, vector<34x32xf32> -> vector<34x32xf32>
    %c0_4 = arith.constant 0 : index
    %c0_5 = arith.constant 0 : index
    %4 = vector.load %arg10[%c0_4, %c0_5] : memref<1x32xf32, #tpu.memory_space<vmem>>, vector<1x32xf32>
    %5 = vector.broadcast %4 : vector<1x32xf32> to vector<34x32xf32>
    %6 = arith.addf %3, %5 : vector<34x32xf32>
    %c0_6 = arith.constant 0 : index
    %c0_7 = arith.constant 0 : index
    %7 = vector.load %arg2[%c0_6, %c0_7] : memref<34x1xf32, #tpu.memory_space<vmem>>, vector<34x1xf32>
    %8 = vector.broadcast %7 : vector<34x1xf32> to vector<34x32xf32>
    %9 = arith.mulf %6, %8 : vector<34x32xf32>
    %c0_8 = arith.constant 0 : index
    %c0_9 = arith.constant 0 : index
    %10 = vector.load %arg3[%c0_8, %c0_9] : memref<34x32xf32, #tpu.memory_space<vmem>>, vector<34x32xf32>
    %11 = arith.addf %9, %10 : vector<34x32xf32>
    %c0_10 = arith.constant 0 : index
    %c0_11 = arith.constant 0 : index
    %12 = vector.load %arg4[%c0_10, %c0_11] : memref<136x34xf32, #tpu.memory_space<vmem>>, vector<136x34xf32>
    %c0_12 = arith.constant 0 : index
    %c0_13 = arith.constant 0 : index
    %13 = vector.load %arg5[%c0_12, %c0_13] : memref<136x32xf32, #tpu.memory_space<vmem>>, vector<136x32xf32>
    %c0_14 = arith.constant 0 : index
    %c0_15 = arith.constant 0 : index
    %14 = vector.load %arg7[%c0_14, %c0_15] : memref<136x136xf32, #tpu.memory_space<vmem>>, vector<136x136xf32>
    %c0_16 = arith.constant 0 : index
    %c0_17 = arith.constant 0 : index
    %c0_18 = arith.constant 0 : index
    %15 = vector.load %arg11[%c0_16, %c0_17, %c0_18] : memref<2x1x32xf32, #tpu.memory_space<vmem>>, vector<1x1x32xf32>
    %16 = vector.shape_cast %15 : vector<1x1x32xf32> to vector<1x32xf32>
    %c0_19 = arith.constant 0 : index
    %c0_20 = arith.constant 0 : index
    %c0_21 = arith.constant 0 : index
    %17 = vector.load %arg12[%c0_19, %c0_20, %c0_21] : memref<2x1x32xf32, #tpu.memory_space<vmem>>, vector<1x1x32xf32>
    %18 = vector.shape_cast %17 : vector<1x1x32xf32> to vector<1x32xf32>
    %cst_22 = arith.constant dense<0.000000e+00> : vector<34xf32>
    %19 = vector.multi_reduction <add>, %11, %cst_22 [1] : vector<34x32xf32> to vector<34xf32>
    %20 = vector.shape_cast %19 : vector<34xf32> to vector<34x1xf32>
    %cst_23 = arith.constant 3.200000e+01 : f32
    %21 = vector.broadcast %cst_23 : f32 to vector<34x1xf32>
    %22 = arith.divf %20, %21 : vector<34x1xf32>
    %23 = vector.broadcast %22 : vector<34x1xf32> to vector<34x32xf32>
    %24 = arith.subf %11, %23 : vector<34x32xf32>
    %25 = arith.mulf %24, %24 : vector<34x32xf32>
    %cst_24 = arith.constant dense<0.000000e+00> : vector<34xf32>
    %26 = vector.multi_reduction <add>, %25, %cst_24 [1] : vector<34x32xf32> to vector<34xf32>
    %27 = vector.shape_cast %26 : vector<34xf32> to vector<34x1xf32>
    %cst_25 = arith.constant 3.200000e+01 : f32
    %28 = vector.broadcast %cst_25 : f32 to vector<34x1xf32>
    %29 = arith.divf %27, %28 : vector<34x1xf32>
    %30 = vector.broadcast %22 : vector<34x1xf32> to vector<34x32xf32>
    %31 = arith.subf %11, %30 : vector<34x32xf32>
    %cst_26 = arith.constant 9.99999974E-6 : f32
    %32 = vector.broadcast %cst_26 : f32 to vector<34x1xf32>
    %33 = arith.addf %29, %32 : vector<34x1xf32>
    %34 = math.rsqrt %33 : vector<34x1xf32>
    %35 = vector.broadcast %34 : vector<34x1xf32> to vector<34x32xf32>
    %36 = arith.mulf %31, %35 : vector<34x32xf32>
    %37 = vector.broadcast %16 : vector<1x32xf32> to vector<34x32xf32>
    %38 = arith.mulf %36, %37 : vector<34x32xf32>
    %39 = vector.broadcast %18 : vector<1x32xf32> to vector<34x32xf32>
    %40 = arith.addf %38, %39 : vector<34x32xf32>
    %c0_27 = arith.constant 0 : index
    %c0_28 = arith.constant 0 : index
    %c0_29 = arith.constant 0 : index
    %41 = vector.load %arg13[%c0_27, %c0_28, %c0_29] : memref<2x32x96xf32, #tpu.memory_space<vmem>>, vector<1x32x96xf32>
    %42 = vector.shape_cast %41 : vector<1x32x96xf32> to vector<32x96xf32>
    %cst_30 = arith.constant dense<0.000000e+00> : vector<34x96xf32>
    %43 = tpu.matmul %40, %42, %cst_30 {dimension_numbers = #tpu.dot_dimension_numbers<[1], [0], [0], [1], [0, 0, 1, 1], [], []>} : vector<34x32xf32>, vector<32x96xf32>, vector<34x96xf32> -> vector<34x96xf32>
    %c0_31 = arith.constant 0 : index
    %c0_32 = arith.constant 0 : index
    %c0_33 = arith.constant 0 : index
    %44 = vector.load %arg14[%c0_31, %c0_32, %c0_33] : memref<2x1x96xf32, #tpu.memory_space<vmem>>, vector<1x1x96xf32>
    %45 = vector.shape_cast %44 : vector<1x1x96xf32> to vector<1x96xf32>
    %46 = vector.broadcast %45 : vector<1x96xf32> to vector<34x96xf32>
    %47 = arith.addf %43, %46 : vector<34x96xf32>
    %48 = vector.extract_strided_slice %47 {offsets = [0, 0], sizes = [34, 32], strides = [1, 1]} : vector<34x96xf32> to vector<34x32xf32>
    %49 = vector.extract_strided_slice %47 {offsets = [0, 32], sizes = [34, 32], strides = [1, 1]} : vector<34x96xf32> to vector<34x32xf32>
    %cst_34 = arith.constant dense<0.000000e+00> : vector<136x32xf32>
    %50 = tpu.matmul %12, %49, %cst_34 {dimension_numbers = #tpu.dot_dimension_numbers<[1], [0], [0], [1], [0, 0, 1, 1], [], []>} : vector<136x34xf32>, vector<34x32xf32>, vector<136x32xf32> -> vector<136x32xf32>
    %51 = arith.mulf %50, %13 : vector<136x32xf32>
    %52 = vector.extract_strided_slice %47 {offsets = [0, 64], sizes = [34, 32], strides = [1, 1]} : vector<34x96xf32> to vector<34x32xf32>
    %cst_35 = arith.constant dense<0.000000e+00> : vector<136x32xf32>
    %53 = tpu.matmul %12, %52, %cst_35 {dimension_numbers = #tpu.dot_dimension_numbers<[1], [0], [0], [1], [0, 0, 1, 1], [], []>} : vector<136x34xf32>, vector<34x32xf32>, vector<136x32xf32> -> vector<136x32xf32>
    %54 = arith.mulf %53, %13 : vector<136x32xf32>
    %cst_36 = arith.constant dense<0.000000e+00> : vector<34x136xf32>
    %55 = tpu.matmul %48, %51, %cst_36 {dimension_numbers = #tpu.dot_dimension_numbers<[1], [1], [0], [0], [0, 0, 1, 0], [], []>} : vector<34x32xf32>, vector<136x32xf32>, vector<34x136xf32> -> vector<34x136xf32>
    %c0_37 = arith.constant 0 : index
    %c0_38 = arith.constant 0 : index
    %56 = vector.load %arg6[%c0_37, %c0_38] : memref<34x136xf32, #tpu.memory_space<vmem>>, vector<34x136xf32>
    %57 = arith.addf %55, %56 : vector<34x136xf32>
    %cst_39 = arith.constant dense<0xFF800000> : vector<34xf32>
    %58 = vector.multi_reduction <maximumf>, %57, %cst_39 [1] : vector<34x136xf32> to vector<34xf32>
    %59 = vector.shape_cast %58 : vector<34xf32> to vector<34x1xf32>
    %60 = vector.broadcast %59 : vector<34x1xf32> to vector<34x136xf32>
    %61 = arith.subf %57, %60 : vector<34x136xf32>
    %62 = math.exp %61 : vector<34x136xf32>
    %cst_40 = arith.constant dense<0.000000e+00> : vector<34x136xf32>
    %63 = tpu.matmul %62, %14, %cst_40 {dimension_numbers = #tpu.dot_dimension_numbers<[1], [0], [0], [1], [0, 0, 1, 1], [], []>} : vector<34x136xf32>, vector<136x136xf32>, vector<34x136xf32> -> vector<34x136xf32>
    %64 = tpu.reciprocal %63 {approx = true} : vector<34x136xf32> -> vector<34x136xf32>
    %65 = arith.mulf %62, %64 : vector<34x136xf32>
    %cst_41 = arith.constant dense<0.000000e+00> : vector<34x32xf32>
    %66 = tpu.matmul %65, %54, %cst_41 {dimension_numbers = #tpu.dot_dimension_numbers<[1], [0], [0], [1], [0, 0, 1, 1], [], []>} : vector<34x136xf32>, vector<136x32xf32>, vector<34x32xf32> -> vector<34x32xf32>
    %c0_42 = arith.constant 0 : index
    %c0_43 = arith.constant 0 : index
    %c0_44 = arith.constant 0 : index
    %67 = vector.load %arg15[%c0_42, %c0_43, %c0_44] : memref<2x32x32xf32, #tpu.memory_space<vmem>>, vector<1x32x32xf32>
    %68 = vector.shape_cast %67 : vector<1x32x32xf32> to vector<32x32xf32>
    %cst_45 = arith.constant dense<0.000000e+00> : vector<34x32xf32>
    %69 = tpu.matmul %66, %68, %cst_45 {dimension_numbers = #tpu.dot_dimension_numbers<[1], [0], [0], [1], [0, 0, 1, 1], [], []>} : vector<34x32xf32>, vector<32x32xf32>, vector<34x32xf32> -> vector<34x32xf32>
    %70 = arith.addf %11, %69 : vector<34x32xf32>
    %c0_46 = arith.constant 0 : index
    %c0_47 = arith.constant 0 : index
    %c0_48 = arith.constant 0 : index
    %71 = vector.load %arg16[%c0_46, %c0_47, %c0_48] : memref<2x1x32xf32, #tpu.memory_space<vmem>>, vector<1x1x32xf32>
    %72 = vector.shape_cast %71 : vector<1x1x32xf32> to vector<1x32xf32>
    %73 = vector.broadcast %72 : vector<1x32xf32> to vector<34x32xf32>
    %74 = arith.addf %70, %73 : vector<34x32xf32>
    %c0_49 = arith.constant 0 : index
    %c0_50 = arith.constant 0 : index
    %c0_51 = arith.constant 0 : index
    %75 = vector.load %arg17[%c0_49, %c0_50, %c0_51] : memref<2x1x32xf32, #tpu.memory_space<vmem>>, vector<1x1x32xf32>
    %76 = vector.shape_cast %75 : vector<1x1x32xf32> to vector<1x32xf32>
    %c0_52 = arith.constant 0 : index
    %c0_53 = arith.constant 0 : index
    %c0_54 = arith.constant 0 : index
    %77 = vector.load %arg18[%c0_52, %c0_53, %c0_54] : memref<2x1x32xf32, #tpu.memory_space<vmem>>, vector<1x1x32xf32>
    %78 = vector.shape_cast %77 : vector<1x1x32xf32> to vector<1x32xf32>
    %cst_55 = arith.constant dense<0.000000e+00> : vector<34xf32>
    %79 = vector.multi_reduction <add>, %74, %cst_55 [1] : vector<34x32xf32> to vector<34xf32>
    %80 = vector.shape_cast %79 : vector<34xf32> to vector<34x1xf32>
    %cst_56 = arith.constant 3.200000e+01 : f32
    %81 = vector.broadcast %cst_56 : f32 to vector<34x1xf32>
    %82 = arith.divf %80, %81 : vector<34x1xf32>
    %83 = vector.broadcast %82 : vector<34x1xf32> to vector<34x32xf32>
    %84 = arith.subf %74, %83 : vector<34x32xf32>
    %85 = arith.mulf %84, %84 : vector<34x32xf32>
    %cst_57 = arith.constant dense<0.000000e+00> : vector<34xf32>
    %86 = vector.multi_reduction <add>, %85, %cst_57 [1] : vector<34x32xf32> to vector<34xf32>
    %87 = vector.shape_cast %86 : vector<34xf32> to vector<34x1xf32>
    %cst_58 = arith.constant 3.200000e+01 : f32
    %88 = vector.broadcast %cst_58 : f32 to vector<34x1xf32>
    %89 = arith.divf %87, %88 : vector<34x1xf32>
    %90 = vector.broadcast %82 : vector<34x1xf32> to vector<34x32xf32>
    %91 = arith.subf %74, %90 : vector<34x32xf32>
    %cst_59 = arith.constant 9.99999974E-6 : f32
    %92 = vector.broadcast %cst_59 : f32 to vector<34x1xf32>
    %93 = arith.addf %89, %92 : vector<34x1xf32>
    %94 = math.rsqrt %93 : vector<34x1xf32>
    %95 = vector.broadcast %94 : vector<34x1xf32> to vector<34x32xf32>
    %96 = arith.mulf %91, %95 : vector<34x32xf32>
    %97 = vector.broadcast %76 : vector<1x32xf32> to vector<34x32xf32>
    %98 = arith.mulf %96, %97 : vector<34x32xf32>
    %99 = vector.broadcast %78 : vector<1x32xf32> to vector<34x32xf32>
    %100 = arith.addf %98, %99 : vector<34x32xf32>
    %c0_60 = arith.constant 0 : index
    %c0_61 = arith.constant 0 : index
    %c0_62 = arith.constant 0 : index
    %101 = vector.load %arg19[%c0_60, %c0_61, %c0_62] : memref<2x32x64xf32, #tpu.memory_space<vmem>>, vector<1x32x64xf32>
    %102 = vector.shape_cast %101 : vector<1x32x64xf32> to vector<32x64xf32>
    %cst_63 = arith.constant dense<0.000000e+00> : vector<34x64xf32>
    %103 = tpu.matmul %100, %102, %cst_63 {dimension_numbers = #tpu.dot_dimension_numbers<[1], [0], [0], [1], [0, 0, 1, 1], [], []>} : vector<34x32xf32>, vector<32x64xf32>, vector<34x64xf32> -> vector<34x64xf32>
    %c0_64 = arith.constant 0 : index
    %c0_65 = arith.constant 0 : index
    %c0_66 = arith.constant 0 : index
    %104 = vector.load %arg20[%c0_64, %c0_65, %c0_66] : memref<2x1x64xf32, #tpu.memory_space<vmem>>, vector<1x1x64xf32>
    %105 = vector.shape_cast %104 : vector<1x1x64xf32> to vector<1x64xf32>
    %106 = vector.broadcast %105 : vector<1x64xf32> to vector<34x64xf32>
    %107 = arith.addf %103, %106 : vector<34x64xf32>
    %108 = arith.mulf %107, %107 : vector<34x64xf32>
    %109 = arith.mulf %107, %108 : vector<34x64xf32>
    %cst_67 = arith.constant 4.471500e-02 : f32
    %110 = vector.broadcast %cst_67 : f32 to vector<34x64xf32>
    %111 = arith.mulf %110, %109 : vector<34x64xf32>
    %112 = arith.addf %107, %111 : vector<34x64xf32>
    %cst_68 = arith.constant 0.797884583 : f32
    %113 = vector.broadcast %cst_68 : f32 to vector<34x64xf32>
    %114 = arith.mulf %113, %112 : vector<34x64xf32>
    %115 = math.tanh %114 : vector<34x64xf32>
    %cst_69 = arith.constant 1.000000e+00 : f32
    %116 = vector.broadcast %cst_69 : f32 to vector<34x64xf32>
    %117 = arith.addf %116, %115 : vector<34x64xf32>
    %cst_70 = arith.constant 5.000000e-01 : f32
    %118 = vector.broadcast %cst_70 : f32 to vector<34x64xf32>
    %119 = arith.mulf %118, %117 : vector<34x64xf32>
    %120 = arith.mulf %107, %119 : vector<34x64xf32>
    %c0_71 = arith.constant 0 : index
    %c0_72 = arith.constant 0 : index
    %c0_73 = arith.constant 0 : index
    %121 = vector.load %arg21[%c0_71, %c0_72, %c0_73] : memref<2x64x32xf32, #tpu.memory_space<vmem>>, vector<1x64x32xf32>
    %122 = vector.shape_cast %121 : vector<1x64x32xf32> to vector<64x32xf32>
    %cst_74 = arith.constant dense<0.000000e+00> : vector<34x32xf32>
    %123 = tpu.matmul %120, %122, %cst_74 {dimension_numbers = #tpu.dot_dimension_numbers<[1], [0], [0], [1], [0, 0, 1, 1], [], []>} : vector<34x64xf32>, vector<64x32xf32>, vector<34x32xf32> -> vector<34x32xf32>
    %124 = arith.addf %74, %123 : vector<34x32xf32>
    %c0_75 = arith.constant 0 : index
    %c0_76 = arith.constant 0 : index
    %c0_77 = arith.constant 0 : index
    %125 = vector.load %arg22[%c0_75, %c0_76, %c0_77] : memref<2x1x32xf32, #tpu.memory_space<vmem>>, vector<1x1x32xf32>
    %126 = vector.shape_cast %125 : vector<1x1x32xf32> to vector<1x32xf32>
    %127 = vector.broadcast %126 : vector<1x32xf32> to vector<34x32xf32>
    %128 = arith.addf %124, %127 : vector<34x32xf32>
    %c1 = arith.constant 1 : index
    %c0_78 = arith.constant 0 : index
    %c0_79 = arith.constant 0 : index
    %129 = vector.load %arg11[%c1, %c0_78, %c0_79] : memref<2x1x32xf32, #tpu.memory_space<vmem>>, vector<1x1x32xf32>
    %130 = vector.shape_cast %129 : vector<1x1x32xf32> to vector<1x32xf32>
    %c1_80 = arith.constant 1 : index
    %c0_81 = arith.constant 0 : index
    %c0_82 = arith.constant 0 : index
    %131 = vector.load %arg12[%c1_80, %c0_81, %c0_82] : memref<2x1x32xf32, #tpu.memory_space<vmem>>, vector<1x1x32xf32>
    %132 = vector.shape_cast %131 : vector<1x1x32xf32> to vector<1x32xf32>
    %cst_83 = arith.constant dense<0.000000e+00> : vector<34xf32>
    %133 = vector.multi_reduction <add>, %128, %cst_83 [1] : vector<34x32xf32> to vector<34xf32>
    %134 = vector.shape_cast %133 : vector<34xf32> to vector<34x1xf32>
    %cst_84 = arith.constant 3.200000e+01 : f32
    %135 = vector.broadcast %cst_84 : f32 to vector<34x1xf32>
    %136 = arith.divf %134, %135 : vector<34x1xf32>
    %137 = vector.broadcast %136 : vector<34x1xf32> to vector<34x32xf32>
    %138 = arith.subf %128, %137 : vector<34x32xf32>
    %139 = arith.mulf %138, %138 : vector<34x32xf32>
    %cst_85 = arith.constant dense<0.000000e+00> : vector<34xf32>
    %140 = vector.multi_reduction <add>, %139, %cst_85 [1] : vector<34x32xf32> to vector<34xf32>
    %141 = vector.shape_cast %140 : vector<34xf32> to vector<34x1xf32>
    %cst_86 = arith.constant 3.200000e+01 : f32
    %142 = vector.broadcast %cst_86 : f32 to vector<34x1xf32>
    %143 = arith.divf %141, %142 : vector<34x1xf32>
    %144 = vector.broadcast %136 : vector<34x1xf32> to vector<34x32xf32>
    %145 = arith.subf %128, %144 : vector<34x32xf32>
    %cst_87 = arith.constant 9.99999974E-6 : f32
    %146 = vector.broadcast %cst_87 : f32 to vector<34x1xf32>
    %147 = arith.addf %143, %146 : vector<34x1xf32>
    %148 = math.rsqrt %147 : vector<34x1xf32>
    %149 = vector.broadcast %148 : vector<34x1xf32> to vector<34x32xf32>
    %150 = arith.mulf %145, %149 : vector<34x32xf32>
    %151 = vector.broadcast %130 : vector<1x32xf32> to vector<34x32xf32>
    %152 = arith.mulf %150, %151 : vector<34x32xf32>
    %153 = vector.broadcast %132 : vector<1x32xf32> to vector<34x32xf32>
    %154 = arith.addf %152, %153 : vector<34x32xf32>
    %c1_88 = arith.constant 1 : index
    %c0_89 = arith.constant 0 : index
    %c0_90 = arith.constant 0 : index
    %155 = vector.load %arg13[%c1_88, %c0_89, %c0_90] : memref<2x32x96xf32, #tpu.memory_space<vmem>>, vector<1x32x96xf32>
    %156 = vector.shape_cast %155 : vector<1x32x96xf32> to vector<32x96xf32>
    %cst_91 = arith.constant dense<0.000000e+00> : vector<34x96xf32>
    %157 = tpu.matmul %154, %156, %cst_91 {dimension_numbers = #tpu.dot_dimension_numbers<[1], [0], [0], [1], [0, 0, 1, 1], [], []>} : vector<34x32xf32>, vector<32x96xf32>, vector<34x96xf32> -> vector<34x96xf32>
    %c1_92 = arith.constant 1 : index
    %c0_93 = arith.constant 0 : index
    %c0_94 = arith.constant 0 : index
    %158 = vector.load %arg14[%c1_92, %c0_93, %c0_94] : memref<2x1x96xf32, #tpu.memory_space<vmem>>, vector<1x1x96xf32>
    %159 = vector.shape_cast %158 : vector<1x1x96xf32> to vector<1x96xf32>
    %160 = vector.broadcast %159 : vector<1x96xf32> to vector<34x96xf32>
    %161 = arith.addf %157, %160 : vector<34x96xf32>
    %162 = vector.extract_strided_slice %161 {offsets = [0, 0], sizes = [34, 32], strides = [1, 1]} : vector<34x96xf32> to vector<34x32xf32>
    %163 = vector.extract_strided_slice %161 {offsets = [0, 32], sizes = [34, 32], strides = [1, 1]} : vector<34x96xf32> to vector<34x32xf32>
    %cst_95 = arith.constant dense<0.000000e+00> : vector<136x32xf32>
    %164 = tpu.matmul %12, %163, %cst_95 {dimension_numbers = #tpu.dot_dimension_numbers<[1], [0], [0], [1], [0, 0, 1, 1], [], []>} : vector<136x34xf32>, vector<34x32xf32>, vector<136x32xf32> -> vector<136x32xf32>
    %165 = arith.mulf %164, %13 : vector<136x32xf32>
    %166 = vector.extract_strided_slice %161 {offsets = [0, 64], sizes = [34, 32], strides = [1, 1]} : vector<34x96xf32> to vector<34x32xf32>
    %cst_96 = arith.constant dense<0.000000e+00> : vector<136x32xf32>
    %167 = tpu.matmul %12, %166, %cst_96 {dimension_numbers = #tpu.dot_dimension_numbers<[1], [0], [0], [1], [0, 0, 1, 1], [], []>} : vector<136x34xf32>, vector<34x32xf32>, vector<136x32xf32> -> vector<136x32xf32>
    %168 = arith.mulf %167, %13 : vector<136x32xf32>
    %cst_97 = arith.constant dense<0.000000e+00> : vector<34x136xf32>
    %169 = tpu.matmul %162, %165, %cst_97 {dimension_numbers = #tpu.dot_dimension_numbers<[1], [1], [0], [0], [0, 0, 1, 0], [], []>} : vector<34x32xf32>, vector<136x32xf32>, vector<34x136xf32> -> vector<34x136xf32>
    %c0_98 = arith.constant 0 : index
    %c0_99 = arith.constant 0 : index
    %170 = vector.load %arg6[%c0_98, %c0_99] : memref<34x136xf32, #tpu.memory_space<vmem>>, vector<34x136xf32>
    %171 = arith.addf %169, %170 : vector<34x136xf32>
    %cst_100 = arith.constant dense<0xFF800000> : vector<34xf32>
    %172 = vector.multi_reduction <maximumf>, %171, %cst_100 [1] : vector<34x136xf32> to vector<34xf32>
    %173 = vector.shape_cast %172 : vector<34xf32> to vector<34x1xf32>
    %174 = vector.broadcast %173 : vector<34x1xf32> to vector<34x136xf32>
    %175 = arith.subf %171, %174 : vector<34x136xf32>
    %176 = math.exp %175 : vector<34x136xf32>
    %cst_101 = arith.constant dense<0.000000e+00> : vector<34x136xf32>
    %177 = tpu.matmul %176, %14, %cst_101 {dimension_numbers = #tpu.dot_dimension_numbers<[1], [0], [0], [1], [0, 0, 1, 1], [], []>} : vector<34x136xf32>, vector<136x136xf32>, vector<34x136xf32> -> vector<34x136xf32>
    %178 = tpu.reciprocal %177 {approx = true} : vector<34x136xf32> -> vector<34x136xf32>
    %179 = arith.mulf %176, %178 : vector<34x136xf32>
    %cst_102 = arith.constant dense<0.000000e+00> : vector<34x32xf32>
    %180 = tpu.matmul %179, %168, %cst_102 {dimension_numbers = #tpu.dot_dimension_numbers<[1], [0], [0], [1], [0, 0, 1, 1], [], []>} : vector<34x136xf32>, vector<136x32xf32>, vector<34x32xf32> -> vector<34x32xf32>
    %c1_103 = arith.constant 1 : index
    %c0_104 = arith.constant 0 : index
    %c0_105 = arith.constant 0 : index
    %181 = vector.load %arg15[%c1_103, %c0_104, %c0_105] : memref<2x32x32xf32, #tpu.memory_space<vmem>>, vector<1x32x32xf32>
    %182 = vector.shape_cast %181 : vector<1x32x32xf32> to vector<32x32xf32>
    %cst_106 = arith.constant dense<0.000000e+00> : vector<34x32xf32>
    %183 = tpu.matmul %180, %182, %cst_106 {dimension_numbers = #tpu.dot_dimension_numbers<[1], [0], [0], [1], [0, 0, 1, 1], [], []>} : vector<34x32xf32>, vector<32x32xf32>, vector<34x32xf32> -> vector<34x32xf32>
    %184 = arith.addf %128, %183 : vector<34x32xf32>
    %c1_107 = arith.constant 1 : index
    %c0_108 = arith.constant 0 : index
    %c0_109 = arith.constant 0 : index
    %185 = vector.load %arg16[%c1_107, %c0_108, %c0_109] : memref<2x1x32xf32, #tpu.memory_space<vmem>>, vector<1x1x32xf32>
    %186 = vector.shape_cast %185 : vector<1x1x32xf32> to vector<1x32xf32>
    %187 = vector.broadcast %186 : vector<1x32xf32> to vector<34x32xf32>
    %188 = arith.addf %184, %187 : vector<34x32xf32>
    %c1_110 = arith.constant 1 : index
    %c0_111 = arith.constant 0 : index
    %c0_112 = arith.constant 0 : index
    %189 = vector.load %arg17[%c1_110, %c0_111, %c0_112] : memref<2x1x32xf32, #tpu.memory_space<vmem>>, vector<1x1x32xf32>
    %190 = vector.shape_cast %189 : vector<1x1x32xf32> to vector<1x32xf32>
    %c1_113 = arith.constant 1 : index
    %c0_114 = arith.constant 0 : index
    %c0_115 = arith.constant 0 : index
    %191 = vector.load %arg18[%c1_113, %c0_114, %c0_115] : memref<2x1x32xf32, #tpu.memory_space<vmem>>, vector<1x1x32xf32>
    %192 = vector.shape_cast %191 : vector<1x1x32xf32> to vector<1x32xf32>
    %cst_116 = arith.constant dense<0.000000e+00> : vector<34xf32>
    %193 = vector.multi_reduction <add>, %188, %cst_116 [1] : vector<34x32xf32> to vector<34xf32>
    %194 = vector.shape_cast %193 : vector<34xf32> to vector<34x1xf32>
    %cst_117 = arith.constant 3.200000e+01 : f32
    %195 = vector.broadcast %cst_117 : f32 to vector<34x1xf32>
    %196 = arith.divf %194, %195 : vector<34x1xf32>
    %197 = vector.broadcast %196 : vector<34x1xf32> to vector<34x32xf32>
    %198 = arith.subf %188, %197 : vector<34x32xf32>
    %199 = arith.mulf %198, %198 : vector<34x32xf32>
    %cst_118 = arith.constant dense<0.000000e+00> : vector<34xf32>
    %200 = vector.multi_reduction <add>, %199, %cst_118 [1] : vector<34x32xf32> to vector<34xf32>
    %201 = vector.shape_cast %200 : vector<34xf32> to vector<34x1xf32>
    %cst_119 = arith.constant 3.200000e+01 : f32
    %202 = vector.broadcast %cst_119 : f32 to vector<34x1xf32>
    %203 = arith.divf %201, %202 : vector<34x1xf32>
    %204 = vector.broadcast %196 : vector<34x1xf32> to vector<34x32xf32>
    %205 = arith.subf %188, %204 : vector<34x32xf32>
    %cst_120 = arith.constant 9.99999974E-6 : f32
    %206 = vector.broadcast %cst_120 : f32 to vector<34x1xf32>
    %207 = arith.addf %203, %206 : vector<34x1xf32>
    %208 = math.rsqrt %207 : vector<34x1xf32>
    %209 = vector.broadcast %208 : vector<34x1xf32> to vector<34x32xf32>
    %210 = arith.mulf %205, %209 : vector<34x32xf32>
    %211 = vector.broadcast %190 : vector<1x32xf32> to vector<34x32xf32>
    %212 = arith.mulf %210, %211 : vector<34x32xf32>
    %213 = vector.broadcast %192 : vector<1x32xf32> to vector<34x32xf32>
    %214 = arith.addf %212, %213 : vector<34x32xf32>
    %c1_121 = arith.constant 1 : index
    %c0_122 = arith.constant 0 : index
    %c0_123 = arith.constant 0 : index
    %215 = vector.load %arg19[%c1_121, %c0_122, %c0_123] : memref<2x32x64xf32, #tpu.memory_space<vmem>>, vector<1x32x64xf32>
    %216 = vector.shape_cast %215 : vector<1x32x64xf32> to vector<32x64xf32>
    %cst_124 = arith.constant dense<0.000000e+00> : vector<34x64xf32>
    %217 = tpu.matmul %214, %216, %cst_124 {dimension_numbers = #tpu.dot_dimension_numbers<[1], [0], [0], [1], [0, 0, 1, 1], [], []>} : vector<34x32xf32>, vector<32x64xf32>, vector<34x64xf32> -> vector<34x64xf32>
    %c1_125 = arith.constant 1 : index
    %c0_126 = arith.constant 0 : index
    %c0_127 = arith.constant 0 : index
    %218 = vector.load %arg20[%c1_125, %c0_126, %c0_127] : memref<2x1x64xf32, #tpu.memory_space<vmem>>, vector<1x1x64xf32>
    %219 = vector.shape_cast %218 : vector<1x1x64xf32> to vector<1x64xf32>
    %220 = vector.broadcast %219 : vector<1x64xf32> to vector<34x64xf32>
    %221 = arith.addf %217, %220 : vector<34x64xf32>
    %222 = arith.mulf %221, %221 : vector<34x64xf32>
    %223 = arith.mulf %221, %222 : vector<34x64xf32>
    %cst_128 = arith.constant 4.471500e-02 : f32
    %224 = vector.broadcast %cst_128 : f32 to vector<34x64xf32>
    %225 = arith.mulf %224, %223 : vector<34x64xf32>
    %226 = arith.addf %221, %225 : vector<34x64xf32>
    %cst_129 = arith.constant 0.797884583 : f32
    %227 = vector.broadcast %cst_129 : f32 to vector<34x64xf32>
    %228 = arith.mulf %227, %226 : vector<34x64xf32>
    %229 = math.tanh %228 : vector<34x64xf32>
    %cst_130 = arith.constant 1.000000e+00 : f32
    %230 = vector.broadcast %cst_130 : f32 to vector<34x64xf32>
    %231 = arith.addf %230, %229 : vector<34x64xf32>
    %cst_131 = arith.constant 5.000000e-01 : f32
    %232 = vector.broadcast %cst_131 : f32 to vector<34x64xf32>
    %233 = arith.mulf %232, %231 : vector<34x64xf32>
    %234 = arith.mulf %221, %233 : vector<34x64xf32>
    %c1_132 = arith.constant 1 : index
    %c0_133 = arith.constant 0 : index
    %c0_134 = arith.constant 0 : index
    %235 = vector.load %arg21[%c1_132, %c0_133, %c0_134] : memref<2x64x32xf32, #tpu.memory_space<vmem>>, vector<1x64x32xf32>
    %236 = vector.shape_cast %235 : vector<1x64x32xf32> to vector<64x32xf32>
    %cst_135 = arith.constant dense<0.000000e+00> : vector<34x32xf32>
    %237 = tpu.matmul %234, %236, %cst_135 {dimension_numbers = #tpu.dot_dimension_numbers<[1], [0], [0], [1], [0, 0, 1, 1], [], []>} : vector<34x64xf32>, vector<64x32xf32>, vector<34x32xf32> -> vector<34x32xf32>
    %238 = arith.addf %188, %237 : vector<34x32xf32>
    %c1_136 = arith.constant 1 : index
    %c0_137 = arith.constant 0 : index
    %c0_138 = arith.constant 0 : index
    %239 = vector.load %arg22[%c1_136, %c0_137, %c0_138] : memref<2x1x32xf32, #tpu.memory_space<vmem>>, vector<1x1x32xf32>
    %240 = vector.shape_cast %239 : vector<1x1x32xf32> to vector<1x32xf32>
    %241 = vector.broadcast %240 : vector<1x32xf32> to vector<34x32xf32>
    %242 = arith.addf %238, %241 : vector<34x32xf32>
    %c0_139 = arith.constant 0 : index
    %c0_140 = arith.constant 0 : index
    %243 = vector.load %arg8[%c0_139, %c0_140] : memref<2x34xf32, #tpu.memory_space<vmem>>, vector<2x34xf32>
    %cst_141 = arith.constant dense<0.000000e+00> : vector<2x32xf32>
    %244 = tpu.matmul %243, %242, %cst_141 {dimension_numbers = #tpu.dot_dimension_numbers<[1], [0], [0], [1], [0, 0, 1, 1], [], []>} : vector<2x34xf32>, vector<34x32xf32>, vector<2x32xf32> -> vector<2x32xf32>
    %c0_142 = arith.constant 0 : index
    %c0_143 = arith.constant 0 : index
    %245 = vector.load %arg23[%c0_142, %c0_143] : memref<1x32xf32, #tpu.memory_space<vmem>>, vector<1x32xf32>
    %c0_144 = arith.constant 0 : index
    %c0_145 = arith.constant 0 : index
    %246 = vector.load %arg24[%c0_144, %c0_145] : memref<1x32xf32, #tpu.memory_space<vmem>>, vector<1x32xf32>
    %cst_146 = arith.constant dense<0.000000e+00> : vector<2xf32>
    %247 = vector.multi_reduction <add>, %244, %cst_146 [1] : vector<2x32xf32> to vector<2xf32>
    %248 = vector.shape_cast %247 : vector<2xf32> to vector<2x1xf32>
    %cst_147 = arith.constant 3.200000e+01 : f32
    %249 = vector.broadcast %cst_147 : f32 to vector<2x1xf32>
    %250 = arith.divf %248, %249 : vector<2x1xf32>
    %251 = vector.broadcast %250 : vector<2x1xf32> to vector<2x32xf32>
    %252 = arith.subf %244, %251 : vector<2x32xf32>
    %253 = arith.mulf %252, %252 : vector<2x32xf32>
    %cst_148 = arith.constant dense<0.000000e+00> : vector<2xf32>
    %254 = vector.multi_reduction <add>, %253, %cst_148 [1] : vector<2x32xf32> to vector<2xf32>
    %255 = vector.shape_cast %254 : vector<2xf32> to vector<2x1xf32>
    %cst_149 = arith.constant 3.200000e+01 : f32
    %256 = vector.broadcast %cst_149 : f32 to vector<2x1xf32>
    %257 = arith.divf %255, %256 : vector<2x1xf32>
    %258 = vector.broadcast %250 : vector<2x1xf32> to vector<2x32xf32>
    %259 = arith.subf %244, %258 : vector<2x32xf32>
    %cst_150 = arith.constant 9.99999974E-6 : f32
    %260 = vector.broadcast %cst_150 : f32 to vector<2x1xf32>
    %261 = arith.addf %257, %260 : vector<2x1xf32>
    %262 = math.rsqrt %261 : vector<2x1xf32>
    %263 = vector.broadcast %262 : vector<2x1xf32> to vector<2x32xf32>
    %264 = arith.mulf %259, %263 : vector<2x32xf32>
    %265 = vector.broadcast %245 : vector<1x32xf32> to vector<2x32xf32>
    %266 = arith.mulf %264, %265 : vector<2x32xf32>
    %267 = vector.broadcast %246 : vector<1x32xf32> to vector<2x32xf32>
    %268 = arith.addf %266, %267 : vector<2x32xf32>
    %c0_151 = arith.constant 0 : index
    %c0_152 = arith.constant 0 : index
    %269 = vector.load %arg25[%c0_151, %c0_152] : memref<32x128xf32, #tpu.memory_space<vmem>>, vector<32x128xf32>
    %cst_153 = arith.constant dense<0.000000e+00> : vector<2x128xf32>
    %270 = tpu.matmul %268, %269, %cst_153 {dimension_numbers = #tpu.dot_dimension_numbers<[1], [0], [0], [1], [0, 0, 1, 1], [], []>} : vector<2x32xf32>, vector<32x128xf32>, vector<2x128xf32> -> vector<2x128xf32>
    %c0_154 = arith.constant 0 : index
    %c0_155 = arith.constant 0 : index
    %271 = vector.load %arg26[%c0_154, %c0_155] : memref<1x128xf32, #tpu.memory_space<vmem>>, vector<1x128xf32>
    %272 = vector.broadcast %271 : vector<1x128xf32> to vector<2x128xf32>
    %273 = arith.addf %270, %272 : vector<2x128xf32>
    %c0_156 = arith.constant 0 : index
    %c0_157 = arith.constant 0 : index
    %c0_158 = arith.constant 0 : index
    %274 = vector.load %arg27[%c0_156, %c0_157, %c0_158] : memref<1x2x128xf32, #tpu.memory_space<vmem>>, vector<1x2x128xf32>
    %275 = vector.shape_cast %274 : vector<1x2x128xf32> to vector<2x128xf32>
    %276 = vector.shape_cast %273 : vector<2x128xf32> to vector<1x2x128xf32>
    tpu.vector_store %arg27[%c0_156, %c0_157, %c0_158], %276 {strides = array<i32>} : memref<1x2x128xf32, #tpu.memory_space<vmem>>, vector<1x2x128xf32>,
    return
  }
  func.func @transform_0(%arg0: i32) -> (i32, i32, i32) {
    %c0_i32 = arith.constant 0 : i32
    %c0_i32_0 = arith.constant 0 : i32
    %c0_i32_1 = arith.constant 0 : i32
    return %arg0, %c0_i32, %c0_i32_0 : i32, i32, i32
  }
  func.func @transform_1(%arg0: i32) -> (i32, i32) {
    %c0_i32 = arith.constant 0 : i32
    %c0_i32_0 = arith.constant 0 : i32
    %c0_i32_1 = arith.constant 0 : i32
    return %c0_i32, %c0_i32_0 : i32, i32
  }
  func.func @transform_2(%arg0: i32) -> (i32, i32) {
    %c0_i32 = arith.constant 0 : i32
    %c0_i32_0 = arith.constant 0 : i32
    %c0_i32_1 = arith.constant 0 : i32
    return %c0_i32, %c0_i32_0 : i32, i32
  }
  func.func @transform_3(%arg0: i32) -> (i32, i32) {
    %c0_i32 = arith.constant 0 : i32
    %c0_i32_0 = arith.constant 0 : i32
    %c0_i32_1 = arith.constant 0 : i32
    return %c0_i32, %c0_i32_0 : i32, i32
  }
  func.func @transform_4(%arg0: i32) -> (i32, i32) {
    %c0_i32 = arith.constant 0 : i32
    %c0_i32_0 = arith.constant 0 : i32
    %c0_i32_1 = arith.constant 0 : i32
    return %c0_i32, %c0_i32_0 : i32, i32
  }
  func.func @transform_5(%arg0: i32) -> (i32, i32) {
    %c0_i32 = arith.constant 0 : i32
    %c0_i32_0 = arith.constant 0 : i32
    %c0_i32_1 = arith.constant 0 : i32
    return %c0_i32, %c0_i32_0 : i32, i32
  }
  func.func @transform_6(%arg0: i32) -> (i32, i32) {
    %c0_i32 = arith.constant 0 : i32
    %c0_i32_0 = arith.constant 0 : i32
    %c0_i32_1 = arith.constant 0 : i32
    return %c0_i32, %c0_i32_0 : i32, i32
  }
  func.func @transform_7(%arg0: i32) -> (i32, i32) {
    %c0_i32 = arith.constant 0 : i32
    %c0_i32_0 = arith.constant 0 : i32
    %c0_i32_1 = arith.constant 0 : i32
    return %c0_i32, %c0_i32_0 : i32, i32
  }
  func.func @transform_8(%arg0: i32) -> (i32, i32) {
    %c0_i32 = arith.constant 0 : i32
    %c0_i32_0 = arith.constant 0 : i32
    %c0_i32_1 = arith.constant 0 : i32
    return %c0_i32, %c0_i32_0 : i32, i32
  }
  func.func @transform_9(%arg0: i32) -> (i32, i32) {
    %c0_i32 = arith.constant 0 : i32
    %c0_i32_0 = arith.constant 0 : i32
    %c0_i32_1 = arith.constant 0 : i32
    return %c0_i32, %c0_i32_0 : i32, i32
  }
  func.func @transform_10(%arg0: i32) -> (i32, i32, i32) {
    %c0_i32 = arith.constant 0 : i32
    %c0_i32_0 = arith.constant 0 : i32
    %c0_i32_1 = arith.constant 0 : i32
    %c0_i32_2 = arith.constant 0 : i32
    return %c0_i32, %c0_i32_0, %c0_i32_1 : i32, i32, i32
  }
  func.func @transform_11(%arg0: i32) -> (i32, i32, i32) {
    %c0_i32 = arith.constant 0 : i32
    %c0_i32_0 = arith.constant 0 : i32
    %c0_i32_1 = arith.constant 0 : i32
    %c0_i32_2 = arith.constant 0 : i32
    return %c0_i32, %c0_i32_0, %c0_i32_1 : i32, i32, i32
  }
  func.func @transform_12(%arg0: i32) -> (i32, i32, i32) {
    %c0_i32 = arith.constant 0 : i32
    %c0_i32_0 = arith.constant 0 : i32
    %c0_i32_1 = arith.constant 0 : i32
    %c0_i32_2 = arith.constant 0 : i32
    return %c0_i32, %c0_i32_0, %c0_i32_1 : i32, i32, i32
  }
  func.func @transform_13(%arg0: i32) -> (i32, i32, i32) {
    %c0_i32 = arith.constant 0 : i32
    %c0_i32_0 = arith.constant 0 : i32
    %c0_i32_1 = arith.constant 0 : i32
    %c0_i32_2 = arith.constant 0 : i32
    return %c0_i32, %c0_i32_0, %c0_i32_1 : i32, i32, i32
  }
  func.func @transform_14(%arg0: i32) -> (i32, i32, i32) {
    %c0_i32 = arith.constant 0 : i32
    %c0_i32_0 = arith.constant 0 : i32
    %c0_i32_1 = arith.constant 0 : i32
    %c0_i32_2 = arith.constant 0 : i32
    return %c0_i32, %c0_i32_0, %c0_i32_1 : i32, i32, i32
  }
  func.func @transform_15(%arg0: i32) -> (i32, i32, i32) {
    %c0_i32 = arith.constant 0 : i32
    %c0_i32_0 = arith.constant 0 : i32
    %c0_i32_1 = arith.constant 0 : i32
    %c0_i32_2 = arith.constant 0 : i32
    return %c0_i32, %c0_i32_0, %c0_i32_1 : i32, i32, i32
  }
  func.func @transform_16(%arg0: i32) -> (i32, i32, i32) {
    %c0_i32 = arith.constant 0 : i32
    %c0_i32_0 = arith.constant 0 : i32
    %c0_i32_1 = arith.constant 0 : i32
    %c0_i32_2 = arith.constant 0 : i32
    return %c0_i32, %c0_i32_0, %c0_i32_1 : i32, i32, i32
  }
  func.func @transform_17(%arg0: i32) -> (i32, i32, i32) {
    %c0_i32 = arith.constant 0 : i32
    %c0_i32_0 = arith.constant 0 : i32
    %c0_i32_1 = arith.constant 0 : i32
    %c0_i32_2 = arith.constant 0 : i32
    return %c0_i32, %c0_i32_0, %c0_i32_1 : i32, i32, i32
  }
  func.func @transform_18(%arg0: i32) -> (i32, i32, i32) {
    %c0_i32 = arith.constant 0 : i32
    %c0_i32_0 = arith.constant 0 : i32
    %c0_i32_1 = arith.constant 0 : i32
    %c0_i32_2 = arith.constant 0 : i32
    return %c0_i32, %c0_i32_0, %c0_i32_1 : i32, i32, i32
  }
  func.func @transform_19(%arg0: i32) -> (i32, i32, i32) {
    %c0_i32 = arith.constant 0 : i32
    %c0_i32_0 = arith.constant 0 : i32
    %c0_i32_1 = arith.constant 0 : i32
    %c0_i32_2 = arith.constant 0 : i32
    return %c0_i32, %c0_i32_0, %c0_i32_1 : i32, i32, i32
  }
  func.func @transform_20(%arg0: i32) -> (i32, i32, i32) {
    %c0_i32 = arith.constant 0 : i32
    %c0_i32_0 = arith.constant 0 : i32
    %c0_i32_1 = arith.constant 0 : i32
    %c0_i32_2 = arith.constant 0 : i32
    return %c0_i32, %c0_i32_0, %c0_i32_1 : i32, i32, i32
  }
  func.func @transform_21(%arg0: i32) -> (i32, i32, i32) {
    %c0_i32 = arith.constant 0 : i32
    %c0_i32_0 = arith.constant 0 : i32
    %c0_i32_1 = arith.constant 0 : i32
    %c0_i32_2 = arith.constant 0 : i32
    return %c0_i32, %c0_i32_0, %c0_i32_1 : i32, i32, i32
  }
  func.func @transform_22(%arg0: i32) -> (i32, i32) {
    %c0_i32 = arith.constant 0 : i32
    %c0_i32_0 = arith.constant 0 : i32
    %c0_i32_1 = arith.constant 0 : i32
    return %c0_i32, %c0_i32_0 : i32, i32
  }
  func.func @transform_23(%arg0: i32) -> (i32, i32) {
    %c0_i32 = arith.constant 0 : i32
    %c0_i32_0 = arith.constant 0 : i32
    %c0_i32_1 = arith.constant 0 : i32
    return %c0_i32, %c0_i32_0 : i32, i32
  }
  func.func @transform_24(%arg0: i32) -> (i32, i32) {
    %c0_i32 = arith.constant 0 : i32
    %c0_i32_0 = arith.constant 0 : i32
    %c0_i32_1 = arith.constant 0 : i32
    return %c0_i32, %c0_i32_0 : i32, i32
  }
  func.func @transform_25(%arg0: i32) -> (i32, i32) {
    %c0_i32 = arith.constant 0 : i32
    %c0_i32_0 = arith.constant 0 : i32
    %c0_i32_1 = arith.constant 0 : i32
    return %c0_i32, %c0_i32_0 : i32, i32
  }
  func.func @transform_26(%arg0: i32) -> (i32, i32, i32) {
    %c0_i32 = arith.constant 0 : i32
    %c0_i32_0 = arith.constant 0 : i32
    %c0_i32_1 = arith.constant 0 : i32
    return %arg0, %c0_i32, %c0_i32_0 : i32, i32, i32
  }
}

</mosaic_0001>

<bundles_post_ra>
// kernel: tile.9
= control target key start
LH: loop header
LB: loop body
LE: loop exit
PB: predicated region body
PF: predicated region fallthrough
CT: control target
= control target key end

     0   :  { %vm3_vm0 = vcmask 261120   ;;  %s11_s6 = smov 3  ;;  %s74_s0 = inlined_call_operand.vmem [shape: f32[2,17,32], index: 0, kind: input, shape index: {}]   ;;  %s75_s1 = inlined_call_operand.vmem [shape: f32[34,32], index: 1, kind: output, shape index: {}]  }
   0x1   :  { %v2_v0 = vld [vmem:[%s74_s0] sm:$0xff]   ;;  %v26_v1 = vld [vmem:[%s74_s0 + $0x8] sm:$0xff]  }
   0x2   :  { %v28_v2 = vld [vmem:[%s74_s0 + $0x10] ss:$8 sm:%s11_s6]   ;;  %4 = vst.msk [vmem:[%s75_s1] sm:$0xff] %vm3_vm0, %v2_v0   ;;  %27 = vst.msk [vmem:[%s75_s1 + $0x8] sm:$0xff] %vm3_vm0, %v26_v1  }
   0x3   :  { %29 = vst.msk [vmem:[%s75_s1 + $0x10] sm:$0x3] %vm3_vm0, %v28_v2   ;;  %v30_v3 = vld [vmem:[%s74_s0 + $0x19] sm:$0xff]   ;;  %v32_v4 = vld [vmem:[%s74_s0 + $0x21] sm:$0xff]  }
   0x4   :  { %31 = vst.msk [vmem:[%s75_s1 + $0x12] sm:$0xff] %vm3_vm0, %v30_v3   ;;  %33 = vst.msk [vmem:[%s75_s1 + $0x1a] sm:$0xff] %vm3_vm0, %v32_v4  }

// kernel: vit_forward.1
= control target key start
LH: loop header
LB: loop body
LE: loop exit
PB: predicated region body
PF: predicated region fallthrough
CT: control target
= control target key end

     0   :  { %s6887_s0 = inlined_call_operand.vmem [shape: f32[1,34,48], index: 0, kind: input, shape index: {}]   ;;  %s6888_s1 = inlined_call_operand.vmem [shape: f32[34,1], index: 1, kind: input, shape index: {}]   ;;  %s6889_s2 = inlined_call_operand.vmem [shape: f32[34,32], index: 2, kind: input, shape index: {}]   ;;  %s6890_s3 = inlined_call_operand.vmem [shape: f32[136,34], index: 3, kind: input, shape index: {}]   ;;  %s6891_s4 = inlined_call_operand.vmem [shape: f32[136,32], index: 4, kind: input, shape index: {}]   ;;  %s6892_s5 = inlined_call_operand.vmem [shape: f32[34,136], index: 5, kind: input, shape index: {}]   ;;  %s6893_s6 = inlined_call_operand.vmem [shape: f32[136,136], index: 6, kind: input, shape index: {}]   ;;  %s6894_s7 = inlined_call_operand.vmem [shape: f32[2,34], index: 7, kind: input, shape index: {}]   ;;  %s6895_s8 = inlined_call_operand.vmem [shape: f32[48,32], index: 8, kind: input, shape index: {}]   ;;  %s6896_s9 = inlined_call_operand.vmem [shape: f32[1,32], index: 9, kind: input, shape index: {}]   ;;  %s6897_s10 = inlined_call_operand.vmem [shape: f32[2,1,32], index: 10, kind: input, shape index: {}]   ;;  %s6898_s11 = inlined_call_operand.vmem [shape: f32[2,1,32], index: 11, kind: input, shape index: {}]   ;;  %s6899_s12 = inlined_call_operand.vmem [shape: f32[2,32,96], index: 12, kind: input, shape index: {}]   ;;  %s6900_s13 = inlined_call_operand.vmem [shape: f32[2,1,96], index: 13, kind: input, shape index: {}]   ;;  %s6901_s14 = inlined_call_operand.vmem [shape: f32[2,32,32], index: 14, kind: input, shape index: {}]   ;;  %s6902_s15 = inlined_call_operand.vmem [shape: f32[2,1,32], index: 15, kind: input, shape index: {}]   ;;  %s6903_s16 = inlined_call_operand.vmem [shape: f32[2,1,32], index: 16, kind: input, shape index: {}]   ;;  %s6904_s17 = inlined_call_operand.vmem [shape: f32[2,1,32], index: 17, kind: input, shape index: {}]   ;;  %s6905_s18 = inlined_call_operand.vmem [shape: f32[2,32,64], index: 18, kind: input, shape index: {}]   ;;  %s6906_s19 = inlined_call_operand.vmem [shape: f32[2,1,64], index: 19, kind: input, shape index: {}]   ;;  %s6907_s20 = inlined_call_operand.vmem [shape: f32[2,64,32], index: 20, kind: input, shape index: {}]   ;;  %s6908_s21 = inlined_call_operand.vmem [shape: f32[2,1,32], index: 21, kind: input, shape index: {}]   ;;  %s6909_s22 = inlined_call_operand.vmem [shape: f32[1,32], index: 22, kind: input, shape index: {}]   ;;  %s6910_s23 = inlined_call_operand.vmem [shape: f32[1,32], index: 23, kind: input, shape index: {}]   ;;  %s6911_s24 = inlined_call_operand.vmem [shape: f32[32,128], index: 24, kind: input, shape index: {}]   ;;  %s6912_s25 = inlined_call_operand.vmem [shape: f32[1,128], index: 25, kind: input, shape index: {}]   ;;  %s6913_s26 = inlined_call_operand.hbm [shape: f32[1,2,128], index: 26, kind: output, shape index: {}]  }
   0x1   :  { %6929 = sst [smem:[#allocation6_spill]] %s6887_s0 }
   0x2   :  { %6930 = sst [smem:[#allocation7_spill]] %s6888_s1 }
   0x3   :  { %6931 = sst [smem:[#allocation8_spill]] %s6889_s2 }
   0x4   :  { %6932 = sst [smem:[#allocation9_spill]] %s6890_s3 }
   0x5   :  { %6933 = sst [smem:[#allocation10_spill]] %s6891_s4 }
   0x6   :  { %6934 = sst [smem:[#allocation11_spill]] %s6892_s5 }
   0x7   :  { %6935 = sst [smem:[#allocation12_spill]] %s6893_s6 }
   0x8   :  { %6936 = sst [smem:[#allocation13_spill]] %s6894_s7 }
   0x9   :  { %6937 = sst [smem:[#allocation14_spill]] %s6895_s8 }
   0xa   :  { %6938 = sst [smem:[#allocation15_spill]] %s6896_s9 }
   0xb   :  { %6939 = sst [smem:[#allocation16_spill]] %s6897_s10 }
   0xc   :  { %s6940_s7 = sld [smem:[#allocation14_spill]]  ;;  %v5114_v3 = vmov 0.0|0.0   ;;  %vm5115_vm0 = vmmov 0   ;;  %v6925_v6 = vmov 0.0   ;;  %v5117_v7 = vmov 0   ;;  %s6941_s5 = sld [smem:[#allocation7_spill]] }
   0xd   :  { %4572 = vmatprep.subr.bf16.mxu0 %v5114_v3  ;;  %4089 = vmatprep.mubr.msk.f32.mxu0 %vm5115_vm0, %v6925_v6 }
   0xe   :  { %4860 = vset.pattern.permute.xlu0 %v5117_v7  ;;  %4861 = vset.pattern.permute.xlu1 %v5117_v7 }
   0xf   :  { %4581 = vmatprep.subr.bf16.mxu1 %v5114_v3  ;;  %4112 = vmatprep.mubr.msk.f32.mxu1 %vm5115_vm0, %v6925_v6 }
  0x12   :  { %v89_v0 = vld [vmem:[%s6940_s7] sm:$0xff]  ;;  %v90_v1 = vld [vmem:[%s6940_s7 + $0x8] sm:$0xff]  ;;  %v91_v2 = vld [vmem:[%s6940_s7 + $0x10] sm:$0xff] }
  0x13   :  { %v4573_v4 = vpack.c.bf16 %v90_v1, %v89_v0  ;;  %v92_v5 = vld [vmem:[%s6940_s7 + $0x18] sm:$0xff]  ;;  %v208_v9 = vld [vmem:[%s6941_s5] sm:$0xff]  ;;  %v94_v11 = vld [vmem:[%s6940_s7 + $0x28] sm:$0xff] }
  0x14   :  { %v4576_v8 = vpack.c.bf16 %v92_v5, %v91_v2  ;;  %v93_v10 = vld [vmem:[%s6940_s7 + $0x20] sm:$0xff]  ;;  %215 = vperm.xlu0 %4860, %v208_v9   ;;  %v210_v12 = vld [vmem:[%s6941_s5 + $0x10] sm:$0xff]  ;;  %v209_v13 = vld [vmem:[%s6941_s5 + $0x8] sm:$0xff] }
  0x15   :  { %4574 = vmatpush3.bf16.msra.mxu0 %v4573_v4  ;;  %225 = vperm.xlu1 %4861, %v210_v12  }
  0x16   :  { %4575 = vmatprep.subr.bf16.mxu0 %v5114_v3 }
  0x17   :  { %31 = vsyncpa [#allocation3], 0  ;;  %v211_v14 = vld [vmem:[%s6941_s5 + $0x18] sm:$0xff]  ;;  %v4579_v15 = vpack.c.bf16 %v94_v11, %v93_v10  ;;  %v212_v16 = vld [vmem:[%s6941_s5 + $0x20] sm:$0x3]  ;;  %s6942_s10 = sld [smem:[#allocation6_spill]] }
  0x18   :  { %220 = vperm.xlu0 %4860, %v209_v13   ;;  %vm102_vm1 = vcmask 392192   ;;  %s6943_s7 = sld [smem:[#allocation15_spill]]  ;;  %s6944_s2 = sld [smem:[#allocation8_spill]]  ;;  %vm323_vm2 = vcmask 261120   ;;  %vm336_vm3 = vcmask 254976   ;;  %vm600_vm4 = vcmask 1041408  }
  0x19   :  { %4577 = vmatpush3.bf16.msra.mxu0 %v4576_v8  ;;  %230 = vperm.xlu1 %4861, %v211_v14   ;;  %s6945_s5 = sld [smem:[#allocation16_spill]]  ;;  %s5118_s4 = smov 96   ;;  %vm548_vm5 = vcmask 277504   ;;  %vm5602_vm6 = vmpackc.low %vm323_vm2, %vm323_vm2  ;;  %vm1119_vm7 = vcmask 64512   ;;  %vm1137_vm8 = vcmask 58368   ;;  %vm1791_vm9 = vcmask 523264  }
  0x1a   :  { %4578 = vmatprep.subr.bf16.mxu0 %v5114_v3  ;;  %s6923_s29 = smov 64   ;;  %s6946_s9 = sld [smem:[#allocation9_spill]] }
  0x1b   :  { %s6951_s3 = sld [smem:[#allocation12_spill]]  ;;  %s6952_s1 = sld [smem:[#allocation11_spill]] }
  0x1c   :  { %235 = vperm.xlu0 %4860, %v212_v16  }
  0x1d   :  { %4580 = vmatpush3.bf16.msra.mxu0 %v4579_v15  ;;  %v84_v17 = vld [vmem:[%s6942_s10] sm:$0xff]  ;;  %v85_v18 = vld [vmem:[%s6942_s10 + $0x8] sm:$0xff]  ;;  %v86_v19 = vld [vmem:[%s6942_s10 + $0x10] sm:$0xff] }
  0x1e   :  { %4593 = vmatprep.subr.bf16.mxu0 %v5114_v3  ;;  %v87_v20 = vld [vmem:[%s6942_s10 + $0x18] sm:$0xff]  ;;  %v88_v21 = vld [vmem:[%s6942_s10 + $0x20] sm:$0x3]  ;;  %v244_v34 = vld [vmem:[%s6944_s2 + $0x8] sm:$0xff] }
  0x1f   :  { %v3655_v22 = vld [vmem:[%s6943_s7] ss:$0 sm:$0xff]  ;;  %v245_v42 = vld [vmem:[%s6944_s2 + $0x10] sm:$0xff]  ;;  %v246_v50 = vld [vmem:[%s6944_s2 + $0x18] sm:$0xff]  ;;  %s5120_s7 = smov [#allocation2]  }
  0x20   :  { %4090 = vmatmul.mubr.msk.f32.vlgmr.msra.gmra.mrb[0].mxu0 %vm102_vm1, %v84_v17  ;;  %v243_v27 = vld [vmem:[%s6944_s2] sm:$0xff] }
  0x21   :  { %4092 = vmatprep.mubr.msk.f32.mxu0 %vm5115_vm0, %v6925_v6  ;;  %v247_v58 = vld [vmem:[%s6944_s2 + $0x20] sm:$0x3]  ;;  %s6947_s2 = sld [smem:[#allocation10_spill]] }
  0x24   :  { %4093 = vmatmul.mubr.msk.f32.gmra.mrb[2].mxu0 %vm102_vm1, %v85_v18 }
  0x25   :  { %4095 = vmatprep.mubr.msk.f32.mxu0 %vm5115_vm0, %v6925_v6 }
  0x28   :  { %4096 = vmatmul.mubr.msk.f32.gmra.mrb[4].mxu0 %vm102_vm1, %v86_v19 }
  0x29   :  { %4098 = vmatprep.mubr.msk.f32.mxu0 %vm5115_vm0, %v6925_v6 }
  0x2c   :  { %4099 = vmatmul.mubr.msk.f32.gmra.mrb[6].mxu0 %vm102_vm1, %v87_v20 }
  0x2d   :  { %4101 = vmatprep.mubr.msk.f32.mxu0 %vm5115_vm0, %v6925_v6 }
  0x30   :  { %4102 = vmatmul.mubr.msk.f32.gmra.mrb[8].mxu0 %vm102_vm1, %v88_v21 }
  0x31   :  { %4198 = vmatprep.mubr.msk.f32.mxu0 %vm5115_vm0, %v6925_v6 }
  0x93   :  { %v216_v23 = vpop.permute.xlu0 %215 }
  0x94   :  { %v226_v37 = vpop.permute.xlu1 %225 }
  0x97   :  { %v221_v33 = vpop.permute.xlu0 %220 }
  0x98   :  { %v231_v49 = vpop.permute.xlu1 %230 }
  0x9b   :  { %v236_v57 = vpop.permute.xlu0 %235 }
  0xf3   :  { %v184_v24 = vpop.f32.mrb[0].mxu0 }
  0xf4   :  { %v185_v25 = vadd.f32 %v3655_v22, %v184_v24  ;;  %v4091_v26 = vpop.f32.mrb[1].mxu0 }
  0xf5   :  { %v413_v26 = vld [vmem:[%s6899_s12] sm:$0xff] }
  0xf6   :  { %v238_v28 = vmul.f32 %v216_v23, %v185_v25 }
  0xf7   :  { %v189_v29 = vpop.f32.mrb[2].mxu0 }
  0xf8   :  { %v5329_v30 = vadd.f32 %v243_v27, %v238_v28  ;;  %v190_v31 = vadd.f32 %v3655_v22, %v189_v29  ;;  %v4094_v32 = vpop.f32.mrb[3].mxu0  ;;  %v414_v27 = vld [vmem:[%s6899_s12 + $0x8] sm:$0xff]  ;;  %v415_v29 = vld [vmem:[%s6899_s12 + $0x10] sm:$0xff] }
  0xf9   :  { %v4582_v28 = vpack.c.bf16 %v414_v27, %v413_v26 }
  0xfa   :  { %v239_v35 = vmul.f32 %v221_v33, %v190_v31  ;;  %v324_v36 = vsel %vm323_vm2, %v5329_v30, 0.0  ;;  %v416_v31 = vld [vmem:[%s6899_s12 + $0x18] sm:$0xff] }
  0xfb   :  { %325 = vadd.xlane.f32.xlu1 %v324_v36  ;;  %v194_v38 = vpop.f32.mrb[4].mxu0  ;;  %4583 = vmatpush3.bf16.msra.mxu1 %v4582_v28  ;;  %v4585_v32 = vpack.c.bf16 %v416_v31, %v415_v29 }
  0xfc   :  { %v5336_v39 = vadd.f32 %v244_v34, %v239_v35  ;;  %v195_v40 = vadd.f32 %v3655_v22, %v194_v38  ;;  %v4097_v41 = vpop.f32.mrb[5].mxu0  ;;  %4584 = vmatprep.subr.bf16.mxu1 %v5114_v3 }
  0xfe   :  { %v240_v43 = vmul.f32 %v226_v37, %v195_v40  ;;  %v327_v44 = vsel %vm323_vm2, %v5336_v39, 0.0 }
  0xff   :  { %328 = vadd.xlane.f32.xlu0 %v327_v44  ;;  %v199_v45 = vpop.f32.mrb[6].mxu0  ;;  %4586 = vmatpush3.bf16.msra.mxu1 %v4585_v32 }
 0x100   :  { %v5343_v46 = vadd.f32 %v245_v42, %v240_v43  ;;  %v200_v47 = vadd.f32 %v3655_v22, %v199_v45  ;;  %v4100_v48 = vpop.f32.mrb[7].mxu0  ;;  %4587 = vmatprep.subr.bf16.mxu1 %v5114_v3 }
 0x101   :  { %v3661_v48 = vld [vmem:[%s6945_s5] ss:$0 sm:$0xff] }
 0x102   :  { %v241_v51 = vmul.f32 %v231_v49, %v200_v47  ;;  %v330_v52 = vsel %vm323_vm2, %v5343_v46, 0.0 }
 0x103   :  { %331 = vadd.xlane.f32.xlu0 %v330_v52  ;;  %v204_v53 = vpop.f32.mrb[8].mxu0  ;;  %v3662_v52 = vld [vmem:[%s6898_s11] ss:$0 sm:$0xff] }
 0x104   :  { %v5350_v54 = vadd.f32 %v246_v50, %v241_v51  ;;  %v205_v55 = vadd.f32 %v3655_v22, %v204_v53  ;;  %v4103_v56 = vpop.f32.mrb[9].mxu0 }
 0x106   :  { %v242_v59 = vmul.f32 %v236_v57, %v205_v55  ;;  %v333_v60 = vsel %vm323_vm2, %v5350_v54, 0.0 }
 0x107   :  { %334 = vadd.xlane.f32.xlu1 %v333_v60 }
 0x108   :  { %v5357_v61 = vadd.f32 %v247_v58, %v242_v59 }
 0x10a   :  { %v337_v62 = vsel %vm336_vm3, %v5357_v61, 0.0 }
 0x10b   :  { %338 = vadd.xlane.f32.xlu0 %v337_v62 }
 0x188   :  { %v326_v63 = vpop.xlane.xlu1 %325 }
 0x189   :  { %v341_v0 = vmul.f32 0.03125, %v326_v63 }
 0x18b   :  { %v346_v1 = vsub.f32 %v5329_v30, %v341_v0 }
 0x18c   :  { %v329_v2 = vpop.xlane.xlu0 %328 }
 0x18d   :  { %v342_v4 = vmul.f32 0.03125, %v329_v2  ;;  %v351_v5 = vmul.f32 %v346_v1, %v346_v1 }
 0x18f   :  { %v347_v7 = vsub.f32 %v5336_v39, %v342_v4  ;;  %v356_v8 = vsel %vm323_vm2, %v351_v5, 0.0 }
 0x190   :  { %v332_v9 = vpop.xlane.xlu0 %331  ;;  %357 = vadd.xlane.f32.xlu1 %v356_v8 }
 0x191   :  { %v343_v10 = vmul.f32 0.03125, %v332_v9  ;;  %v352_v11 = vmul.f32 %v347_v7, %v347_v7 }
 0x193   :  { %v348_v12 = vsub.f32 %v5343_v46, %v343_v10  ;;  %v359_v13 = vsel %vm323_vm2, %v352_v11, 0.0 }
 0x194   :  { %v335_v14 = vpop.xlane.xlu1 %334  ;;  %360 = vadd.xlane.f32.xlu0 %v359_v13 }
 0x195   :  { %v344_v15 = vmul.f32 0.03125, %v335_v14  ;;  %v353_v16 = vmul.f32 %v348_v12, %v348_v12  ;;  %v3663_v14 = vld [vmem:[%s6900_s13] ss:$0 sm:$0xff] }
 0x197   :  { %v349_v17 = vsub.f32 %v5350_v54, %v344_v15  ;;  %v362_v18 = vsel %vm323_vm2, %v353_v16, 0.0 }
 0x198   :  { %363 = vadd.xlane.f32.xlu1 %v362_v18  ;;  %v339_v19 = vpop.xlane.xlu0 %338 }
 0x199   :  { %v345_v20 = vmul.f32 0.03125, %v339_v19  ;;  %v354_v21 = vmul.f32 %v349_v17, %v349_v17 }
 0x19b   :  { %v350_v22 = vsub.f32 %v5357_v61, %v345_v20  ;;  %v365_v23 = vsel %vm323_vm2, %v354_v21, 0.0 }
 0x19c   :  { %366 = vadd.xlane.f32.xlu0 %v365_v23 }
 0x19d   :  { %v355_v24 = vmul.f32 %v350_v22, %v350_v22 }
 0x19f   :  { %v368_v25 = vsel %vm336_vm3, %v355_v24, 0.0 }
 0x1a0   :  { %369 = vadd.xlane.f32.xlu1 %v368_v25 }
 0x21d   :  { %v358_v33 = vpop.xlane.xlu1 %357 }
 0x21e   :  { %v371_v34 = vmul.f32 0.03125, %v358_v33 }
 0x220   :  { %v376_v35 = vadd.f32 1e-05, %v371_v34 }
 0x221   :  { %v361_v36 = vpop.xlane.xlu0 %360 }
 0x222   :  { %4902 = vrsqrt.f32 %v376_v35  ;;  %v372_v37 = vmul.f32 0.03125, %v361_v36 }
 0x224   :  { %v377_v38 = vadd.f32 1e-05, %v372_v37 }
 0x225   :  { %v364_v40 = vpop.xlane.xlu1 %363 }
 0x226   :  { %4904 = vrsqrt.f32 %v377_v38  ;;  %v373_v41 = vmul.f32 0.03125, %v364_v40 }
 0x228   :  { %v378_v42 = vadd.f32 1e-05, %v373_v41 }
 0x229   :  { %v367_v43 = vpop.xlane.xlu0 %366 }
 0x22a   :  { %4906 = vrsqrt.f32 %v378_v42  ;;  %v374_v44 = vmul.f32 0.03125, %v367_v43 }
 0x22c   :  { %v4903_v45 = vpop.eup %4902  ;;  %v379_v47 = vadd.f32 1e-05, %v374_v44 }
 0x22d   :  { %v370_v49 = vpop.xlane.xlu1 %369  ;;  %v386_v50 = vmul.f32 %v4903_v45, %v346_v1  ;;  %v253_v45 = vld [vmem:[%s6946_s9] sm:$0xff] }
 0x22e   :  { %4908 = vrsqrt.f32 %v379_v47  ;;  %v375_v51 = vmul.f32 0.03125, %v370_v49 }
 0x22f   :  { %v397_v53 = vmul.f32 %v3661_v48, %v386_v50 }
 0x230   :  { %v4905_v55 = vpop.eup %4904  ;;  %v380_v56 = vadd.f32 1e-05, %v375_v51  ;;  %v254_v51 = vld [vmem:[%s6946_s9 + $0x8] sm:$0xff] }
 0x231   :  { %v408_v57 = vadd.f32 %v3662_v52, %v397_v53  ;;  %v387_v58 = vmul.f32 %v4905_v55, %v347_v7  ;;  %v256_v55 = vld [vmem:[%s6946_s9 + $0x18] sm:$0xff] }
 0x232   :  { %4910 = vrsqrt.f32 %v380_v56  ;;  %v257_v56 = vld [vmem:[%s6946_s9 + $0x20] sm:$0xff] }
 0x233   :  { %4113 = vmatmul.mubr.msk.f32.vlgmr.msra.gmra.mrb[0].mxu1 %vm323_vm2, %v408_v57  ;;  %v398_v59 = vmul.f32 %v3661_v48, %v387_v58  ;;  %v258_v57 = vld [vmem:[%s6946_s9 + $0x28] sm:$0xff]  ;;  %v259_v58 = vld [vmem:[%s6946_s9 + $0x30] sm:$0xff] }
 0x234   :  { %v4907_v60 = vpop.eup %4906  ;;  %4115 = vmatprep.mubr.msk.f32.mxu1 %vm5115_vm0, %v6925_v6 }
 0x235   :  { %v409_v62 = vadd.f32 %v3662_v52, %v398_v59  ;;  %v388_v63 = vmul.f32 %v4907_v60, %v348_v12  ;;  %v260_v59 = vld [vmem:[%s6946_s9 + $0x38] sm:$0xff]  ;;  %v261_v60 = vld [vmem:[%s6946_s9 + $0x40] sm:$0xff] }
 0x237   :  { %4116 = vmatmul.mubr.msk.f32.gmra.mrb[2].mxu1 %vm323_vm2, %v409_v62  ;;  %v399_v0 = vmul.f32 %v3661_v48, %v388_v63  ;;  %v262_v62 = vld [vmem:[%s6946_s9 + $0x48] sm:$0xff]  ;;  %v263_v63 = vld [vmem:[%s6946_s9 + $0x50] sm:$0xff] }
 0x238   :  { %v4909_v1 = vpop.eup %4908  ;;  %4118 = vmatprep.mubr.msk.f32.mxu1 %vm5115_vm0, %v6925_v6 }
 0x239   :  { %v410_v2 = vadd.f32 %v3662_v52, %v399_v0  ;;  %v389_v4 = vmul.f32 %v4909_v1, %v349_v17  ;;  %v264_v0 = vld [vmem:[%s6946_s9 + $0x58] sm:$0xff]  ;;  %v265_v1 = vld [vmem:[%s6946_s9 + $0x60] sm:$0xff] }
 0x23b   :  { %4119 = vmatmul.mubr.msk.f32.gmra.mrb[4].mxu1 %vm323_vm2, %v410_v2  ;;  %v400_v5 = vmul.f32 %v3661_v48, %v389_v4  ;;  %v266_v2 = vld [vmem:[%s6946_s9 + $0x68] sm:$0xff]  ;;  %v267_v4 = vld [vmem:[%s6946_s9 + $0x70] sm:$0xff] }
 0x23c   :  { %v4911_v7 = vpop.eup %4910  ;;  %4121 = vmatprep.mubr.msk.f32.mxu1 %vm5115_vm0, %v6925_v6 }
 0x23d   :  { %v411_v8 = vadd.f32 %v3662_v52, %v400_v5  ;;  %v390_v9 = vmul.f32 %v4911_v7, %v350_v22  ;;  %v268_v5 = vld [vmem:[%s6946_s9 + $0x78] sm:$0xff]  ;;  %v269_v7 = vld [vmem:[%s6946_s9 + $0x80] sm:$0xff] }
 0x23f   :  { %4122 = vmatmul.mubr.msk.f32.gmra.mrb[6].mxu1 %vm323_vm2, %v411_v8  ;;  %v401_v10 = vmul.f32 %v3661_v48, %v390_v9 }
 0x240   :  { %4124 = vmatprep.mubr.msk.f32.mxu1 %vm5115_vm0, %v6925_v6 }
 0x241   :  { %v412_v11 = vadd.f32 %v3662_v52, %v401_v10  ;;  %v255_v52 = vld [vmem:[%s6946_s9 + $0x10] sm:$0xff]  ;;  %v5591_v10 = vld [vmem:[%s6947_s2] sm:$0xff] }
 0x243   :  { %4125 = vmatmul.mubr.msk.f32.gmra.mrb[8].mxu1 %vm323_vm2, %v412_v11  ;;  %v5596_v11 = vld [vmem:[%s6947_s2 + $0x8] sm:$0xff] }
 0x244   :  { %4137 = vmatprep.mubr.msk.f32.mxu1 %vm5115_vm0, %v6925_v6 }
 0x306   :  { %v505_v12 = vpop.f32.mrb[0].mxu1 }
 0x307   :  { %v4114_v13 = vpop.f32.mrb[1].mxu1  ;;  %v5409_v16 = vadd.f32 %v3663_v14, %v505_v12 }
 0x30a   :  { %v510_v15 = vpop.f32.mrb[2].mxu1 }
 0x30b   :  { %v5411_v17 = vadd.f32 %v3663_v14, %v510_v15  ;;  %v4117_v18 = vpop.f32.mrb[3].mxu1 }
 0x30c   :  { %v6948_v18 = vmov 0 }
 0x30d   :  { %v4862_v19 = vpack.i.bf16 %v5411_v17, %v5409_v16  ;;  %v6949_v18 = vsel %vm5602_vm6, 4294967295, %v6948_v18 }
 0x30e   :  { %v515_v20 = vpop.f32.mrb[4].mxu1  ;;  %6950 = vst [vmem:[#allocation5_spill] sm:$0xff] %v6949_v18 }
 0x30f   :  { %4863 = vrot.lane.b32.xlu0 %v4862_v19, %s5118_s4  ;;  %v4120_v21 = vpop.f32.mrb[5].mxu1  ;;  %v5416_v23 = vadd.f32 %v3663_v14, %v515_v20 }
 0x312   :  { %v520_v22 = vpop.f32.mrb[6].mxu1 }
 0x313   :  { %v5418_v24 = vadd.f32 %v3663_v14, %v520_v22  ;;  %4873 = vrot.lane.b32.xlu0 %v4862_v19, %s6923_s29  ;;  %v4123_v25 = vpop.f32.mrb[7].mxu1  ;;  %v5611_v22 = vld [vmem:[%s6947_s2 + $0x10] sm:$0xff] }
 0x314   :  { %v5616_v25 = vld [vmem:[%s6947_s2 + $0x18] sm:$0xff] }
 0x315   :  { %v4867_v26 = vpack.i.bf16 %v5418_v24, %v5416_v23 }
 0x316   :  { %v525_v27 = vpop.f32.mrb[8].mxu1 }
 0x317   :  { %v5423_v28 = vadd.f32 %v3663_v14, %v525_v27  ;;  %4868 = vrot.lane.b32.xlu1 %v4867_v26, %s5118_s4  ;;  %v4126_v29 = vpop.f32.mrb[9].mxu1 }
 0x319   :  { %778 = vrot.lane.b32.xlu0 %v5423_v28, %s6923_s29 }
 0x31b   :  { %542 = vrot.lane.b32.xlu1 %v5423_v28, %s5118_s4 }
 0x31f   :  { %4878 = vrot.lane.b32.xlu1 %v4867_v26, %s6923_s29 }
 0x381   :  { %v4864_v31 = vpop.permute.xlu0 %4863 }
 0x382   :  { %v4866_v32 = vunpack.i.h.bf16 %v4864_v31  ;;  %v4865_v33 = vunpack.i.l.bf16 %v4864_v31 }
 0x384   :  { %v4588_v34 = vpack.c.bf16 %v4866_v32, %v4865_v33 }
 0x385   :  { %v4874_v35 = vpop.permute.xlu0 %4873 }
 0x386   :  { %v4876_v36 = vunpack.i.h.bf16 %v4874_v35  ;;  %v4875_v37 = vunpack.i.l.bf16 %v4874_v35  ;;  %4589 = vmatpush3.bf16.msra.mxu1 %v4588_v34  ;;  %v5626_v35 = vld [vmem:[%s6947_s2 + $0x20] sm:$0xff] }
 0x387   :  { %4590 = vmatprep.subr.bf16.mxu1 %v5114_v3 }
 0x388   :  { %v4594_v38 = vpack.c.bf16 %v4876_v36, %v4875_v37  ;;  %v5631_v36 = vld [vmem:[%s6947_s2 + $0x28] sm:$0xff] }
 0x389   :  { %v4869_v40 = vpop.permute.xlu1 %4868 }
 0x38a   :  { %v4871_v41 = vunpack.i.h.bf16 %v4869_v40  ;;  %v4870_v42 = vunpack.i.l.bf16 %v4869_v40  ;;  %4595 = vmatpush3.bf16.msra.mxu0 %v4594_v38 }
 0x38b   :  { %4596 = vmatprep.subr.bf16.mxu0 %v5114_v3  ;;  %v779_v53 = vpop.permute.xlu0 %778 }
 0x38c   :  { %v4591_v43 = vpack.c.bf16 %v4871_v41, %v4870_v42 }
 0x38d   :  { %v543_v44 = vpop.permute.xlu1 %542 }
 0x38e   :  { %4592 = vmatpush3.bf16.msra.mxu1 %v4591_v43 }
 0x38f   :  { %4135 = vmatprep.subr.mxu1 %v6925_v6 }
 0x391   :  { %v4879_v47 = vpop.permute.xlu1 %4878 }
 0x392   :  { %v4881_v48 = vunpack.i.h.bf16 %v4879_v47  ;;  %v4880_v49 = vunpack.i.l.bf16 %v4879_v47  ;;  %4136 = vmatpush3.msk.msra.mxu1 %vm600_vm4, %v543_v44  ;;  %v5646_v47 = vld [vmem:[%s6947_s2 + $0x38] sm:$0xff] }
 0x393   :  { %4138 = vmatmul.mubr.msk.f32.vlgmr.msra.gmra.mrb[10].mxu1 %vm548_vm5, %v253_v45  ;;  %4599 = vmatprep.subr.bf16.mxu1 %v5114_v3 }
 0x394   :  { %v4597_v50 = vpack.c.bf16 %v4881_v48, %v4880_v49  ;;  %4140 = vmatprep.mubr.msk.f32.mxu1 %vm5115_vm0, %v6925_v6 }
 0x396   :  { %4598 = vmatpush3.bf16.msra.mxu0 %v4597_v50 }
 0x397   :  { %4141 = vmatmul.mubr.msk.f32.gmra.mrb[12].mxu1 %vm548_vm5, %v254_v51  ;;  %4196 = vmatprep.subr.mxu0 %v6925_v6 }
 0x398   :  { %4143 = vmatprep.mubr.msk.f32.mxu1 %vm5115_vm0, %v6925_v6 }
 0x39a   :  { %4197 = vmatpush3.msk.msra.mxu0 %vm600_vm4, %v779_v53 }
 0x39b   :  { %4144 = vmatmul.mubr.msk.f32.gmra.mrb[14].mxu1 %vm548_vm5, %v255_v52  ;;  %4199 = vmatmul.mubr.msk.f32.vlgmr.msra.gmra.mrb[10].mxu0 %vm548_vm5, %v253_v45  ;;  %v5641_v45 = vld [vmem:[%s6947_s2 + $0x30] sm:$0xff] }
 0x39c   :  { %4146 = vmatprep.mubr.msk.f32.mxu1 %vm5115_vm0, %v6925_v6  ;;  %4201 = vmatprep.mubr.msk.f32.mxu0 %vm5115_vm0, %v6925_v6 }
 0x39f   :  { %4147 = vmatmul.mubr.msk.f32.gmra.mrb[16].mxu1 %vm548_vm5, %v256_v55  ;;  %4202 = vmatmul.mubr.msk.f32.gmra.mrb[12].mxu0 %vm548_vm5, %v254_v51 }
 0x3a0   :  { %4149 = vmatprep.mubr.msk.f32.mxu1 %vm5115_vm0, %v6925_v6  ;;  %4204 = vmatprep.mubr.msk.f32.mxu0 %vm5115_vm0, %v6925_v6 }
 0x3a3   :  { %4150 = vmatmul.mubr.msk.f32.gmra.mrb[18].mxu1 %vm548_vm5, %v257_v56  ;;  %4205 = vmatmul.mubr.msk.f32.gmra.mrb[14].mxu0 %vm548_vm5, %v255_v52 }
 0x3a4   :  { %4152 = vmatprep.mubr.msk.f32.mxu1 %vm5115_vm0, %v6925_v6  ;;  %4207 = vmatprep.mubr.msk.f32.mxu0 %vm5115_vm0, %v6925_v6 }
 0x3a7   :  { %4153 = vmatmul.mubr.msk.f32.gmra.mrb[20].mxu1 %vm548_vm5, %v258_v57  ;;  %4208 = vmatmul.mubr.msk.f32.gmra.mrb[16].mxu0 %vm548_vm5, %v256_v55 }
 0x3a8   :  { %4155 = vmatprep.mubr.msk.f32.mxu1 %vm5115_vm0, %v6925_v6  ;;  %4210 = vmatprep.mubr.msk.f32.mxu0 %vm5115_vm0, %v6925_v6 }
 0x3ab   :  { %4156 = vmatmul.mubr.msk.f32.gmra.mrb[22].mxu1 %vm548_vm5, %v259_v58  ;;  %4211 = vmatmul.mubr.msk.f32.gmra.mrb[18].mxu0 %vm548_vm5, %v257_v56  ;;  %v5656_v56 = vld [vmem:[%s6947_s2 + $0x40] sm:$0xff] }
 0x3ac   :  { %4158 = vmatprep.mubr.msk.f32.mxu1 %vm5115_vm0, %v6925_v6  ;;  %4213 = vmatprep.mubr.msk.f32.mxu0 %vm5115_vm0, %v6925_v6 }
 0x3af   :  { %4159 = vmatmul.mubr.msk.f32.gmra.mrb[24].mxu1 %vm548_vm5, %v260_v59  ;;  %4214 = vmatmul.mubr.msk.f32.gmra.mrb[20].mxu0 %vm548_vm5, %v258_v57  ;;  %v5661_v57 = vld [vmem:[%s6947_s2 + $0x48] sm:$0xff] }
 0x3b0   :  { %4161 = vmatprep.mubr.msk.f32.mxu1 %vm5115_vm0, %v6925_v6  ;;  %4216 = vmatprep.mubr.msk.f32.mxu0 %vm5115_vm0, %v6925_v6 }
 0x3b3   :  { %4162 = vmatmul.mubr.msk.f32.gmra.mrb[26].mxu1 %vm548_vm5, %v261_v60  ;;  %4217 = vmatmul.mubr.msk.f32.gmra.mrb[22].mxu0 %vm548_vm5, %v259_v58 }
 0x3b4   :  { %4164 = vmatprep.mubr.msk.f32.mxu1 %vm5115_vm0, %v6925_v6  ;;  %4219 = vmatprep.mubr.msk.f32.mxu0 %vm5115_vm0, %v6925_v6 }
 0x3b7   :  { %4165 = vmatmul.mubr.msk.f32.gmra.mrb[28].mxu1 %vm548_vm5, %v262_v62  ;;  %4220 = vmatmul.mubr.msk.f32.gmra.mrb[24].mxu0 %vm548_vm5, %v260_v59 }
 0x3b8   :  { %4167 = vmatprep.mubr.msk.f32.mxu1 %vm5115_vm0, %v6925_v6  ;;  %4222 = vmatprep.mubr.msk.f32.mxu0 %vm5115_vm0, %v6925_v6 }
 0x3bb   :  { %4168 = vmatmul.mubr.msk.f32.gmra.mrb[30].mxu1 %vm548_vm5, %v263_v63  ;;  %4223 = vmatmul.mubr.msk.f32.gmra.mrb[26].mxu0 %vm548_vm5, %v261_v60 }
 0x3bc   :  { %4170 = vmatprep.mubr.msk.f32.mxu1 %vm5115_vm0, %v6925_v6  ;;  %4225 = vmatprep.mubr.msk.f32.mxu0 %vm5115_vm0, %v6925_v6 }
 0x3bf   :  { %4171 = vmatmul.mubr.msk.f32.gmra.mrb[32].mxu1 %vm548_vm5, %v264_v0  ;;  %4226 = vmatmul.mubr.msk.f32.gmra.mrb[28].mxu0 %vm548_vm5, %v262_v62 }
 0x3c0   :  { %4173 = vmatprep.mubr.msk.f32.mxu1 %vm5115_vm0, %v6925_v6  ;;  %4228 = vmatprep.mubr.msk.f32.mxu0 %vm5115_vm0, %v6925_v6 }
 0x3c3   :  { %4174 = vmatmul.mubr.msk.f32.gmra.mrb[34].mxu1 %vm548_vm5, %v265_v1  ;;  %4229 = vmatmul.mubr.msk.f32.gmra.mrb[30].mxu0 %vm548_vm5, %v263_v63 }
 0x3c4   :  { %4176 = vmatprep.mubr.msk.f32.mxu1 %vm5115_vm0, %v6925_v6  ;;  %4231 = vmatprep.mubr.msk.f32.mxu0 %vm5115_vm0, %v6925_v6 }
 0x3c7   :  { %4177 = vmatmul.mubr.msk.f32.gmra.mrb[36].mxu1 %vm548_vm5, %v266_v2  ;;  %4232 = vmatmul.mubr.msk.f32.gmra.mrb[32].mxu0 %vm548_vm5, %v264_v0 }
 0x3c8   :  { %4179 = vmatprep.mubr.msk.f32.mxu1 %vm5115_vm0, %v6925_v6  ;;  %4234 = vmatprep.mubr.msk.f32.mxu0 %vm5115_vm0, %v6925_v6 }
 0x3cb   :  { %4180 = vmatmul.mubr.msk.f32.gmra.mrb[38].mxu1 %vm548_vm5, %v267_v4  ;;  %4235 = vmatmul.mubr.msk.f32.gmra.mrb[34].mxu0 %vm548_vm5, %v265_v1 }
 0x3cc   :  { %4182 = vmatprep.mubr.msk.f32.mxu1 %vm5115_vm0, %v6925_v6  ;;  %4237 = vmatprep.mubr.msk.f32.mxu0 %vm5115_vm0, %v6925_v6 }
 0x3cf   :  { %4183 = vmatmul.mubr.msk.f32.gmra.mrb[40].mxu1 %vm548_vm5, %v268_v5  ;;  %4238 = vmatmul.mubr.msk.f32.gmra.mrb[36].mxu0 %vm548_vm5, %v266_v2  ;;  %v5671_v2 = vld [vmem:[%s6947_s2 + $0x50] sm:$0xff] }
 0x3d0   :  { %4185 = vmatprep.mubr.msk.f32.mxu1 %vm5115_vm0, %v6925_v6  ;;  %4240 = vmatprep.mubr.msk.f32.mxu0 %vm5115_vm0, %v6925_v6 }
 0x3d3   :  { %4186 = vmatmul.mubr.msk.f32.gmra.mrb[42].mxu1 %vm548_vm5, %v269_v7  ;;  %4241 = vmatmul.mubr.msk.f32.gmra.mrb[38].mxu0 %vm548_vm5, %v267_v4  ;;  %v5676_v4 = vld [vmem:[%s6947_s2 + $0x58] sm:$0xff] }
 0x3d4   :  { %1088 = vmatprep.mubr.f32.mxu1 %v6925_v6  ;;  %4243 = vmatprep.mubr.msk.f32.mxu0 %vm5115_vm0, %v6925_v6 }
 0x3d7   :  { %4244 = vmatmul.mubr.msk.f32.gmra.mrb[40].mxu0 %vm548_vm5, %v268_v5 }
 0x3d8   :  { %4246 = vmatprep.mubr.msk.f32.mxu0 %vm5115_vm0, %v6925_v6 }
 0x3db   :  { %4247 = vmatmul.mubr.msk.f32.gmra.mrb[42].mxu0 %vm548_vm5, %v269_v7 }
 0x466   :  { %v669_v8 = vpop.f32.mrb[10].mxu1 }
 0x467   :  { %v4139_v9 = vpop.f32.mrb[11].mxu1  ;;  %v753_v13 = vmul.f32 %v669_v8, %v5591_v10 }
 0x46a   :  { %v674_v12 = vpop.f32.mrb[12].mxu1 }
 0x46b   :  { %v754_v14 = vmul.f32 %v674_v12, %v5596_v11  ;;  %v4142_v15 = vpop.f32.mrb[13].mxu1 }
 0x46c   :  { %v5686_v15 = vld [vmem:[%s6947_s2 + $0x60] sm:$0xff] }
 0x46d   :  { %v4600_v19 = vpack.c.bf16 %v754_v14, %v753_v13 }
 0x46e   :  { %v679_v20 = vpop.f32.mrb[14].mxu1 }
 0x46f   :  { %v4145_v21 = vpop.f32.mrb[15].mxu1  ;;  %4602 = vmatpush1.bf16.xpose.msk.msra.mxu1 %vm5602_vm6, %v4600_v19  ;;  %v755_v27 = vmul.f32 %v679_v20, %v5611_v22  ;;  %v5691_v19 = vld [vmem:[%s6947_s2 + $0x68] sm:$0xff] }
 0x470   :  { %4603 = vmatprep.subr.bf16.mxu1 %v5114_v3 }
 0x472   :  { %v684_v26 = vpop.f32.mrb[16].mxu1 }
 0x473   :  { %v756_v29 = vmul.f32 %v684_v26, %v5616_v25  ;;  %v4148_v31 = vpop.f32.mrb[17].mxu1 }
 0x475   :  { %v4604_v32 = vpack.c.bf16 %v756_v29, %v755_v27 }
 0x476   :  { %v689_v33 = vpop.f32.mrb[18].mxu1 }
 0x477   :  { %v4151_v34 = vpop.f32.mrb[19].mxu1  ;;  %4606 = vmatpush1.bf16.xpose.msk.msra.mxu1 %vm5602_vm6, %v4604_v32  ;;  %v757_v38 = vmul.f32 %v689_v33, %v5626_v35  ;;  %v5701_v33 = vld [vmem:[%s6947_s2 + $0x70] sm:$0xff] }
 0x478   :  { %4607 = vmatprep.subr.bf16.mxu1 %v5114_v3  ;;  %v5706_v34 = vld [vmem:[%s6947_s2 + $0x78] sm:$0xff] }
 0x47a   :  { %v694_v37 = vpop.f32.mrb[20].mxu1 }
 0x47b   :  { %v758_v40 = vmul.f32 %v694_v37, %v5631_v36  ;;  %v4154_v41 = vpop.f32.mrb[21].mxu1 }
 0x47d   :  { %v4608_v42 = vpack.c.bf16 %v758_v40, %v757_v38 }
 0x47e   :  { %v699_v43 = vpop.f32.mrb[22].mxu1 }
 0x47f   :  { %v4157_v44 = vpop.f32.mrb[23].mxu1  ;;  %4610 = vmatpush1.bf16.xpose.msk.msra.mxu1 %vm5602_vm6, %v4608_v42  ;;  %v759_v49 = vmul.f32 %v699_v43, %v5641_v45 }
 0x480   :  { %4611 = vmatprep.subr.bf16.mxu1 %v5114_v3 }
 0x482   :  { %v704_v48 = vpop.f32.mrb[24].mxu1 }
 0x483   :  { %v760_v50 = vmul.f32 %v704_v48, %v5646_v47  ;;  %v4160_v51 = vpop.f32.mrb[25].mxu1  ;;  %v5716_v48 = vld [vmem:[%s6947_s2 + $0x80] sm:$0xff] }
 0x484   :  { %v294_v51 = vld [vmem:[%s6951_s3 + $0x38] sm:$0xff] }
 0x485   :  { %v4612_v52 = vpack.c.bf16 %v760_v50, %v759_v49 }
 0x486   :  { %v709_v53 = vpop.f32.mrb[26].mxu1 }
 0x487   :  { %v4163_v55 = vpop.f32.mrb[27].mxu1  ;;  %4614 = vmatpush1.bf16.xpose.msk.msra.mxu1 %vm5602_vm6, %v4612_v52  ;;  %v761_v59 = vmul.f32 %v709_v53, %v5656_v56 }
 0x488   :  { %4615 = vmatprep.subr.bf16.mxu1 %v5114_v3  ;;  %v291_v55 = vld [vmem:[%s6951_s3 + $0x20] sm:$0xff] }
 0x48a   :  { %v714_v58 = vpop.f32.mrb[28].mxu1 }
 0x48b   :  { %v762_v60 = vmul.f32 %v714_v58, %v5661_v57  ;;  %v4166_v62 = vpop.f32.mrb[29].mxu1  ;;  %v293_v58 = vld [vmem:[%s6951_s3 + $0x30] sm:$0xff] }
 0x48c   :  { %v5774_v62 = vpack.c.bf16 %v293_v58, %v291_v55 }
 0x48d   :  { %v4616_v63 = vpack.c.bf16 %v762_v60, %v761_v59  ;;  %v296_v59 = vld [vmem:[%s6951_s3 + $0x48] sm:$0xff]  ;;  %v298_v60 = vld [vmem:[%s6951_s3 + $0x58] sm:$0xff] }
 0x48e   :  { %v719_v0 = vpop.f32.mrb[30].mxu1 }
 0x48f   :  { %v4169_v1 = vpop.f32.mrb[31].mxu1  ;;  %4618 = vmatpush1.bf16.xpose.msk.msra.mxu1 %vm5602_vm6, %v4616_v63  ;;  %v763_v7 = vmul.f32 %v719_v0, %v5671_v2  ;;  %v5777_v63 = vpack.c.bf16 %v298_v60, %v296_v59  ;;  %v295_v0 = vld [vmem:[%s6951_s3 + $0x40] sm:$0xff] }
 0x490   :  { %4619 = vmatprep.subr.bf16.mxu1 %v5114_v3  ;;  %v297_v1 = vld [vmem:[%s6951_s3 + $0x50] sm:$0xff] }
 0x492   :  { %v724_v5 = vpop.f32.mrb[32].mxu1 }
 0x493   :  { %v764_v8 = vmul.f32 %v724_v5, %v5676_v4  ;;  %v4172_v9 = vpop.f32.mrb[33].mxu1  ;;  %v300_v5 = vld [vmem:[%s6951_s3 + $0x68] sm:$0xff] }
 0x495   :  { %v4620_v12 = vpack.c.bf16 %v764_v8, %v763_v7  ;;  %v302_v7 = vld [vmem:[%s6951_s3 + $0x78] sm:$0xff]  ;;  %v5792_v8 = vpack.c.bf16 %v297_v1, %v295_v0  ;;  %v958_v1 = vld [vmem:[%s6952_s1 + $0x28] sm:$0xff] }
 0x496   :  { %v729_v13 = vpop.f32.mrb[34].mxu1  ;;  %v5795_v9 = vpack.c.bf16 %v302_v7, %v300_v5  ;;  %v957_v5 = vld [vmem:[%s6952_s1 + $0x20] sm:$0xff] }
 0x497   :  { %v4175_v14 = vpop.f32.mrb[35].mxu1  ;;  %4622 = vmatpush1.bf16.xpose.msk.msra.mxu1 %vm5602_vm6, %v4620_v12  ;;  %v765_v21 = vmul.f32 %v729_v13, %v5686_v15  ;;  %v299_v12 = vld [vmem:[%s6951_s3 + $0x60] sm:$0xff]  ;;  %v301_v13 = vld [vmem:[%s6951_s3 + $0x70] sm:$0xff] }
 0x498   :  { %4623 = vmatprep.subr.bf16.mxu1 %v5114_v3  ;;  %v304_v14 = vld [vmem:[%s6951_s3 + $0x88] sm:$0xff] }
 0x49a   :  { %v734_v20 = vpop.f32.mrb[36].mxu1 }
 0x49b   :  { %v766_v26 = vmul.f32 %v734_v20, %v5691_v19  ;;  %v4178_v27 = vpop.f32.mrb[37].mxu1  ;;  %v306_v20 = vld [vmem:[%s6951_s3 + $0x98] sm:$0xff] }
 0x49c   :  { %v303_v27 = vld [vmem:[%s6951_s3 + $0x80] sm:$0xff] }
 0x49d   :  { %v4624_v29 = vpack.c.bf16 %v766_v26, %v765_v21  ;;  %v5810_v21 = vpack.c.bf16 %v301_v13, %v299_v12  ;;  %v5813_v26 = vpack.c.bf16 %v306_v20, %v304_v14 }
 0x49e   :  { %v739_v31 = vpop.f32.mrb[38].mxu1 }
 0x49f   :  { %v4181_v32 = vpop.f32.mrb[39].mxu1  ;;  %4626 = vmatpush1.bf16.xpose.msk.msra.mxu1 %vm5602_vm6, %v4624_v29  ;;  %v767_v38 = vmul.f32 %v739_v31, %v5701_v33  ;;  %v305_v29 = vld [vmem:[%s6951_s3 + $0x90] sm:$0xff]  ;;  %v308_v31 = vld [vmem:[%s6951_s3 + $0xa8] sm:$0xff] }
 0x4a0   :  { %4627 = vmatprep.subr.bf16.mxu1 %v5114_v3  ;;  %v310_v32 = vld [vmem:[%s6951_s3 + $0xb8] sm:$0xff] }
 0x4a2   :  { %v744_v37 = vpop.f32.mrb[40].mxu1 }
 0x4a3   :  { %v768_v40 = vmul.f32 %v744_v37, %v5706_v34  ;;  %v4184_v41 = vpop.f32.mrb[41].mxu1  ;;  %v5828_v37 = vpack.c.bf16 %v305_v29, %v303_v27  ;;  %v960_v29 = vld [vmem:[%s6952_s1 + $0x38] sm:$0xff] }
 0x4a4   :  { %v309_v41 = vld [vmem:[%s6951_s3 + $0xb0] sm:$0xff] }
 0x4a5   :  { %v4628_v42 = vpack.c.bf16 %v768_v40, %v767_v38  ;;  %v5831_v38 = vpack.c.bf16 %v310_v32, %v308_v31  ;;  %v307_v40 = vld [vmem:[%s6951_s3 + $0xa0] sm:$0xff]  ;;  %v959_v31 = vld [vmem:[%s6952_s1 + $0x30] sm:$0xff] }
 0x4a6   :  { %v749_v43 = vpop.f32.mrb[42].mxu1 }
 0x4a7   :  { %4630 = vmatpush1.bf16.xpose.msk.msra.mxu1 %vm5602_vm6, %v4628_v42  ;;  %v4187_v44 = vpop.f32.mrb[43].mxu1  ;;  %v769_v49 = vmul.f32 %v749_v43, %v5716_v48  ;;  %v5840_v42 = vpack.c.bf16 %v309_v41, %v307_v40  ;;  %v954_v43 = vld [vmem:[%s6952_s1 + $0x8] sm:$0xff] }
 0x4a8   :  { %1056 = vmatprep.subr.mxu1 %v6925_v6  ;;  %v953_v44 = vld [vmem:[%s6952_s1] sm:$0xff] }
 0x4af   :  { %3721 = vmatpush1.xpose.msk.msra.mxu1 %vm323_vm2, %v769_v49 }
 0x4b0   :  { %4663 = vmatprep.subr.bf16.mxu1 %v5114_v3 }
 0x4b2   :  { %3722 = vmatmul.mubr.msk.f32.vlgmr.msra.gmra.mrb[44].mxu1 %vm323_vm2, %v5409_v16  ;;  %v288_v16 = vld [vmem:[%s6951_s3 + $0x8] sm:$0xff] }
 0x4b3   :  { %1094 = vmatprep.mubr.f32.mxu1 %v6925_v6 }
 0x4b6   :  { %3723 = vmatmul.mubr.msk.f32.gmra.mrb[46].mxu1 %vm323_vm2, %v5411_v17  ;;  %v290_v17 = vld [vmem:[%s6951_s3 + $0x18] sm:$0xff] }
 0x4b7   :  { %1100 = vmatprep.mubr.f32.mxu1 %v6925_v6  ;;  %v5745_v50 = vpack.c.bf16 %v290_v17, %v288_v16 }
 0x4b9   :  { %4632 = vmatprep.subr.bf16.mxu0 %v5745_v50 }
 0x4ba   :  { %3724 = vmatmul.mubr.msk.f32.gmra.mrb[48].mxu1 %vm323_vm2, %v5416_v23  ;;  %v287_v23 = vld [vmem:[%s6951_s3] sm:$0xff] }
 0x4bb   :  { %1106 = vmatprep.mubr.f32.mxu1 %v6925_v6 }
 0x4be   :  { %3725 = vmatmul.mubr.msk.f32.gmra.mrb[50].mxu1 %vm323_vm2, %v5418_v24  ;;  %v289_v24 = vld [vmem:[%s6951_s3 + $0x10] sm:$0xff] }
 0x4bf   :  { %1112 = vmatprep.mubr.f32.mxu1 %v6925_v6  ;;  %v5756_v52 = vpack.c.bf16 %v289_v24, %v287_v23  ;;  %v956_v24 = vld [vmem:[%s6952_s1 + $0x18] sm:$0xff] }
 0x4c1   :  { %4634 = vmatpush1.bf16.msra.mxu0 %v5756_v52 }
 0x4c2   :  { %3726 = vmatmul.mubr.msk.f32.gmra.mrb[52].mxu1 %vm323_vm2, %v5423_v28  ;;  %v292_v28 = vld [vmem:[%s6951_s3 + $0x28] sm:$0xff] }
 0x4c3   :  { %v5758_v53 = vpack.c.bf16 %v294_v51, %v292_v28  ;;  %v955_v28 = vld [vmem:[%s6952_s1 + $0x10] sm:$0xff] }
 0x4c5   :  { %4636 = vmatprep.subr.bf16.mxu0 %v5758_v53 }
 0x4c6   :  { %4638 = vmatpush1.bf16.msra.mxu0 %v5774_v62 }
 0x4c7   :  { %4640 = vmatprep.subr.bf16.mxu0 %v5777_v63 }
 0x4ca   :  { %4642 = vmatpush1.bf16.msra.mxu0 %v5792_v8 }
 0x4cb   :  { %4644 = vmatprep.subr.bf16.mxu0 %v5795_v9 }
 0x4ce   :  { %4646 = vmatpush1.bf16.msra.mxu0 %v5810_v21 }
 0x4cf   :  { %4648 = vmatprep.subr.bf16.mxu0 %v5813_v26 }
 0x4d2   :  { %4650 = vmatpush1.bf16.msra.mxu0 %v5828_v37 }
 0x4d3   :  { %4652 = vmatprep.subr.bf16.mxu0 %v5831_v38 }
 0x4d6   :  { %4654 = vmatpush1.bf16.msra.mxu0 %v5840_v42 }
 0x585   :  { %v1090_v49 = vpop.f32.mrb[44].mxu1 }
 0x586   :  { %v1092_v16 = vpop.f32.mrb[45].mxu1  ;;  %v5852_v23 = vadd.f32 %v1090_v49, %v953_v44  ;;  %v961_v49 = vld [vmem:[%s6952_s1 + $0x40] sm:$0x3] }
 0x587   :  { %v5850_v17 = vadd.f32 %v1092_v16, %v954_v43 }
 0x589   :  { %v1096_v51 = vpop.f32.mrb[46].mxu1  ;;  %v1120_v55 = vsel %vm1119_vm7, %v5850_v17, -inf }
 0x58a   :  { %v1098_v58 = vpop.f32.mrb[47].mxu1  ;;  %v1121_v59 = vmax.f32 %v5852_v23, %v1120_v55  ;;  %v5865_v0 = vadd.f32 %v1096_v51, %v955_v28 }
 0x58b   :  { %v5863_v60 = vadd.f32 %v1098_v58, %v956_v24  ;;  %v962_v24 = vld [vmem:[%s6952_s1 + $0x48] sm:$0x3] }
 0x58c   :  { %1122 = vmax.xlane.f32.xlu1 %v1121_v59 }
 0x58d   :  { %v1102_v7 = vpop.f32.mrb[48].mxu1  ;;  %v1124_v12 = vsel %vm1119_vm7, %v5863_v60, -inf }
 0x58e   :  { %v1104_v13 = vpop.f32.mrb[49].mxu1  ;;  %v1125_v14 = vmax.f32 %v5865_v0, %v1124_v12  ;;  %v5878_v27 = vadd.f32 %v1102_v7, %v957_v5 }
 0x58f   :  { %v5876_v20 = vadd.f32 %v1104_v13, %v958_v1  ;;  %v312_v13 = vld [vmem:[%s6951_s3 + $0xc8] sm:$0xff] }
 0x590   :  { %1126 = vmax.xlane.f32.xlu0 %v1125_v14  ;;  %v314_v14 = vld [vmem:[%s6951_s3 + $0xd8] sm:$0xff] }
 0x591   :  { %v1108_v32 = vpop.f32.mrb[50].mxu1  ;;  %v1128_v40 = vsel %vm1119_vm7, %v5876_v20, -inf }
 0x592   :  { %v1110_v41 = vpop.f32.mrb[51].mxu1  ;;  %v1129_v43 = vmax.f32 %v5878_v27, %v1128_v40  ;;  %v5894_v16 = vadd.f32 %v1108_v32, %v959_v31  ;;  %v311_v31 = vld [vmem:[%s6951_s3 + $0xc0] sm:$0xff]  ;;  %v313_v32 = vld [vmem:[%s6951_s3 + $0xd0] sm:$0xff] }
 0x593   :  { %v5889_v44 = vadd.f32 %v1110_v41, %v960_v29  ;;  %v5916_v29 = vpack.c.bf16 %v314_v14, %v312_v13  ;;  %v5924_v40 = vpack.c.bf16 %v313_v32, %v311_v31  ;;  %v316_v41 = vld [vmem:[%s6951_s3 + $0xe8] sm:$0xff] }
 0x594   :  { %1130 = vmax.xlane.f32.xlu0 %v1129_v43  ;;  %v318_v43 = vld [vmem:[%s6951_s3 + $0xf8] sm:$0xff] }
 0x595   :  { %v1114_v28 = vpop.f32.mrb[52].mxu1  ;;  %v1132_v51 = vsel %vm1119_vm7, %v5889_v44, -inf  ;;  %4656 = vmatprep.subr.bf16.mxu0 %v5916_v29 }
 0x596   :  { %v5901_v55 = vadd.f32 %v1114_v28, %v961_v49  ;;  %v1116_v58 = vpop.f32.mrb[53].mxu1  ;;  %v1133_v59 = vmax.f32 %v5894_v16, %v1132_v51  ;;  %4658 = vmatpush1.bf16.msra.mxu0 %v5924_v40  ;;  %v5934_v49 = vpack.c.bf16 %v318_v43, %v316_v41  ;;  %v317_v28 = vld [vmem:[%s6951_s3 + $0xf0] sm:$0xff] }
 0x597   :  { %v5904_v1 = vadd.f32 %v1116_v58, %v962_v24  ;;  %v315_v24 = vld [vmem:[%s6951_s3 + $0xe0] sm:$0xff]  ;;  %v320_v58 = vld [vmem:[%s6951_s3 + $0x108] sm:$0xff] }
 0x598   :  { %1134 = vmax.xlane.f32.xlu1 %v1133_v59  ;;  %v1136_v5 = vsel %vm600_vm4, %v5901_v55, -inf  ;;  %v5942_v51 = vpack.c.bf16 %v317_v28, %v315_v24  ;;  %4660 = vmatprep.subr.bf16.mxu0 %v5934_v49  ;;  %v319_v59 = vld [vmem:[%s6951_s3 + $0x100] sm:$0xff] }
 0x599   :  { %v1138_v7 = vsel %vm1137_vm8, %v5904_v1, -inf }
 0x59a   :  { %v1139_v12 = vmax.f32 %v1136_v5, %v1138_v7  ;;  %4662 = vmatpush1.bf16.msra.mxu0 %v5942_v51  ;;  %v852_v5 = vpop.f32.mrb[10].mxu0 }
 0x59b   :  { %1219 = vmatprep.subr.mxu0 %v320_v58  ;;  %v936_v7 = vmul.f32 %v852_v5, %v5591_v10 }
 0x59c   :  { %1140 = vmax.xlane.f32.xlu0 %v1139_v12  ;;  %v4200_v12 = vpop.f32.mrb[11].mxu0 }
 0x59d   :  { %v857_v13 = vpop.f32.mrb[12].mxu0 }
 0x59e   :  { %1220 = vmatpush1.msra.mxu0 %v319_v59  ;;  %v937_v14 = vmul.f32 %v857_v13, %v5596_v11  ;;  %v4203_v31 = vpop.f32.mrb[13].mxu0 }
 0x59f   :  { %4687 = vmatprep.subr.bf16.mxu0 %v5114_v3  ;;  %v862_v32 = vpop.f32.mrb[14].mxu0 }
 0x5a0   :  { %v4664_v41 = vpack.c.bf16 %v937_v14, %v936_v7  ;;  %v938_v43 = vmul.f32 %v862_v32, %v5611_v22  ;;  %v4206_v24 = vpop.f32.mrb[15].mxu0 }
 0x5a1   :  { %v867_v28 = vpop.f32.mrb[16].mxu0 }
 0x5a2   :  { %4665 = vmatpush1.bf16.msra.mxu1 %v4664_v41  ;;  %v939_v58 = vmul.f32 %v867_v28, %v5616_v25  ;;  %v4209_v59 = vpop.f32.mrb[17].mxu0 }
 0x5a3   :  { %4666 = vmatprep.subr.bf16.mxu1 %v5114_v3  ;;  %v872_v6 = vpop.f32.mrb[18].mxu0 }
 0x5a4   :  { %v4667_v18 = vpack.c.bf16 %v939_v58, %v938_v43  ;;  %v940_v10 = vmul.f32 %v872_v6, %v5626_v35  ;;  %v4212_v5 = vpop.f32.mrb[19].mxu0 }
 0x5a5   :  { %v877_v12 = vpop.f32.mrb[20].mxu0 }
 0x5a6   :  { %4668 = vmatpush1.bf16.msra.mxu1 %v4667_v18  ;;  %v941_v11 = vmul.f32 %v877_v12, %v5631_v36  ;;  %v4215_v7 = vpop.f32.mrb[21].mxu0 }
 0x5a7   :  { %4669 = vmatprep.subr.bf16.mxu1 %v5114_v3  ;;  %v882_v22 = vpop.f32.mrb[22].mxu0 }
 0x5a8   :  { %v4670_v13 = vpack.c.bf16 %v941_v11, %v940_v10  ;;  %v942_v14 = vmul.f32 %v882_v22, %v5641_v45  ;;  %v4218_v25 = vpop.f32.mrb[23].mxu0 }
 0x5a9   :  { %v887_v31 = vpop.f32.mrb[24].mxu0 }
 0x5aa   :  { %4671 = vmatpush1.bf16.msra.mxu1 %v4670_v13  ;;  %v943_v32 = vmul.f32 %v887_v31, %v5646_v47  ;;  %v4221_v41 = vpop.f32.mrb[25].mxu0 }
 0x5ab   :  { %4672 = vmatprep.subr.bf16.mxu1 %v5114_v3  ;;  %v892_v6 = vpop.f32.mrb[26].mxu0 }
 0x5ac   :  { %v4673_v35 = vpack.c.bf16 %v943_v32, %v942_v14  ;;  %v944_v18 = vmul.f32 %v892_v6, %v5656_v56  ;;  %v4224_v36 = vpop.f32.mrb[27].mxu0 }
 0x5ad   :  { %v897_v43 = vpop.f32.mrb[28].mxu0  ;;  %v6953_v36 = vmov 0.0  }
 0x5ae   :  { %4674 = vmatpush1.bf16.msra.mxu1 %v4673_v35  ;;  %v945_v24 = vmul.f32 %v897_v43, %v5661_v57  ;;  %v4227_v28 = vpop.f32.mrb[29].mxu0 }
 0x5af   :  { %4675 = vmatprep.subr.bf16.mxu1 %v5114_v3  ;;  %v902_v45 = vpop.f32.mrb[30].mxu0 }
 0x5b0   :  { %v4676_v58 = vpack.c.bf16 %v945_v24, %v944_v18  ;;  %v946_v59 = vmul.f32 %v902_v45, %v5671_v2  ;;  %v4230_v47 = vpop.f32.mrb[31].mxu0 }
 0x5b1   :  { %v907_v10 = vpop.f32.mrb[32].mxu0 }
 0x5b2   :  { %4677 = vmatpush1.bf16.msra.mxu1 %v4676_v58  ;;  %v947_v5 = vmul.f32 %v907_v10, %v5676_v4  ;;  %v4233_v12 = vpop.f32.mrb[33].mxu0 }
 0x5b3   :  { %4678 = vmatprep.subr.bf16.mxu1 %v5114_v3  ;;  %v912_v56 = vpop.f32.mrb[34].mxu0 }
 0x5b4   :  { %v4679_v11 = vpack.c.bf16 %v947_v5, %v946_v59  ;;  %v948_v7 = vmul.f32 %v912_v56, %v5686_v15  ;;  %v4236_v57 = vpop.f32.mrb[35].mxu0 }
 0x5b5   :  { %v917_v22 = vpop.f32.mrb[36].mxu0 }
 0x5b6   :  { %4680 = vmatpush1.bf16.msra.mxu1 %v4679_v11  ;;  %v949_v13 = vmul.f32 %v917_v22, %v5691_v19  ;;  %v4239_v14 = vpop.f32.mrb[37].mxu0 }
 0x5b7   :  { %4681 = vmatprep.subr.bf16.mxu1 %v5114_v3  ;;  %v922_v2 = vpop.f32.mrb[38].mxu0 }
 0x5b8   :  { %v4682_v25 = vpack.c.bf16 %v949_v13, %v948_v7  ;;  %v950_v31 = vmul.f32 %v922_v2, %v5701_v33  ;;  %v4242_v4 = vpop.f32.mrb[39].mxu0 }
 0x5b9   :  { %v927_v32 = vpop.f32.mrb[40].mxu0 }
 0x5ba   :  { %4683 = vmatpush1.bf16.msra.mxu1 %v4682_v25  ;;  %v951_v41 = vmul.f32 %v927_v32, %v5706_v34  ;;  %v4245_v6 = vpop.f32.mrb[41].mxu0 }
 0x5bb   :  { %4684 = vmatprep.subr.bf16.mxu1 %v5114_v3  ;;  %v932_v15 = vpop.f32.mrb[42].mxu0  ;;  %v1408_v6 = vld [vmem:[%s6901_s14 + $0x8] sm:$0xff] }
 0x5bc   :  { %v4685_v35 = vpack.c.bf16 %v951_v41, %v950_v31  ;;  %v4248_v18 = vpop.f32.mrb[43].mxu0  ;;  %v952_v19 = vmul.f32 %v932_v15, %v5716_v48  ;;  %v1407_v41 = vld [vmem:[%s6901_s14] sm:$0xff]  ;;  %v1409_v15 = vld [vmem:[%s6901_s14 + $0x10] sm:$0xff] }
 0x5bd   :  { %v1410_v18 = vld [vmem:[%s6901_s14 + $0x18] sm:$0xff] }
 0x5be   :  { %4686 = vmatpush1.bf16.msra.mxu1 %v4685_v35  ;;  %v4688_v35 = vpack.c.bf16 %v1408_v6, %v1407_v41 }
 0x5bf   :  { %1349 = vmatprep.subr.mxu1 %v6953_v36 }
 0x5c2   :  { %1350 = vmatpush1.msra.mxu1 %v952_v19  ;;  %v4691_v19 = vpack.c.bf16 %v1410_v18, %v1409_v15 }
 0x5c3   :  { %4699 = vmatprep.subr.bf16.mxu1 %v5114_v3 }
 0x619   :  { %v1123_v33 = vpop.xlane.xlu1 %1122 }
 0x61a   :  { %v1142_v43 = vsub.f32 %v5852_v23, %v1123_v33  ;;  %v1143_v24 = vsub.f32 %v5850_v17, %v1123_v33 }
 0x61c   :  { %v1152_v34 = vmul.f32 1.442695, %v1142_v43  ;;  %v1154_v28 = vmul.f32 1.442695, %v1143_v24 }
 0x61d   :  { %v1127_v45 = vpop.xlane.xlu0 %1126 }
 0x61e   :  { %4912 = vpow2.f32 %v1152_v34  ;;  %v1144_v58 = vsub.f32 %v5865_v0, %v1127_v45  ;;  %v1145_v59 = vsub.f32 %v5863_v60, %v1127_v45 }
 0x61f   :  { %4914 = vpow2.f32 %v1154_v28 }
 0x620   :  { %v1156_v48 = vmul.f32 1.442695, %v1144_v58  ;;  %v1158_v47 = vmul.f32 1.442695, %v1145_v59 }
 0x621   :  { %v1131_v10 = vpop.xlane.xlu0 %1130 }
 0x622   :  { %4916 = vpow2.f32 %v1156_v48  ;;  %v1146_v5 = vsub.f32 %v5878_v27, %v1131_v10  ;;  %v1147_v12 = vsub.f32 %v5876_v20, %v1131_v10 }
 0x623   :  { %4918 = vpow2.f32 %v1158_v47 }
 0x624   :  { %v1160_v23 = vmul.f32 1.442695, %v1146_v5  ;;  %v1162_v17 = vmul.f32 1.442695, %v1147_v12 }
 0x625   :  { %v1135_v56 = vpop.xlane.xlu1 %1134 }
 0x626   :  { %4920 = vpow2.f32 %v1160_v23  ;;  %v1148_v11 = vsub.f32 %v5894_v16, %v1135_v56  ;;  %v1149_v0 = vsub.f32 %v5889_v44, %v1135_v56 }
 0x627   :  { %4922 = vpow2.f32 %v1162_v17 }
 0x628   :  { %v4913_v60 = vpop.eup %4912  ;;  %v1164_v7 = vmul.f32 1.442695, %v1148_v11  ;;  %v1166_v57 = vmul.f32 1.442695, %v1149_v0 }
 0x629   :  { %v4915_v22 = vpop.eup %4914  ;;  %v1141_v13 = vpop.xlane.xlu0 %1140 }
 0x62a   :  { %4924 = vpow2.f32 %v1164_v7  ;;  %v1150_v27 = vsub.f32 %v5901_v55, %v1141_v13  ;;  %v1151_v20 = vsub.f32 %v5904_v1, %v1141_v13  ;;  %3727 = vmatprep.mubr.msk.f32.mxu0 %vm1119_vm7, %v4915_v22 }
 0x62b   :  { %4926 = vpow2.f32 %v1166_v57  ;;  %1252 = vmatmul.mubr.f32.vlgmr.msra.gmra.mrb[44].mxu0 %v4913_v60 }
 0x62c   :  { %v4917_v14 = vpop.eup %4916  ;;  %v1168_v2 = vmul.f32 1.442695, %v1150_v27  ;;  %v1170_v16 = vmul.f32 1.442695, %v1151_v20  ;;  %4689 = vmatpush3.bf16.msra.mxu0 %v4688_v35 }
 0x62d   :  { %v4919_v25 = vpop.eup %4918  ;;  %4690 = vmatprep.subr.bf16.mxu0 %v5114_v3 }
 0x62e   :  { %4928 = vpow2.f32 %v1168_v2  ;;  %3728 = vmatprep.mubr.msk.f32.mxu0 %vm1119_vm7, %v4919_v25 }
 0x62f   :  { %4930 = vpow2.f32 %v1170_v16  ;;  %1258 = vmatmul.mubr.f32.gmra.mrb[46].mxu0 %v4917_v14 }
 0x630   :  { %v4921_v44 = vpop.eup %4920  ;;  %4692 = vmatpush3.bf16.msra.mxu0 %v4691_v19 }
 0x631   :  { %v4923_v31 = vpop.eup %4922  ;;  %4693 = vmatprep.subr.bf16.mxu0 %v5114_v3 }
 0x632   :  { %3729 = vmatprep.mubr.msk.f32.mxu0 %vm1119_vm7, %v4923_v31 }
 0x633   :  { %1264 = vmatmul.mubr.f32.gmra.mrb[48].mxu0 %v4921_v44 }
 0x634   :  { %v4925_v55 = vpop.eup %4924 }
 0x635   :  { %v4927_v1 = vpop.eup %4926 }
 0x636   :  { %3730 = vmatprep.mubr.msk.f32.mxu0 %vm1119_vm7, %v4927_v1 }
 0x637   :  { %1270 = vmatmul.mubr.f32.gmra.mrb[50].mxu0 %v4925_v55 }
 0x638   :  { %v4929_v4 = vpop.eup %4928 }
 0x639   :  { %v4931_v32 = vpop.eup %4930 }
 0x63a   :  { %3731 = vmatprep.mubr.msk.f32.mxu0 %vm1119_vm7, %v4931_v32 }
 0x63b   :  { %1276 = vmatmul.mubr.f32.gmra.mrb[52].mxu0 %v4929_v4 }
 0x63c   :  { %4257 = vmatprep.mubr.msk.f32.mxu0 %vm5115_vm0, %v6953_v36 }
 0x6fe   :  { %v1253_v33 = vpop.f32.mrb[44].mxu0 }
 0x6ff   :  { %4932 = vrcp.f32 %v1253_v33  ;;  %v1255_v43 = vpop.f32.mrb[45].mxu0  ;;  %v3742_v33 = vld [vmem:[%s6902_s15] ss:$0 sm:$0xff] }
 0x700   :  { %4934 = vrcp.f32 %v1255_v43 }
 0x702   :  { %v1259_v24 = vpop.f32.mrb[46].mxu0 }
 0x703   :  { %4936 = vrcp.f32 %v1259_v24  ;;  %v1261_v34 = vpop.f32.mrb[47].mxu0 }
 0x704   :  { %4938 = vrcp.f32 %v1261_v34 }
 0x706   :  { %v1265_v28 = vpop.f32.mrb[48].mxu0 }
 0x707   :  { %4940 = vrcp.f32 %v1265_v28  ;;  %v1267_v45 = vpop.f32.mrb[49].mxu0 }
 0x708   :  { %4942 = vrcp.f32 %v1267_v45 }
 0x709   :  { %v4933_v58 = vpop.eup %4932 }
 0x70a   :  { %v4935_v59 = vpop.eup %4934  ;;  %v1271_v48 = vpop.f32.mrb[50].mxu0  ;;  %v1292_v5 = vmul.f32 %v4933_v58, %v4913_v60 }
 0x70b   :  { %4944 = vrcp.f32 %v1271_v48  ;;  %v1273_v47 = vpop.f32.mrb[51].mxu0  ;;  %v1293_v10 = vmul.f32 %v4935_v59, %v4915_v22 }
 0x70c   :  { %4946 = vrcp.f32 %v1273_v47 }
 0x70d   :  { %v4937_v12 = vpop.eup %4936  ;;  %3732 = vmatprep.mubr.msk.f32.mxu1 %vm1119_vm7, %v1293_v10 }
 0x70e   :  { %v4939_v23 = vpop.eup %4938  ;;  %v1277_v17 = vpop.f32.mrb[52].mxu0  ;;  %1382 = vmatmul.mubr.f32.vlgmr.msra.gmra.mrb[54].mxu1 %v1292_v5  ;;  %v1294_v0 = vmul.f32 %v4937_v12, %v4917_v14 }
 0x70f   :  { %4948 = vrcp.f32 %v1277_v17  ;;  %v1279_v56 = vpop.f32.mrb[53].mxu0  ;;  %v1295_v11 = vmul.f32 %v4939_v23, %v4919_v25 }
 0x710   :  { %4950 = vrcp.f32 %v1279_v56 }
 0x711   :  { %v4941_v7 = vpop.eup %4940  ;;  %3733 = vmatprep.mubr.msk.f32.mxu1 %vm1119_vm7, %v1295_v11 }
 0x712   :  { %v4943_v57 = vpop.eup %4942  ;;  %1387 = vmatmul.mubr.f32.gmra.mrb[56].mxu1 %v1294_v0  ;;  %v1296_v22 = vmul.f32 %v4941_v7, %v4921_v44 }
 0x713   :  { %v1297_v13 = vmul.f32 %v4943_v57, %v4923_v31 }
 0x715   :  { %v4945_v60 = vpop.eup %4944  ;;  %3734 = vmatprep.mubr.msk.f32.mxu1 %vm1119_vm7, %v1297_v13 }
 0x716   :  { %v4947_v27 = vpop.eup %4946  ;;  %1392 = vmatmul.mubr.f32.gmra.mrb[58].mxu1 %v1296_v22  ;;  %v1298_v2 = vmul.f32 %v4945_v60, %v4925_v55 }
 0x717   :  { %v1299_v20 = vmul.f32 %v4947_v27, %v4927_v1 }
 0x719   :  { %v4949_v16 = vpop.eup %4948  ;;  %3735 = vmatprep.mubr.msk.f32.mxu1 %vm1119_vm7, %v1299_v20 }
 0x71a   :  { %v4951_v25 = vpop.eup %4950  ;;  %1397 = vmatmul.mubr.f32.gmra.mrb[60].mxu1 %v1298_v2  ;;  %v1300_v41 = vmul.f32 %v4949_v16, %v4929_v4 }
 0x71b   :  { %v1301_v14 = vmul.f32 %v4951_v25, %v4931_v32 }
 0x71d   :  { %3736 = vmatprep.mubr.msk.f32.mxu1 %vm1119_vm7, %v1301_v14 }
 0x71e   :  { %1402 = vmatmul.mubr.f32.gmra.mrb[62].mxu1 %v1300_v41 }
 0x71f   :  { %4311 = vmatprep.mubr.msk.f32.mxu1 %vm5115_vm0, %v6953_v36 }
 0x7e1   :  { %v1383_v44 = vpop.f32.mrb[54].mxu1 }
 0x7e2   :  { %v1385_v31 = vpop.f32.mrb[55].mxu1  ;;  %4258 = vmatmul.mubr.msk.f32.vlgmr.msra.gmra.mrb[54].mxu0 %vm323_vm2, %v1383_v44 }
 0x7e3   :  { %4260 = vmatprep.mubr.msk.f32.mxu0 %vm5115_vm0, %v6953_v36 }
 0x7e5   :  { %v1388_v55 = vpop.f32.mrb[56].mxu1 }
 0x7e6   :  { %v1390_v1 = vpop.f32.mrb[57].mxu1  ;;  %4261 = vmatmul.mubr.msk.f32.gmra.mrb[56].mxu0 %vm323_vm2, %v1388_v55 }
 0x7e7   :  { %4263 = vmatprep.mubr.msk.f32.mxu0 %vm5115_vm0, %v6953_v36 }
 0x7e9   :  { %v1393_v4 = vpop.f32.mrb[58].mxu1 }
 0x7ea   :  { %v1395_v32 = vpop.f32.mrb[59].mxu1  ;;  %4264 = vmatmul.mubr.msk.f32.gmra.mrb[58].mxu0 %vm323_vm2, %v1393_v4 }
 0x7eb   :  { %4266 = vmatprep.mubr.msk.f32.mxu0 %vm5115_vm0, %v6953_v36 }
 0x7ed   :  { %v1398_v6 = vpop.f32.mrb[60].mxu1 }
 0x7ee   :  { %v1400_v15 = vpop.f32.mrb[61].mxu1  ;;  %4267 = vmatmul.mubr.msk.f32.gmra.mrb[60].mxu0 %vm323_vm2, %v1398_v6 }
 0x7ef   :  { %4269 = vmatprep.mubr.msk.f32.mxu0 %vm5115_vm0, %v6953_v36 }
 0x7f1   :  { %v1403_v35 = vpop.f32.mrb[62].mxu1 }
 0x7f2   :  { %v1405_v18 = vpop.f32.mrb[63].mxu1  ;;  %4270 = vmatmul.mubr.msk.f32.gmra.mrb[62].mxu0 %vm323_vm2, %v1403_v35 }
 0x7f3   :  { %4280 = vmatprep.mubr.msk.f32.mxu0 %vm5115_vm0, %v6953_v36 }
 0x8b5   :  { %v1492_v19 = vpop.f32.mrb[54].mxu0 }
 0x8b6   :  { %v1516_v43 = vadd.f32 %v1492_v19, %v5329_v30  ;;  %v4259_v24 = vpop.f32.mrb[55].mxu0 }
 0x8b8   :  { %v6036_v34 = vadd.f32 %v3742_v33, %v1516_v43 }
 0x8b9   :  { %v1497_v28 = vpop.f32.mrb[56].mxu0 }
 0x8ba   :  { %v1517_v45 = vadd.f32 %v1497_v28, %v5336_v39  ;;  %v4262_v58 = vpop.f32.mrb[57].mxu0  ;;  %v1535_v59 = vsel %vm323_vm2, %v6036_v34, 0.0 }
 0x8bb   :  { %1536 = vadd.xlane.f32.xlu1 %v1535_v59  ;;  %v1623_v58 = vld [vmem:[%s6905_s18 + $0x8] sm:$0xff] }
 0x8bc   :  { %v6041_v48 = vadd.f32 %v3742_v33, %v1517_v45  ;;  %v1622_v45 = vld [vmem:[%s6905_s18] sm:$0xff] }
 0x8bd   :  { %v1502_v47 = vpop.f32.mrb[58].mxu0  ;;  %v4694_v59 = vpack.c.bf16 %v1623_v58, %v1622_v45 }
 0x8be   :  { %v1518_v10 = vadd.f32 %v1502_v47, %v5343_v46  ;;  %v4265_v5 = vpop.f32.mrb[59].mxu0  ;;  %v1538_v30 = vsel %vm323_vm2, %v6041_v48, 0.0  ;;  %v1624_v47 = vld [vmem:[%s6905_s18 + $0x10] sm:$0xff] }
 0x8bf   :  { %1539 = vadd.xlane.f32.xlu0 %v1538_v30  ;;  %4695 = vmatpush3.bf16.msra.mxu0 %v4694_v59 }
 0x8c0   :  { %v6046_v12 = vadd.f32 %v3742_v33, %v1518_v10  ;;  %4696 = vmatprep.subr.bf16.mxu0 %v5114_v3  ;;  %v1625_v10 = vld [vmem:[%s6905_s18 + $0x18] sm:$0xff] }
 0x8c1   :  { %v1507_v23 = vpop.f32.mrb[60].mxu0  ;;  %v4697_v5 = vpack.c.bf16 %v1625_v10, %v1624_v47 }
 0x8c2   :  { %v1519_v39 = vadd.f32 %v1507_v23, %v5350_v54  ;;  %v4268_v17 = vpop.f32.mrb[61].mxu0  ;;  %v1541_v56 = vsel %vm323_vm2, %v6046_v12, 0.0 }
 0x8c3   :  { %1542 = vadd.xlane.f32.xlu1 %v1541_v56  ;;  %4698 = vmatpush3.bf16.msra.mxu0 %v4697_v5  ;;  %v1785_v5 = vld [vmem:[%s6907_s20 + $0x10] sm:$0xff] }
 0x8c4   :  { %v6051_v11 = vadd.f32 %v3742_v33, %v1519_v39  ;;  %4711 = vmatprep.subr.bf16.mxu0 %v5114_v3 }
 0x8c5   :  { %v1512_v0 = vpop.f32.mrb[62].mxu0 }
 0x8c6   :  { %v1520_v46 = vadd.f32 %v1512_v0, %v5357_v61  ;;  %v4271_v7 = vpop.f32.mrb[63].mxu0  ;;  %v1544_v57 = vsel %vm323_vm2, %v6051_v11, 0.0 }
 0x8c7   :  { %1545 = vadd.xlane.f32.xlu0 %v1544_v57 }
 0x8c8   :  { %v6056_v13 = vadd.f32 %v3742_v33, %v1520_v46 }
 0x8ca   :  { %v1547_v54 = vsel %vm336_vm3, %v6056_v13, 0.0 }
 0x8cb   :  { %1548 = vadd.xlane.f32.xlu1 %v1547_v54 }
 0x948   :  { %v1537_v22 = vpop.xlane.xlu1 %1536 }
 0x949   :  { %v1550_v60 = vmul.f32 0.03125, %v1537_v22 }
 0x94b   :  { %v1555_v27 = vsub.f32 %v6036_v34, %v1550_v60 }
 0x94c   :  { %v1540_v20 = vpop.xlane.xlu0 %1539 }
 0x94d   :  { %v1551_v2 = vmul.f32 0.03125, %v1540_v20  ;;  %v1560_v16 = vmul.f32 %v1555_v27, %v1555_v27  ;;  %v3743_v20 = vld [vmem:[%s6903_s16] ss:$0 sm:$0xff] }
 0x94f   :  { %v1556_v61 = vsub.f32 %v6041_v48, %v1551_v2  ;;  %v1565_v25 = vsel %vm323_vm2, %v1560_v16, 0.0 }
 0x950   :  { %v1543_v14 = vpop.xlane.xlu1 %1542  ;;  %1566 = vadd.xlane.f32.xlu0 %v1565_v25 }
 0x951   :  { %v1552_v41 = vmul.f32 0.03125, %v1543_v14  ;;  %v1561_v44 = vmul.f32 %v1556_v61, %v1556_v61  ;;  %v3744_v14 = vld [vmem:[%s6904_s17] ss:$0 sm:$0xff] }
 0x953   :  { %v1557_v31 = vsub.f32 %v6046_v12, %v1552_v41  ;;  %v1568_v55 = vsel %vm323_vm2, %v1561_v44, 0.0 }
 0x954   :  { %v1546_v1 = vpop.xlane.xlu0 %1545  ;;  %1569 = vadd.xlane.f32.xlu1 %v1568_v55 }
 0x955   :  { %v1553_v4 = vmul.f32 0.03125, %v1546_v1  ;;  %v1562_v32 = vmul.f32 %v1557_v31, %v1557_v31 }
 0x957   :  { %v1558_v6 = vsub.f32 %v6051_v11, %v1553_v4  ;;  %v1571_v15 = vsel %vm323_vm2, %v1562_v32, 0.0 }
 0x958   :  { %1572 = vadd.xlane.f32.xlu0 %v1571_v15  ;;  %v1549_v35 = vpop.xlane.xlu1 %1548 }
 0x959   :  { %v1554_v18 = vmul.f32 0.03125, %v1549_v35  ;;  %v1563_v19 = vmul.f32 %v1558_v6, %v1558_v6 }
 0x95b   :  { %v1559_v33 = vsub.f32 %v6056_v13, %v1554_v18  ;;  %v1574_v43 = vsel %vm323_vm2, %v1563_v19, 0.0 }
 0x95c   :  { %1575 = vadd.xlane.f32.xlu1 %v1574_v43 }
 0x95d   :  { %v1564_v24 = vmul.f32 %v1559_v33, %v1559_v33 }
 0x95f   :  { %v1577_v28 = vsel %vm336_vm3, %v1564_v24, 0.0 }
 0x960   :  { %1578 = vadd.xlane.f32.xlu0 %v1577_v28 }
 0x9dd   :  { %v1567_v30 = vpop.xlane.xlu0 %1566 }
 0x9de   :  { %v1580_v23 = vmul.f32 0.03125, %v1567_v30  ;;  %v1786_v30 = vld [vmem:[%s6907_s20 + $0x18] sm:$0xff] }
 0x9e0   :  { %v1585_v39 = vadd.f32 1e-05, %v1580_v23  ;;  %v4703_v23 = vpack.c.bf16 %v1786_v30, %v1785_v5 }
 0x9e1   :  { %v1570_v17 = vpop.xlane.xlu1 %1569 }
 0x9e2   :  { %4952 = vrsqrt.f32 %v1585_v39  ;;  %v1581_v56 = vmul.f32 0.03125, %v1570_v17  ;;  %v1787_v39 = vld [vmem:[%s6907_s20 + $0x20] sm:$0xff]  ;;  %v1788_v17 = vld [vmem:[%s6907_s20 + $0x28] sm:$0xff] }
 0x9e4   :  { %v1586_v0 = vadd.f32 1e-05, %v1581_v56  ;;  %v4706_v56 = vpack.c.bf16 %v1788_v17, %v1787_v39 }
 0x9e5   :  { %v1573_v46 = vpop.xlane.xlu0 %1572 }
 0x9e6   :  { %4954 = vrsqrt.f32 %v1586_v0  ;;  %v1582_v7 = vmul.f32 0.03125, %v1573_v46  ;;  %v1789_v0 = vld [vmem:[%s6907_s20 + $0x30] sm:$0xff]  ;;  %v1790_v46 = vld [vmem:[%s6907_s20 + $0x38] sm:$0xff] }
 0x9e8   :  { %v1587_v57 = vadd.f32 1e-05, %v1582_v7  ;;  %v4709_v7 = vpack.c.bf16 %v1790_v46, %v1789_v0 }
 0x9e9   :  { %v1576_v54 = vpop.xlane.xlu1 %1575 }
 0x9ea   :  { %4956 = vrsqrt.f32 %v1587_v57  ;;  %v1583_v22 = vmul.f32 0.03125, %v1576_v54  ;;  %v3745_v57 = vld [vmem:[%s6906_s19] ss:$0 sm:$0xff] }
 0x9ec   :  { %v4953_v60 = vpop.eup %4952  ;;  %v1588_v2 = vadd.f32 1e-05, %v1583_v22 }
 0x9ed   :  { %v1595_v16 = vmul.f32 %v4953_v60, %v1555_v27  ;;  %v1579_v25 = vpop.xlane.xlu0 %1578 }
 0x9ee   :  { %4958 = vrsqrt.f32 %v1588_v2  ;;  %v1584_v41 = vmul.f32 0.03125, %v1579_v25 }
 0x9ef   :  { %v1606_v44 = vmul.f32 %v3743_v20, %v1595_v16 }
 0x9f0   :  { %v4955_v55 = vpop.eup %4954  ;;  %v1589_v1 = vadd.f32 1e-05, %v1584_v41 }
 0x9f1   :  { %v1617_v4 = vadd.f32 %v3744_v14, %v1606_v44  ;;  %v1596_v32 = vmul.f32 %v4955_v55, %v1556_v61 }
 0x9f2   :  { %4960 = vrsqrt.f32 %v1589_v1 }
 0x9f3   :  { %4281 = vmatmul.mubr.msk.f32.vlgmr.msra.gmra.mrb[64].mxu0 %vm323_vm2, %v1617_v4  ;;  %v1607_v15 = vmul.f32 %v3743_v20, %v1596_v32 }
 0x9f4   :  { %v4957_v35 = vpop.eup %4956  ;;  %4283 = vmatprep.mubr.msk.f32.mxu0 %vm5115_vm0, %v6953_v36 }
 0x9f5   :  { %v1618_v27 = vadd.f32 %v3744_v14, %v1607_v15  ;;  %v1597_v18 = vmul.f32 %v4957_v35, %v1557_v31 }
 0x9f7   :  { %4284 = vmatmul.mubr.msk.f32.gmra.mrb[66].mxu0 %vm323_vm2, %v1618_v27  ;;  %v1608_v19 = vmul.f32 %v3743_v20, %v1597_v18 }
 0x9f8   :  { %v4959_v43 = vpop.eup %4958  ;;  %4286 = vmatprep.mubr.msk.f32.mxu0 %vm5115_vm0, %v6953_v36 }
 0x9f9   :  { %v1619_v24 = vadd.f32 %v3744_v14, %v1608_v19  ;;  %v1598_v28 = vmul.f32 %v4959_v43, %v1558_v6  ;;  %v1783_v6 = vld [vmem:[%s6907_s20] sm:$0xff] }
 0x9fb   :  { %4287 = vmatmul.mubr.msk.f32.gmra.mrb[68].mxu0 %vm323_vm2, %v1619_v24  ;;  %v1609_v61 = vmul.f32 %v3743_v20, %v1598_v28 }
 0x9fc   :  { %v4961_v45 = vpop.eup %4960  ;;  %4289 = vmatprep.mubr.msk.f32.mxu0 %vm5115_vm0, %v6953_v36 }
 0x9fd   :  { %v1620_v58 = vadd.f32 %v3744_v14, %v1609_v61  ;;  %v1599_v59 = vmul.f32 %v4961_v45, %v1559_v33  ;;  %v1784_v33 = vld [vmem:[%s6907_s20 + $0x8] sm:$0xff] }
 0x9fe   :  { %v4700_v10 = vpack.c.bf16 %v1784_v33, %v1783_v6 }
 0x9ff   :  { %4290 = vmatmul.mubr.msk.f32.gmra.mrb[70].mxu0 %vm323_vm2, %v1620_v58  ;;  %v1610_v31 = vmul.f32 %v3743_v20, %v1599_v59 }
 0xa00   :  { %4292 = vmatprep.mubr.msk.f32.mxu0 %vm5115_vm0, %v6953_v36  ;;  %4701 = vmatpush3.bf16.msra.mxu1 %v4700_v10 }
 0xa01   :  { %v1621_v47 = vadd.f32 %v3744_v14, %v1610_v31  ;;  %4702 = vmatprep.subr.bf16.mxu1 %v5114_v3 }
 0xa03   :  { %4293 = vmatmul.mubr.msk.f32.gmra.mrb[72].mxu0 %vm323_vm2, %v1621_v47 }
 0xa04   :  { %4334 = vmatprep.mubr.msk.f32.mxu0 %vm5115_vm0, %v6953_v36  ;;  %4704 = vmatpush3.bf16.msra.mxu1 %v4703_v23 }
 0xa05   :  { %4705 = vmatprep.subr.bf16.mxu1 %v5114_v3 }
 0xa08   :  { %4707 = vmatpush3.bf16.msra.mxu1 %v4706_v56 }
 0xa09   :  { %4708 = vmatprep.subr.bf16.mxu1 %v5114_v3 }
 0xa0c   :  { %4710 = vmatpush3.bf16.msra.mxu1 %v4709_v7 }
 0xa0d   :  { %4717 = vmatprep.subr.bf16.mxu1 %v5114_v3 }
 0xac6   :  { %v1714_v54 = vpop.f32.mrb[64].mxu0 }
 0xac7   :  { %v1715_v22 = vadd.f32 %v3745_v57, %v1714_v54  ;;  %v4282_v60 = vpop.f32.mrb[65].mxu0 }
 0xac9   :  { %v1738_v20 = vmul.f32 %v1715_v22, %v1715_v22 }
 0xaca   :  { %v1719_v2 = vpop.f32.mrb[66].mxu0 }
 0xacb   :  { %v1743_v16 = vmul.f32 %v1738_v20, %v1715_v22  ;;  %v1720_v25 = vadd.f32 %v3745_v57, %v1719_v2  ;;  %v4285_v14 = vpop.f32.mrb[67].mxu0 }
 0xacd   :  { %v1748_v41 = vmul.f32 0.044715, %v1743_v16  ;;  %v1739_v44 = vmul.f32 %v1720_v25, %v1720_v25 }
 0xace   :  { %v1724_v55 = vpop.f32.mrb[68].mxu0 }
 0xacf   :  { %v1753_v1 = vadd.f32 %v1748_v41, %v1715_v22  ;;  %v1744_v4 = vmul.f32 %v1739_v44, %v1720_v25  ;;  %v1725_v32 = vadd.f32 %v3745_v57, %v1724_v55  ;;  %v4288_v15 = vpop.f32.mrb[69].mxu0 }
 0xad1   :  { %v1758_v35 = vmul.f32 0.7978846, %v1753_v1  ;;  %v1749_v27 = vmul.f32 0.044715, %v1744_v4  ;;  %v1740_v18 = vmul.f32 %v1725_v32, %v1725_v32 }
 0xad2   :  { %v1729_v19 = vpop.f32.mrb[70].mxu0 }
 0xad3   :  { %4962 = vtanh.f32 %v1758_v35  ;;  %v1754_v43 = vadd.f32 %v1749_v27, %v1720_v25  ;;  %v1745_v24 = vmul.f32 %v1740_v18, %v1725_v32  ;;  %v1730_v28 = vadd.f32 %v3745_v57, %v1729_v19  ;;  %v4291_v61 = vpop.f32.mrb[71].mxu0 }
 0xad5   :  { %v1759_v45 = vmul.f32 0.7978846, %v1754_v43  ;;  %v1750_v58 = vmul.f32 0.044715, %v1745_v24  ;;  %v1741_v59 = vmul.f32 %v1730_v28, %v1730_v28  ;;  %v3756_v24 = vld [vmem:[%s6908_s21] ss:$0 sm:$0xff] }
 0xad6   :  { %v1734_v31 = vpop.f32.mrb[72].mxu0 }
 0xad7   :  { %4964 = vtanh.f32 %v1759_v45  ;;  %v1755_v47 = vadd.f32 %v1750_v58, %v1725_v32  ;;  %v1746_v6 = vmul.f32 %v1741_v59, %v1730_v28  ;;  %v1735_v33 = vadd.f32 %v3745_v57, %v1734_v31  ;;  %v4294_v10 = vpop.f32.mrb[73].mxu0 }
 0xad9   :  { %v1760_v5 = vmul.f32 0.7978846, %v1755_v47  ;;  %v1751_v30 = vmul.f32 0.044715, %v1746_v6  ;;  %v1742_v23 = vmul.f32 %v1735_v33, %v1735_v33 }
 0xadb   :  { %4966 = vtanh.f32 %v1760_v5  ;;  %v1756_v39 = vadd.f32 %v1751_v30, %v1730_v28  ;;  %v1747_v17 = vmul.f32 %v1742_v23, %v1735_v33 }
 0xadd   :  { %v4963_v56 = vpop.eup %4962  ;;  %v1761_v0 = vmul.f32 0.7978846, %v1756_v39  ;;  %v1752_v46 = vmul.f32 0.044715, %v1747_v17 }
 0xade   :  { %v1768_v7 = vadd.f32 1.0, %v4963_v56 }
 0xadf   :  { %4968 = vtanh.f32 %v1761_v0  ;;  %v1757_v54 = vadd.f32 %v1752_v46, %v1735_v33 }
 0xae0   :  { %v1773_v60 = vmul.f32 0.5, %v1768_v7 }
 0xae1   :  { %v4965_v20 = vpop.eup %4964  ;;  %v1762_v2 = vmul.f32 0.7978846, %v1757_v54 }
 0xae2   :  { %v1778_v16 = vmul.f32 %v1773_v60, %v1715_v22  ;;  %v1769_v14 = vadd.f32 1.0, %v4965_v20 }
 0xae3   :  { %4970 = vtanh.f32 %v1762_v2 }
 0xae4   :  { %4312 = vmatmul.mubr.msk.f32.vlgmr.msra.gmra.mrb[64].mxu1 %vm1791_vm9, %v1778_v16  ;;  %v1774_v57 = vmul.f32 0.5, %v1769_v14 }
 0xae5   :  { %v4967_v41 = vpop.eup %4966  ;;  %4314 = vmatprep.mubr.msk.f32.mxu1 %vm5115_vm0, %v6953_v36 }
 0xae6   :  { %v1779_v44 = vmul.f32 %v1774_v57, %v1720_v25  ;;  %v1770_v55 = vadd.f32 1.0, %v4967_v41 }
 0xae8   :  { %4315 = vmatmul.mubr.msk.f32.gmra.mrb[66].mxu1 %vm1791_vm9, %v1779_v44  ;;  %v1775_v1 = vmul.f32 0.5, %v1770_v55 }
 0xae9   :  { %v4969_v4 = vpop.eup %4968  ;;  %4317 = vmatprep.mubr.msk.f32.mxu1 %vm5115_vm0, %v6953_v36 }
 0xaea   :  { %v1780_v15 = vmul.f32 %v1775_v1, %v1725_v32  ;;  %v1771_v22 = vadd.f32 1.0, %v4969_v4 }
 0xaec   :  { %4318 = vmatmul.mubr.msk.f32.gmra.mrb[68].mxu1 %vm1791_vm9, %v1780_v15  ;;  %v1776_v35 = vmul.f32 0.5, %v1771_v22 }
 0xaed   :  { %v4971_v27 = vpop.eup %4970  ;;  %4320 = vmatprep.mubr.msk.f32.mxu1 %vm5115_vm0, %v6953_v36 }
 0xaee   :  { %v1781_v18 = vmul.f32 %v1776_v35, %v1730_v28  ;;  %v1772_v19 = vadd.f32 1.0, %v4971_v27 }
 0xaf0   :  { %4321 = vmatmul.mubr.msk.f32.gmra.mrb[70].mxu1 %vm1791_vm9, %v1781_v18  ;;  %v1777_v25 = vmul.f32 0.5, %v1772_v19 }
 0xaf1   :  { %4323 = vmatprep.mubr.msk.f32.mxu1 %vm5115_vm0, %v6953_v36 }
 0xaf2   :  { %v1782_v43 = vmul.f32 %v1777_v25, %v1735_v33 }
 0xaf4   :  { %4324 = vmatmul.mubr.msk.f32.gmra.mrb[72].mxu1 %vm1791_vm9, %v1782_v43 }
 0xaf5   :  { %4359 = vmatprep.mubr.msk.f32.mxu1 %vm5115_vm0, %v6953_v36 }
 0xbb7   :  { %v1873_v32 = vpop.f32.mrb[64].mxu1 }
 0xbb8   :  { %v1897_v28 = vadd.f32 %v1873_v32, %v6036_v34  ;;  %v4313_v61 = vpop.f32.mrb[65].mxu1 }
 0xbba   :  { %v6155_v45 = vadd.f32 %v3756_v24, %v1897_v28 }
 0xbbb   :  { %v1878_v58 = vpop.f32.mrb[66].mxu1 }
 0xbbc   :  { %v1898_v59 = vadd.f32 %v1878_v58, %v6041_v48  ;;  %v4316_v31 = vpop.f32.mrb[67].mxu1  ;;  %v1918_v47 = vsel %vm323_vm2, %v6155_v45, 0.0 }
 0xbbd   :  { %1919 = vadd.xlane.f32.xlu1 %v1918_v47  ;;  %v3762_v31 = vld [vmem:[%s6899_s12 + $0x28] sm:$0xff] }
 0xbbe   :  { %v6160_v6 = vadd.f32 %v3756_v24, %v1898_v59  ;;  %v3761_v59 = vld [vmem:[%s6899_s12 + $0x20] sm:$0xff] }
 0xbbf   :  { %v1883_v33 = vpop.f32.mrb[68].mxu1  ;;  %v4712_v47 = vpack.c.bf16 %v3762_v31, %v3761_v59 }
 0xbc0   :  { %v1899_v10 = vadd.f32 %v1883_v33, %v6046_v12  ;;  %v4319_v5 = vpop.f32.mrb[69].mxu1  ;;  %v1921_v34 = vsel %vm323_vm2, %v6160_v6, 0.0  ;;  %v3763_v33 = vld [vmem:[%s6899_s12 + $0x30] sm:$0xff] }
 0xbc1   :  { %1922 = vadd.xlane.f32.xlu0 %v1921_v34  ;;  %4713 = vmatpush3.bf16.msra.mxu0 %v4712_v47 }
 0xbc2   :  { %v6165_v30 = vadd.f32 %v3756_v24, %v1899_v10  ;;  %4714 = vmatprep.subr.bf16.mxu0 %v5114_v3  ;;  %v3764_v10 = vld [vmem:[%s6899_s12 + $0x38] sm:$0xff] }
 0xbc3   :  { %v1888_v23 = vpop.f32.mrb[70].mxu1  ;;  %v4715_v5 = vpack.c.bf16 %v3764_v10, %v3763_v33 }
 0xbc4   :  { %v1900_v48 = vadd.f32 %v1888_v23, %v6051_v11  ;;  %v4322_v39 = vpop.f32.mrb[71].mxu1  ;;  %v1924_v17 = vsel %vm323_vm2, %v6165_v30, 0.0 }
 0xbc5   :  { %1925 = vadd.xlane.f32.xlu1 %v1924_v17  ;;  %4716 = vmatpush3.bf16.msra.mxu0 %v4715_v5  ;;  %v3766_v5 = vld [vmem:[%s6900_s13 + $0x1] ss:$0 sm:$0xff]  ;;  %s6954_s13 = smov 64  }
 0xbc6   :  { %v6170_v56 = vadd.f32 %v3756_v24, %v1900_v48  ;;  %4723 = vmatprep.subr.bf16.mxu0 %v5114_v3 }
 0xbc7   :  { %v1893_v0 = vpop.f32.mrb[72].mxu1 }
 0xbc8   :  { %v1901_v12 = vadd.f32 %v1893_v0, %v6056_v13  ;;  %v4325_v46 = vpop.f32.mrb[73].mxu1  ;;  %v1927_v7 = vsel %vm323_vm2, %v6170_v56, 0.0 }
 0xbc9   :  { %1928 = vadd.xlane.f32.xlu0 %v1927_v7 }
 0xbca   :  { %v6175_v54 = vadd.f32 %v3756_v24, %v1901_v12 }
 0xbcc   :  { %v1930_v11 = vsel %vm336_vm3, %v6175_v54, 0.0 }
 0xbcd   :  { %1931 = vadd.xlane.f32.xlu1 %v1930_v11 }
 0xc4a   :  { %v1920_v60 = vpop.xlane.xlu1 %1919 }
 0xc4b   :  { %v1933_v20 = vmul.f32 0.03125, %v1920_v60 }
 0xc4d   :  { %v1938_v2 = vsub.f32 %v6155_v45, %v1933_v20 }
 0xc4e   :  { %v1923_v16 = vpop.xlane.xlu0 %1922 }
 0xc4f   :  { %v1934_v14 = vmul.f32 0.03125, %v1923_v16  ;;  %v1943_v57 = vmul.f32 %v1938_v2, %v1938_v2  ;;  %v3759_v16 = vld [vmem:[%s6945_s5 + $0x1] ss:$0 sm:$0xff] }
 0xc51   :  { %v1939_v13 = vsub.f32 %v6160_v6, %v1934_v14  ;;  %v1948_v41 = vsel %vm323_vm2, %v1943_v57, 0.0 }
 0xc52   :  { %v1926_v44 = vpop.xlane.xlu1 %1925  ;;  %1949 = vadd.xlane.f32.xlu0 %v1948_v41 }
 0xc53   :  { %v1935_v55 = vmul.f32 0.03125, %v1926_v44  ;;  %v1944_v1 = vmul.f32 %v1939_v13, %v1939_v13  ;;  %v3760_v44 = vld [vmem:[%s6898_s11 + $0x1] ss:$0 sm:$0xff] }
 0xc55   :  { %v1940_v4 = vsub.f32 %v6165_v30, %v1935_v55  ;;  %v1951_v15 = vsel %vm323_vm2, %v1944_v1, 0.0 }
 0xc56   :  { %v1929_v22 = vpop.xlane.xlu0 %1928  ;;  %1952 = vadd.xlane.f32.xlu1 %v1951_v15 }
 0xc57   :  { %v1936_v35 = vmul.f32 0.03125, %v1929_v22  ;;  %v1945_v27 = vmul.f32 %v1940_v4, %v1940_v4 }
 0xc59   :  { %v1941_v18 = vsub.f32 %v6170_v56, %v1936_v35  ;;  %v1954_v19 = vsel %vm323_vm2, %v1945_v27, 0.0 }
 0xc5a   :  { %1955 = vadd.xlane.f32.xlu0 %v1954_v19  ;;  %v1932_v25 = vpop.xlane.xlu1 %1931 }
 0xc5b   :  { %v1937_v43 = vmul.f32 0.03125, %v1932_v25  ;;  %v1946_v32 = vmul.f32 %v1941_v18, %v1941_v18 }
 0xc5d   :  { %v1942_v24 = vsub.f32 %v6175_v54, %v1937_v43  ;;  %v1957_v28 = vsel %vm323_vm2, %v1946_v32, 0.0 }
 0xc5e   :  { %1958 = vadd.xlane.f32.xlu1 %v1957_v28 }
 0xc5f   :  { %v1947_v61 = vmul.f32 %v1942_v24, %v1942_v24 }
 0xc61   :  { %v1960_v58 = vsel %vm336_vm3, %v1947_v61, 0.0 }
 0xc62   :  { %1961 = vadd.xlane.f32.xlu0 %v1960_v58 }
 0xcdf   :  { %v1950_v34 = vpop.xlane.xlu0 %1949 }
 0xce0   :  { %v1963_v23 = vmul.f32 0.03125, %v1950_v34 }
 0xce2   :  { %v1968_v48 = vadd.f32 1e-05, %v1963_v23 }
 0xce3   :  { %v1953_v39 = vpop.xlane.xlu1 %1952 }
 0xce4   :  { %4972 = vrsqrt.f32 %v1968_v48  ;;  %v1964_v17 = vmul.f32 0.03125, %v1953_v39 }
 0xce6   :  { %v1969_v0 = vadd.f32 1e-05, %v1964_v17 }
 0xce7   :  { %v1956_v12 = vpop.xlane.xlu0 %1955 }
 0xce8   :  { %4974 = vrsqrt.f32 %v1969_v0  ;;  %v1965_v46 = vmul.f32 0.03125, %v1956_v12 }
 0xcea   :  { %v1970_v7 = vadd.f32 1e-05, %v1965_v46 }
 0xceb   :  { %v1959_v11 = vpop.xlane.xlu1 %1958 }
 0xcec   :  { %4976 = vrsqrt.f32 %v1970_v7  ;;  %v1966_v60 = vmul.f32 0.03125, %v1959_v11 }
 0xcee   :  { %v4973_v20 = vpop.eup %4972  ;;  %v1971_v14 = vadd.f32 1e-05, %v1966_v60 }
 0xcef   :  { %v1978_v57 = vmul.f32 %v4973_v20, %v1938_v2  ;;  %v1962_v41 = vpop.xlane.xlu0 %1961 }
 0xcf0   :  { %4978 = vrsqrt.f32 %v1971_v14  ;;  %v1967_v55 = vmul.f32 0.03125, %v1962_v41 }
 0xcf1   :  { %v1989_v1 = vmul.f32 %v3759_v16, %v1978_v57 }
 0xcf2   :  { %v4975_v15 = vpop.eup %4974  ;;  %v1972_v22 = vadd.f32 1e-05, %v1967_v55 }
 0xcf3   :  { %v2000_v35 = vadd.f32 %v3760_v44, %v1989_v1  ;;  %v1979_v27 = vmul.f32 %v4975_v15, %v1939_v13 }
 0xcf4   :  { %4980 = vrsqrt.f32 %v1972_v22 }
 0xcf5   :  { %4335 = vmatmul.mubr.msk.f32.vlgmr.msra.gmra.mrb[74].mxu0 %vm323_vm2, %v2000_v35  ;;  %v1990_v19 = vmul.f32 %v3759_v16, %v1979_v27 }
 0xcf6   :  { %v4977_v25 = vpop.eup %4976  ;;  %4337 = vmatprep.mubr.msk.f32.mxu0 %vm5115_vm0, %v6953_v36 }
 0xcf7   :  { %v2001_v2 = vadd.f32 %v3760_v44, %v1990_v19  ;;  %v1980_v43 = vmul.f32 %v4977_v25, %v1940_v4 }
 0xcf9   :  { %4338 = vmatmul.mubr.msk.f32.gmra.mrb[76].mxu0 %vm323_vm2, %v2001_v2  ;;  %v1991_v32 = vmul.f32 %v3759_v16, %v1980_v43 }
 0xcfa   :  { %v4979_v28 = vpop.eup %4978  ;;  %4340 = vmatprep.mubr.msk.f32.mxu0 %vm5115_vm0, %v6953_v36 }
 0xcfb   :  { %v2002_v61 = vadd.f32 %v3760_v44, %v1991_v32  ;;  %v1981_v58 = vmul.f32 %v4979_v28, %v1941_v18 }
 0xcfd   :  { %4341 = vmatmul.mubr.msk.f32.gmra.mrb[78].mxu0 %vm323_vm2, %v2002_v61  ;;  %v1992_v13 = vmul.f32 %v3759_v16, %v1981_v58  ;;  %v5044_v58 = vld [vmem:[%s6946_s9] sm:$0xff] }
 0xcfe   :  { %v4981_v59 = vpop.eup %4980  ;;  %4343 = vmatprep.mubr.msk.f32.mxu0 %vm5115_vm0, %v6953_v36 }
 0xcff   :  { %v2003_v31 = vadd.f32 %v3760_v44, %v1992_v13  ;;  %v1982_v47 = vmul.f32 %v4981_v59, %v1942_v24  ;;  %v5045_v59 = vld [vmem:[%s6946_s9 + $0x8] sm:$0xff] }
 0xd01   :  { %4344 = vmatmul.mubr.msk.f32.gmra.mrb[80].mxu0 %vm323_vm2, %v2003_v31  ;;  %v1993_v4 = vmul.f32 %v3759_v16, %v1982_v47  ;;  %v5046_v47 = vld [vmem:[%s6946_s9 + $0x10] sm:$0xff] }
 0xd02   :  { %4346 = vmatprep.mubr.msk.f32.mxu0 %vm5115_vm0, %v6953_v36 }
 0xd03   :  { %v2004_v33 = vadd.f32 %v3760_v44, %v1993_v4  ;;  %v5047_v4 = vld [vmem:[%s6946_s9 + $0x18] sm:$0xff] }
 0xd05   :  { %4347 = vmatmul.mubr.msk.f32.gmra.mrb[82].mxu0 %vm323_vm2, %v2004_v33 }
 0xd06   :  { %4420 = vmatprep.mubr.msk.f32.mxu0 %vm5115_vm0, %v6953_v36 }
 0xdc8   :  { %v2099_v18 = vpop.f32.mrb[74].mxu0 }
 0xdc9   :  { %v4336_v10 = vpop.f32.mrb[75].mxu0  ;;  %v6227_v24 = vadd.f32 %v3766_v5, %v2099_v18 }
 0xdca   :  { %v6432_v10 = vld [vmem:[%s6947_s2] sm:$0xff] }
 0xdcc   :  { %v2104_v34 = vpop.f32.mrb[76].mxu0 }
 0xdcd   :  { %v6229_v23 = vadd.f32 %v3766_v5, %v2104_v34  ;;  %v4339_v48 = vpop.f32.mrb[77].mxu0  ;;  %v6438_v34 = vld [vmem:[%s6947_s2 + $0x8] sm:$0xff] }
 0xdcf   :  { %v4882_v39 = vpack.i.bf16 %v6229_v23, %v6227_v24 }
 0xdd0   :  { %v2109_v17 = vpop.f32.mrb[78].mxu0 }
 0xdd1   :  { %4883 = vrot.lane.b32.xlu1 %v4882_v39, %s5118_s4  ;;  %v4342_v0 = vpop.f32.mrb[79].mxu0  ;;  %v6234_v46 = vadd.f32 %v3766_v5, %v2109_v17 }
 0xdd4   :  { %v2114_v12 = vpop.f32.mrb[80].mxu0 }
 0xdd5   :  { %v6236_v7 = vadd.f32 %v3766_v5, %v2114_v12  ;;  %v4345_v11 = vpop.f32.mrb[81].mxu0 }
 0xdd7   :  { %v4887_v60 = vpack.i.bf16 %v6236_v7, %v6234_v46 }
 0xdd8   :  { %v2119_v20 = vpop.f32.mrb[82].mxu0 }
 0xdd9   :  { %v6240_v16 = vadd.f32 %v3766_v5, %v2119_v20  ;;  %4888 = vrot.lane.b32.xlu0 %v4887_v60, %s5118_s4  ;;  %v4348_v14 = vpop.f32.mrb[83].mxu0  ;;  %v6447_v20 = vld [vmem:[%s6947_s2 + $0x10] sm:$0xff] }
 0xddb   :  { %2136 = vrot.lane.b32.xlu1 %v6240_v16, %s5118_s4 }
 0xddd   :  { %4898 = vrot.lane.b32.xlu0 %v4887_v60, %s6954_s13 }
 0xddf   :  { %4893 = vrot.lane.b32.xlu1 %v4882_v39, %s6954_s13 }
 0xde3   :  { %2319 = vrot.lane.b32.xlu1 %v6240_v16, %s6954_s13 }
 0xe43   :  { %v4884_v57 = vpop.permute.xlu1 %4883 }
 0xe44   :  { %v4886_v41 = vunpack.i.h.bf16 %v4884_v57  ;;  %v4885_v44 = vunpack.i.l.bf16 %v4884_v57  ;;  %v6453_v57 = vld [vmem:[%s6947_s2 + $0x18] sm:$0xff] }
 0xe46   :  { %v4718_v55 = vpack.c.bf16 %v4886_v41, %v4885_v44 }
 0xe48   :  { %4719 = vmatpush3.bf16.msra.mxu1 %v4718_v55 }
 0xe49   :  { %4720 = vmatprep.subr.bf16.mxu1 %v5114_v3 }
 0xe4b   :  { %v4889_v1 = vpop.permute.xlu0 %4888 }
 0xe4c   :  { %v4891_v15 = vunpack.i.h.bf16 %v4889_v1  ;;  %v4890_v22 = vunpack.i.l.bf16 %v4889_v1 }
 0xe4d   :  { %v2137_v35 = vpop.permute.xlu1 %2136 }
 0xe4e   :  { %v4721_v27 = vpack.c.bf16 %v4891_v15, %v4890_v22 }
 0xe4f   :  { %v4899_v19 = vpop.permute.xlu0 %4898 }
 0xe50   :  { %4722 = vmatpush3.bf16.msra.mxu1 %v4721_v27  ;;  %v4901_v32 = vunpack.i.h.bf16 %v4899_v19  ;;  %v4900_v28 = vunpack.i.l.bf16 %v4899_v19  ;;  %v6468_v19 = vld [vmem:[%s6947_s2 + $0x28] sm:$0xff] }
 0xe51   :  { %v4894_v25 = vpop.permute.xlu1 %4893  ;;  %4357 = vmatprep.subr.mxu1 %v6953_v36 }
 0xe52   :  { %v4896_v2 = vunpack.i.h.bf16 %v4894_v25  ;;  %v4895_v43 = vunpack.i.l.bf16 %v4894_v25  ;;  %v4727_v13 = vpack.c.bf16 %v4901_v32, %v4900_v28 }
 0xe54   :  { %v4724_v61 = vpack.c.bf16 %v4896_v2, %v4895_v43  ;;  %4358 = vmatpush3.msk.msra.mxu1 %vm600_vm4, %v2137_v35  ;;  %v6462_v35 = vld [vmem:[%s6947_s2 + $0x20] sm:$0xff] }
 0xe55   :  { %4360 = vmatmul.mubr.msk.f32.vlgmr.msra.gmra.mrb[74].mxu1 %vm548_vm5, %v5044_v58  ;;  %4729 = vmatprep.subr.bf16.mxu1 %v5114_v3  ;;  %v2320_v31 = vpop.permute.xlu1 %2319 }
 0xe56   :  { %4725 = vmatpush3.bf16.msra.mxu0 %v4724_v61  ;;  %4362 = vmatprep.mubr.msk.f32.mxu1 %vm5115_vm0, %v6953_v36 }
 0xe57   :  { %4726 = vmatprep.subr.bf16.mxu0 %v5114_v3 }
 0xe59   :  { %4363 = vmatmul.mubr.msk.f32.gmra.mrb[76].mxu1 %vm548_vm5, %v5045_v59 }
 0xe5a   :  { %4728 = vmatpush3.bf16.msra.mxu0 %v4727_v13  ;;  %4365 = vmatprep.mubr.msk.f32.mxu1 %vm5115_vm0, %v6953_v36 }
 0xe5b   :  { %4418 = vmatprep.subr.mxu0 %v6953_v36 }
 0xe5d   :  { %4366 = vmatmul.mubr.msk.f32.gmra.mrb[78].mxu1 %vm548_vm5, %v5046_v47 }
 0xe5e   :  { %4419 = vmatpush3.msk.msra.mxu0 %vm600_vm4, %v2320_v31  ;;  %4368 = vmatprep.mubr.msk.f32.mxu1 %vm5115_vm0, %v6953_v36 }
 0xe5f   :  { %4421 = vmatmul.mubr.msk.f32.vlgmr.msra.gmra.mrb[84].mxu0 %vm548_vm5, %v5044_v58  ;;  %4762 = vmatprep.subr.bf16.mxu0 %v5745_v50  ;;  %v5048_v50 = vld [vmem:[%s6946_s9 + $0x20] sm:$0xff]  ;;  %v6477_v58 = vld [vmem:[%s6947_s2 + $0x30] sm:$0xff] }
 0xe60   :  { %4423 = vmatprep.mubr.msk.f32.mxu0 %vm5115_vm0, %v6953_v36  ;;  %4764 = vmatpush1.bf16.msra.mxu0 %v5756_v52  ;;  %v5049_v52 = vld [vmem:[%s6946_s9 + $0x28] sm:$0xff] }
 0xe61   :  { %4369 = vmatmul.mubr.msk.f32.gmra.mrb[80].mxu1 %vm548_vm5, %v5047_v4  ;;  %4766 = vmatprep.subr.bf16.mxu0 %v5758_v53  ;;  %v5050_v53 = vld [vmem:[%s6946_s9 + $0x30] sm:$0xff] }
 0xe62   :  { %4371 = vmatprep.mubr.msk.f32.mxu1 %vm5115_vm0, %v6953_v36 }
 0xe63   :  { %4424 = vmatmul.mubr.msk.f32.gmra.mrb[86].mxu0 %vm548_vm5, %v5045_v59  ;;  %v6483_v59 = vld [vmem:[%s6947_s2 + $0x38] sm:$0xff] }
 0xe64   :  { %4426 = vmatprep.mubr.msk.f32.mxu0 %vm5115_vm0, %v6953_v36  ;;  %4768 = vmatpush1.bf16.msra.mxu0 %v5774_v62  ;;  %v5051_v62 = vld [vmem:[%s6946_s9 + $0x38] sm:$0xff] }
 0xe65   :  { %4372 = vmatmul.mubr.msk.f32.gmra.mrb[82].mxu1 %vm548_vm5, %v5048_v50  ;;  %4770 = vmatprep.subr.bf16.mxu0 %v5777_v63  ;;  %v5052_v63 = vld [vmem:[%s6946_s9 + $0x40] sm:$0xff] }
 0xe66   :  { %4374 = vmatprep.mubr.msk.f32.mxu1 %vm5115_vm0, %v6953_v36 }
 0xe67   :  { %4427 = vmatmul.mubr.msk.f32.gmra.mrb[88].mxu0 %vm548_vm5, %v5046_v47 }
 0xe68   :  { %4429 = vmatprep.mubr.msk.f32.mxu0 %vm5115_vm0, %v6953_v36  ;;  %4772 = vmatpush1.bf16.msra.mxu0 %v5792_v8  ;;  %v5053_v8 = vld [vmem:[%s6946_s9 + $0x48] sm:$0xff] }
 0xe69   :  { %4375 = vmatmul.mubr.msk.f32.gmra.mrb[84].mxu1 %vm548_vm5, %v5049_v52  ;;  %4774 = vmatprep.subr.bf16.mxu0 %v5795_v9  ;;  %v5054_v9 = vld [vmem:[%s6946_s9 + $0x50] sm:$0xff] }
 0xe6a   :  { %4377 = vmatprep.mubr.msk.f32.mxu1 %vm5115_vm0, %v6953_v36 }
 0xe6b   :  { %4430 = vmatmul.mubr.msk.f32.gmra.mrb[90].mxu0 %vm548_vm5, %v5047_v4 }
 0xe6c   :  { %4432 = vmatprep.mubr.msk.f32.mxu0 %vm5115_vm0, %v6953_v36  ;;  %4776 = vmatpush1.bf16.msra.mxu0 %v5810_v21  ;;  %v5055_v21 = vld [vmem:[%s6951_s3 + $0x108] sm:$0xff] }
 0xe6d   :  { %4378 = vmatmul.mubr.msk.f32.gmra.mrb[86].mxu1 %vm548_vm5, %v5050_v53  ;;  %4778 = vmatprep.subr.bf16.mxu0 %v5813_v26  ;;  %v5056_v26 = vld [vmem:[%s6951_s3 + $0x100] sm:$0xff] }
 0xe6e   :  { %4380 = vmatprep.mubr.msk.f32.mxu1 %vm5115_vm0, %v6953_v36 }
 0xe6f   :  { %4433 = vmatmul.mubr.msk.f32.gmra.mrb[92].mxu0 %vm548_vm5, %v5048_v50 }
 0xe70   :  { %4435 = vmatprep.mubr.msk.f32.mxu0 %vm5115_vm0, %v6953_v36  ;;  %4780 = vmatpush1.bf16.msra.mxu0 %v5828_v37  ;;  %v5057_v37 = vld [vmem:[%s6946_s9 + $0x58] sm:$0xff] }
 0xe71   :  { %4381 = vmatmul.mubr.msk.f32.gmra.mrb[88].mxu1 %vm548_vm5, %v5051_v62  ;;  %4782 = vmatprep.subr.bf16.mxu0 %v5831_v38  ;;  %v5058_v38 = vld [vmem:[%s6946_s9 + $0x60] sm:$0xff] }
 0xe72   :  { %4383 = vmatprep.mubr.msk.f32.mxu1 %vm5115_vm0, %v6953_v36 }
 0xe73   :  { %4436 = vmatmul.mubr.msk.f32.gmra.mrb[94].mxu0 %vm548_vm5, %v5049_v52 }
 0xe74   :  { %4438 = vmatprep.mubr.msk.f32.mxu0 %vm5115_vm0, %v6953_v36  ;;  %4784 = vmatpush1.bf16.msra.mxu0 %v5840_v42  ;;  %v5059_v42 = vld [vmem:[%s6946_s9 + $0x68] sm:$0xff] }
 0xe75   :  { %4384 = vmatmul.mubr.msk.f32.gmra.mrb[90].mxu1 %vm548_vm5, %v5052_v63  ;;  %4786 = vmatprep.subr.bf16.mxu0 %v5916_v29  ;;  %v5060_v29 = vld [vmem:[%s6946_s9 + $0x70] sm:$0xff] }
 0xe76   :  { %4386 = vmatprep.mubr.msk.f32.mxu1 %vm5115_vm0, %v6953_v36 }
 0xe77   :  { %4439 = vmatmul.mubr.msk.f32.gmra.mrb[96].mxu0 %vm548_vm5, %v5050_v53 }
 0xe78   :  { %4441 = vmatprep.mubr.msk.f32.mxu0 %vm5115_vm0, %v6953_v36  ;;  %4788 = vmatpush1.bf16.msra.mxu0 %v5924_v40  ;;  %v5061_v40 = vld [vmem:[%s6946_s9 + $0x78] sm:$0xff] }
 0xe79   :  { %4387 = vmatmul.mubr.msk.f32.gmra.mrb[92].mxu1 %vm548_vm5, %v5053_v8  ;;  %4790 = vmatprep.subr.bf16.mxu0 %v5934_v49  ;;  %v5062_v49 = vld [vmem:[%s6946_s9 + $0x80] sm:$0xff] }
 0xe7a   :  { %4389 = vmatprep.mubr.msk.f32.mxu1 %vm5115_vm0, %v6953_v36 }
 0xe7b   :  { %4442 = vmatmul.mubr.msk.f32.gmra.mrb[98].mxu0 %vm548_vm5, %v5051_v62  ;;  %v6492_v62 = vld [vmem:[%s6947_s2 + $0x40] sm:$0xff] }
 0xe7c   :  { %4444 = vmatprep.mubr.msk.f32.mxu0 %vm5115_vm0, %v6953_v36  ;;  %4792 = vmatpush1.bf16.msra.mxu0 %v5942_v51 }
 0xe7d   :  { %4390 = vmatmul.mubr.msk.f32.gmra.mrb[94].mxu1 %vm548_vm5, %v5054_v9  ;;  %2748 = vmatprep.subr.mxu0 %v5055_v21 }
 0xe7e   :  { %4392 = vmatprep.mubr.msk.f32.mxu1 %vm5115_vm0, %v6953_v36 }
 0xe7f   :  { %4445 = vmatmul.mubr.msk.f32.gmra.mrb[100].mxu0 %vm548_vm5, %v5052_v63 }
 0xe80   :  { %4447 = vmatprep.mubr.msk.f32.mxu0 %vm5115_vm0, %v6953_v36  ;;  %2749 = vmatpush1.msra.mxu0 %v5056_v26 }
 0xe81   :  { %4393 = vmatmul.mubr.msk.f32.gmra.mrb[96].mxu1 %vm548_vm5, %v5057_v37  ;;  %4817 = vmatprep.subr.bf16.mxu0 %v5114_v3 }
 0xe82   :  { %4395 = vmatprep.mubr.msk.f32.mxu1 %vm5115_vm0, %v6953_v36 }
 0xe83   :  { %4448 = vmatmul.mubr.msk.f32.gmra.mrb[102].mxu0 %vm548_vm5, %v5053_v8  ;;  %v6498_v8 = vld [vmem:[%s6947_s2 + $0x48] sm:$0xff] }
 0xe84   :  { %4450 = vmatprep.mubr.msk.f32.mxu0 %vm5115_vm0, %v6953_v36 }
 0xe85   :  { %4396 = vmatmul.mubr.msk.f32.gmra.mrb[98].mxu1 %vm548_vm5, %v5058_v38 }
 0xe86   :  { %4398 = vmatprep.mubr.msk.f32.mxu1 %vm5115_vm0, %v6953_v36 }
 0xe87   :  { %4451 = vmatmul.mubr.msk.f32.gmra.mrb[104].mxu0 %vm548_vm5, %v5054_v9 }
 0xe88   :  { %4453 = vmatprep.mubr.msk.f32.mxu0 %vm5115_vm0, %v6953_v36 }
 0xe89   :  { %4399 = vmatmul.mubr.msk.f32.gmra.mrb[100].mxu1 %vm548_vm5, %v5059_v42 }
 0xe8a   :  { %4401 = vmatprep.mubr.msk.f32.mxu1 %vm5115_vm0, %v6953_v36 }
 0xe8b   :  { %4454 = vmatmul.mubr.msk.f32.gmra.mrb[106].mxu0 %vm548_vm5, %v5057_v37 }
 0xe8c   :  { %4456 = vmatprep.mubr.msk.f32.mxu0 %vm5115_vm0, %v6953_v36 }
 0xe8d   :  { %4402 = vmatmul.mubr.msk.f32.gmra.mrb[102].mxu1 %vm548_vm5, %v5060_v29 }
 0xe8e   :  { %4404 = vmatprep.mubr.msk.f32.mxu1 %vm5115_vm0, %v6953_v36 }
 0xe8f   :  { %4457 = vmatmul.mubr.msk.f32.gmra.mrb[108].mxu0 %vm548_vm5, %v5058_v38 }
 0xe90   :  { %4459 = vmatprep.mubr.msk.f32.mxu0 %vm5115_vm0, %v6953_v36 }
 0xe91   :  { %4405 = vmatmul.mubr.msk.f32.gmra.mrb[104].mxu1 %vm548_vm5, %v5061_v40 }
 0xe92   :  { %4407 = vmatprep.mubr.msk.f32.mxu1 %vm5115_vm0, %v6953_v36 }
 0xe93   :  { %4460 = vmatmul.mubr.msk.f32.gmra.mrb[110].mxu0 %vm548_vm5, %v5059_v42 }
 0xe94   :  { %4462 = vmatprep.mubr.msk.f32.mxu0 %vm5115_vm0, %v6953_v36 }
 0xe95   :  { %4408 = vmatmul.mubr.msk.f32.gmra.mrb[106].mxu1 %vm548_vm5, %v5062_v49 }
 0xe96   :  { %2619 = vmatprep.mubr.f32.mxu1 %v6953_v36 }
 0xe97   :  { %4463 = vmatmul.mubr.msk.f32.gmra.mrb[112].mxu0 %vm548_vm5, %v5060_v29  ;;  %v6507_v29 = vld [vmem:[%s6947_s2 + $0x50] sm:$0xff] }
 0xe98   :  { %4465 = vmatprep.mubr.msk.f32.mxu0 %vm5115_vm0, %v6953_v36 }
 0xe9b   :  { %4466 = vmatmul.mubr.msk.f32.gmra.mrb[114].mxu0 %vm548_vm5, %v5061_v40 }
 0xe9c   :  { %4468 = vmatprep.mubr.msk.f32.mxu0 %vm5115_vm0, %v6953_v36 }
 0xe9f   :  { %4469 = vmatmul.mubr.msk.f32.gmra.mrb[116].mxu0 %vm548_vm5, %v5062_v49  ;;  %v6513_v49 = vld [vmem:[%s6947_s2 + $0x58] sm:$0xff] }
 0xf28   :  { %v2210_v51 = vpop.f32.mrb[74].mxu1 }
 0xf29   :  { %v4361_v33 = vpop.f32.mrb[75].mxu1  ;;  %v2294_v5 = vmul.f32 %v6432_v10, %v2210_v51 }
 0xf2c   :  { %v2215_v18 = vpop.f32.mrb[76].mxu1 }
 0xf2d   :  { %v2295_v48 = vmul.f32 %v6438_v34, %v2215_v18  ;;  %v4364_v39 = vpop.f32.mrb[77].mxu1 }
 0xf2f   :  { %v4730_v17 = vpack.c.bf16 %v2295_v48, %v2294_v5 }
 0xf30   :  { %v2220_v0 = vpop.f32.mrb[78].mxu1 }
 0xf31   :  { %v4367_v12 = vpop.f32.mrb[79].mxu1  ;;  %4732 = vmatpush1.bf16.xpose.msk.msra.mxu1 %vm5602_vm6, %v4730_v17  ;;  %v2296_v14 = vmul.f32 %v6447_v20, %v2220_v0  ;;  %v6522_v17 = vld [vmem:[%s6947_s2 + $0x60] sm:$0xff] }
 0xf32   :  { %4733 = vmatprep.subr.bf16.mxu1 %v5114_v3  ;;  %v6528_v12 = vld [vmem:[%s6947_s2 + $0x68] sm:$0xff] }
 0xf34   :  { %v2225_v60 = vpop.f32.mrb[80].mxu1 }
 0xf35   :  { %v2297_v41 = vmul.f32 %v6453_v57, %v2225_v60  ;;  %v4370_v44 = vpop.f32.mrb[81].mxu1 }
 0xf37   :  { %v4734_v55 = vpack.c.bf16 %v2297_v41, %v2296_v14 }
 0xf38   :  { %v2230_v1 = vpop.f32.mrb[82].mxu1 }
 0xf39   :  { %v4373_v15 = vpop.f32.mrb[83].mxu1  ;;  %4736 = vmatpush1.bf16.xpose.msk.msra.mxu1 %vm5602_vm6, %v4734_v55  ;;  %v2298_v27 = vmul.f32 %v6462_v35, %v2230_v1 }
 0xf3a   :  { %4737 = vmatprep.subr.bf16.mxu1 %v5114_v3  ;;  %v6537_v15 = vld [vmem:[%s6947_s2 + $0x70] sm:$0xff] }
 0xf3c   :  { %v2235_v22 = vpop.f32.mrb[84].mxu1 }
 0xf3d   :  { %v2299_v25 = vmul.f32 %v6468_v19, %v2235_v22  ;;  %v4376_v2 = vpop.f32.mrb[85].mxu1 }
 0xf3f   :  { %v4738_v43 = vpack.c.bf16 %v2299_v25, %v2298_v27  ;;  %v6543_v27 = vld [vmem:[%s6947_s2 + $0x78] sm:$0xff] }
 0xf40   :  { %v2240_v32 = vpop.f32.mrb[86].mxu1 }
 0xf41   :  { %v4379_v28 = vpop.f32.mrb[87].mxu1  ;;  %4740 = vmatpush1.bf16.xpose.msk.msra.mxu1 %vm5602_vm6, %v4738_v43  ;;  %v2300_v13 = vmul.f32 %v6477_v58, %v2240_v32 }
 0xf42   :  { %4741 = vmatprep.subr.bf16.mxu1 %v5114_v3 }
 0xf44   :  { %v2245_v61 = vpop.f32.mrb[88].mxu1 }
 0xf45   :  { %v2301_v31 = vmul.f32 %v6483_v59, %v2245_v61  ;;  %v4382_v47 = vpop.f32.mrb[89].mxu1  ;;  %v6552_v61 = vld [vmem:[%s6947_s2 + $0x80] sm:$0xff] }
 0xf47   :  { %v4742_v4 = vpack.c.bf16 %v2301_v31, %v2300_v13 }
 0xf48   :  { %v2250_v50 = vpop.f32.mrb[90].mxu1 }
 0xf49   :  { %v4385_v52 = vpop.f32.mrb[91].mxu1  ;;  %4744 = vmatpush1.bf16.xpose.msk.msra.mxu1 %vm5602_vm6, %v4742_v4  ;;  %v2302_v63 = vmul.f32 %v6492_v62, %v2250_v50 }
 0xf4a   :  { %4745 = vmatprep.subr.bf16.mxu1 %v5114_v3  ;;  %v5082_v52 = vld [vmem:[%s6952_s1 + $0x18] sm:$0xff] }
 0xf4c   :  { %v2255_v53 = vpop.f32.mrb[92].mxu1 }
 0xf4d   :  { %v2303_v9 = vmul.f32 %v6498_v8, %v2255_v53  ;;  %v4388_v21 = vpop.f32.mrb[93].mxu1 }
 0xf4f   :  { %v4746_v26 = vpack.c.bf16 %v2303_v9, %v2302_v63  ;;  %v5083_v63 = vld [vmem:[%s6952_s1 + $0x10] sm:$0xff] }
 0xf50   :  { %v2260_v37 = vpop.f32.mrb[94].mxu1 }
 0xf51   :  { %v4391_v38 = vpop.f32.mrb[95].mxu1  ;;  %4748 = vmatpush1.bf16.xpose.msk.msra.mxu1 %vm5602_vm6, %v4746_v26  ;;  %v2304_v40 = vmul.f32 %v6507_v29, %v2260_v37 }
 0xf52   :  { %4749 = vmatprep.subr.bf16.mxu1 %v5114_v3 }
 0xf54   :  { %v2265_v42 = vpop.f32.mrb[96].mxu1 }
 0xf55   :  { %v2305_v51 = vmul.f32 %v6513_v49, %v2265_v42  ;;  %v4394_v33 = vpop.f32.mrb[97].mxu1  ;;  %v5084_v42 = vld [vmem:[%s6952_s1 + $0x28] sm:$0xff] }
 0xf57   :  { %v4750_v18 = vpack.c.bf16 %v2305_v51, %v2304_v40  ;;  %v5085_v51 = vld [vmem:[%s6952_s1 + $0x20] sm:$0xff] }
 0xf58   :  { %v2270_v5 = vpop.f32.mrb[98].mxu1 }
 0xf59   :  { %v4397_v48 = vpop.f32.mrb[99].mxu1  ;;  %4752 = vmatpush1.bf16.xpose.msk.msra.mxu1 %vm5602_vm6, %v4750_v18  ;;  %v2306_v0 = vmul.f32 %v6522_v17, %v2270_v5 }
 0xf5a   :  { %4753 = vmatprep.subr.bf16.mxu1 %v5114_v3 }
 0xf5c   :  { %v2275_v39 = vpop.f32.mrb[100].mxu1 }
 0xf5d   :  { %v2307_v60 = vmul.f32 %v6528_v12, %v2275_v39  ;;  %v4400_v14 = vpop.f32.mrb[101].mxu1 }
 0xf5e   :  { %v5087_v14 = vld [vmem:[%s6952_s1 + $0x30] sm:$0xff] }
 0xf5f   :  { %v4754_v41 = vpack.c.bf16 %v2307_v60, %v2306_v0  ;;  %v5086_v0 = vld [vmem:[%s6952_s1 + $0x38] sm:$0xff] }
 0xf60   :  { %v2280_v44 = vpop.f32.mrb[102].mxu1 }
 0xf61   :  { %v4403_v55 = vpop.f32.mrb[103].mxu1  ;;  %4756 = vmatpush1.bf16.xpose.msk.msra.mxu1 %vm5602_vm6, %v4754_v41  ;;  %v2308_v22 = vmul.f32 %v6537_v15, %v2280_v44 }
 0xf62   :  { %4757 = vmatprep.subr.bf16.mxu1 %v5114_v3 }
 0xf64   :  { %v2285_v1 = vpop.f32.mrb[104].mxu1 }
 0xf65   :  { %v2309_v25 = vmul.f32 %v6543_v27, %v2285_v1  ;;  %v4406_v2 = vpop.f32.mrb[105].mxu1  ;;  %v5088_v1 = vld [vmem:[%s6952_s1 + $0x40] sm:$0x3] }
 0xf67   :  { %v4758_v43 = vpack.c.bf16 %v2309_v25, %v2308_v22 }
 0xf68   :  { %v2290_v32 = vpop.f32.mrb[106].mxu1 }
 0xf69   :  { %4760 = vmatpush1.bf16.xpose.msk.msra.mxu1 %vm5602_vm6, %v4758_v43  ;;  %v4409_v28 = vpop.f32.mrb[107].mxu1  ;;  %v2310_v13 = vmul.f32 %v6552_v61, %v2290_v32  ;;  %v5089_v43 = vld [vmem:[%s6952_s1 + $0x48] sm:$0x3] }
 0xf6a   :  { %2587 = vmatprep.subr.mxu1 %v6953_v36 }
 0xf71   :  { %3824 = vmatpush1.xpose.msk.msra.mxu1 %vm323_vm2, %v2310_v13 }
 0xf72   :  { %4793 = vmatprep.subr.bf16.mxu1 %v5114_v3 }
 0xf74   :  { %3825 = vmatmul.mubr.msk.f32.vlgmr.msra.gmra.mrb[108].mxu1 %vm323_vm2, %v6227_v24 }
 0xf75   :  { %2625 = vmatprep.mubr.f32.mxu1 %v6953_v36 }
 0xf78   :  { %3826 = vmatmul.mubr.msk.f32.gmra.mrb[110].mxu1 %vm323_vm2, %v6229_v23  ;;  %v5080_v23 = vld [vmem:[%s6952_s1 + $0x8] sm:$0xff] }
 0xf79   :  { %2631 = vmatprep.mubr.f32.mxu1 %v6953_v36 }
 0xf7c   :  { %3827 = vmatmul.mubr.msk.f32.gmra.mrb[112].mxu1 %vm323_vm2, %v6234_v46  ;;  %v5081_v46 = vld [vmem:[%s6952_s1] sm:$0xff] }
 0xf7d   :  { %2637 = vmatprep.mubr.f32.mxu1 %v6953_v36 }
 0xf80   :  { %3828 = vmatmul.mubr.msk.f32.gmra.mrb[114].mxu1 %vm323_vm2, %v6236_v7 }
 0xf81   :  { %2643 = vmatprep.mubr.f32.mxu1 %v6953_v36 }
 0xf84   :  { %3829 = vmatmul.mubr.msk.f32.gmra.mrb[116].mxu1 %vm323_vm2, %v6240_v16 }
0x1047   :  { %v2621_v24 = vpop.f32.mrb[108].mxu1 }
0x1048   :  { %v2623_v11 = vpop.f32.mrb[109].mxu1  ;;  %v6579_v47 = vadd.f32 %v5081_v46, %v2621_v24 }
0x1049   :  { %v6574_v31 = vadd.f32 %v5080_v23, %v2623_v11  ;;  %v2393_v11 = vpop.f32.mrb[84].mxu0 }
0x104a   :  { %v2477_v23 = vmul.f32 %v6432_v10, %v2393_v11  ;;  %v4422_v46 = vpop.f32.mrb[85].mxu0 }
0x104b   :  { %v2627_v7 = vpop.f32.mrb[110].mxu1  ;;  %v2650_v4 = vsel %vm1119_vm7, %v6574_v31, -inf }
0x104c   :  { %v2629_v50 = vpop.f32.mrb[111].mxu1  ;;  %v2651_v16 = vmax.f32 %v6579_v47, %v2650_v4  ;;  %v6592_v9 = vadd.f32 %v5083_v63, %v2627_v7  ;;  %v2398_v7 = vpop.f32.mrb[86].mxu0 }
0x104d   :  { %v6587_v53 = vadd.f32 %v5082_v52, %v2629_v50  ;;  %v2478_v4 = vmul.f32 %v6438_v34, %v2398_v7  ;;  %v4425_v50 = vpop.f32.mrb[87].mxu0 }
0x104e   :  { %2652 = vmax.xlane.f32.xlu0 %v2651_v16  ;;  %v2403_v16 = vpop.f32.mrb[88].mxu0 }
0x104f   :  { %v2633_v21 = vpop.f32.mrb[112].mxu1  ;;  %v2654_v26 = vsel %vm1119_vm7, %v6587_v53, -inf  ;;  %v4794_v52 = vpack.c.bf16 %v2478_v4, %v2477_v23  ;;  %v2479_v63 = vmul.f32 %v6447_v20, %v2403_v16 }
0x1050   :  { %v2635_v37 = vpop.f32.mrb[113].mxu1  ;;  %v2655_v38 = vmax.f32 %v6592_v9, %v2654_v26  ;;  %v6605_v33 = vadd.f32 %v5085_v51, %v2633_v21  ;;  %v4428_v21 = vpop.f32.mrb[89].mxu0 }
0x1051   :  { %v6600_v40 = vadd.f32 %v5084_v42, %v2635_v37  ;;  %v2408_v26 = vpop.f32.mrb[90].mxu0  ;;  %4795 = vmatpush1.bf16.msra.mxu1 %v4794_v52 }
0x1052   :  { %2656 = vmax.xlane.f32.xlu1 %v2655_v38  ;;  %v2480_v37 = vmul.f32 %v6453_v57, %v2408_v26  ;;  %v4431_v38 = vpop.f32.mrb[91].mxu0  ;;  %4796 = vmatprep.subr.bf16.mxu1 %v5114_v3 }
0x1053   :  { %v2639_v18 = vpop.f32.mrb[114].mxu1  ;;  %v2658_v5 = vsel %vm1119_vm7, %v6600_v40, -inf  ;;  %v2413_v42 = vpop.f32.mrb[92].mxu0 }
0x1054   :  { %v2641_v48 = vpop.f32.mrb[115].mxu1  ;;  %v2659_v39 = vmax.f32 %v6605_v33, %v2658_v5  ;;  %v6618_v41 = vadd.f32 %v5087_v14, %v2639_v18  ;;  %v4797_v51 = vpack.c.bf16 %v2480_v37, %v2479_v63  ;;  %v2481_v10 = vmul.f32 %v6462_v35, %v2413_v42  ;;  %v4434_v18 = vpop.f32.mrb[93].mxu0 }
0x1055   :  { %v6613_v60 = vadd.f32 %v5086_v0, %v2641_v48  ;;  %v2418_v5 = vpop.f32.mrb[94].mxu0 }
0x1056   :  { %2660 = vmax.xlane.f32.xlu0 %v2659_v39  ;;  %4798 = vmatpush1.bf16.msra.mxu1 %v4797_v51  ;;  %v2482_v34 = vmul.f32 %v6468_v19, %v2418_v5  ;;  %v4437_v48 = vpop.f32.mrb[95].mxu0 }
0x1057   :  { %v2645_v44 = vpop.f32.mrb[116].mxu1  ;;  %v2662_v55 = vsel %vm1119_vm7, %v6613_v60, -inf  ;;  %4799 = vmatprep.subr.bf16.mxu1 %v5114_v3  ;;  %v2423_v20 = vpop.f32.mrb[96].mxu0 }
0x1058   :  { %v6625_v22 = vadd.f32 %v5088_v1, %v2645_v44  ;;  %v2647_v25 = vpop.f32.mrb[117].mxu1  ;;  %v2663_v2 = vmax.f32 %v6618_v41, %v2662_v55  ;;  %v4800_v39 = vpack.c.bf16 %v2482_v34, %v2481_v10  ;;  %v2483_v0 = vmul.f32 %v6477_v58, %v2423_v20  ;;  %v4440_v57 = vpop.f32.mrb[97].mxu0 }
0x1059   :  { %v6631_v32 = vadd.f32 %v5089_v43, %v2647_v25  ;;  %v2428_v14 = vpop.f32.mrb[98].mxu0 }
0x105a   :  { %2664 = vmax.xlane.f32.xlu0 %v2663_v2  ;;  %v2666_v28 = vsel %vm600_vm4, %v6625_v22, -inf  ;;  %4801 = vmatpush1.bf16.msra.mxu1 %v4800_v39  ;;  %v2484_v44 = vmul.f32 %v6483_v59, %v2428_v14  ;;  %v4443_v55 = vpop.f32.mrb[99].mxu0 }
0x105b   :  { %v2667_v13 = vsel %vm1137_vm8, %v6631_v32, -inf  ;;  %4802 = vmatprep.subr.bf16.mxu1 %v5114_v3  ;;  %v2433_v35 = vpop.f32.mrb[100].mxu0 }
0x105c   :  { %v2668_v24 = vmax.f32 %v2666_v28, %v2667_v13  ;;  %v4803_v1 = vpack.c.bf16 %v2484_v44, %v2483_v0  ;;  %v2485_v25 = vmul.f32 %v6492_v62, %v2433_v35  ;;  %v4446_v19 = vpop.f32.mrb[101].mxu0 }
0x105d   :  { %v2438_v2 = vpop.f32.mrb[102].mxu0 }
0x105e   :  { %2669 = vmax.xlane.f32.xlu1 %v2668_v24  ;;  %4804 = vmatpush1.bf16.msra.mxu1 %v4803_v1  ;;  %v2486_v43 = vmul.f32 %v6498_v8, %v2438_v2  ;;  %v4449_v28 = vpop.f32.mrb[103].mxu0 }
0x105f   :  { %4805 = vmatprep.subr.bf16.mxu1 %v5114_v3  ;;  %v2443_v58 = vpop.f32.mrb[104].mxu0 }
0x1060   :  { %v4806_v13 = vpack.c.bf16 %v2486_v43, %v2485_v25  ;;  %v2487_v24 = vmul.f32 %v6507_v29, %v2443_v58  ;;  %v4452_v59 = vpop.f32.mrb[105].mxu0 }
0x1061   :  { %v2448_v11 = vpop.f32.mrb[106].mxu0  ;;  %v3840_v59 = vld [vmem:[%s6901_s14 + $0x20] sm:$0xff] }
0x1062   :  { %4807 = vmatpush1.bf16.msra.mxu1 %v4806_v13  ;;  %v2488_v23 = vmul.f32 %v6513_v49, %v2448_v11  ;;  %v4455_v46 = vpop.f32.mrb[107].mxu0  ;;  %v3841_v11 = vld [vmem:[%s6901_s14 + $0x28] sm:$0xff] }
0x1063   :  { %4808 = vmatprep.subr.bf16.mxu1 %v5114_v3  ;;  %v2453_v62 = vpop.f32.mrb[108].mxu0  ;;  %v4818_v46 = vpack.c.bf16 %v3841_v11, %v3840_v59 }
0x1064   :  { %v4809_v7 = vpack.c.bf16 %v2488_v23, %v2487_v24  ;;  %v2489_v4 = vmul.f32 %v6522_v17, %v2453_v62  ;;  %v4458_v8 = vpop.f32.mrb[109].mxu0  ;;  %v3842_v23 = vld [vmem:[%s6901_s14 + $0x30] sm:$0xff]  ;;  %v3843_v62 = vld [vmem:[%s6901_s14 + $0x38] sm:$0xff] }
0x1065   :  { %v2458_v50 = vpop.f32.mrb[110].mxu0 }
0x1066   :  { %4810 = vmatpush1.bf16.msra.mxu1 %v4809_v7  ;;  %v2490_v16 = vmul.f32 %v6528_v12, %v2458_v50  ;;  %v4461_v52 = vpop.f32.mrb[111].mxu0  ;;  %v4821_v7 = vpack.c.bf16 %v3843_v62, %v3842_v23 }
0x1067   :  { %4811 = vmatprep.subr.bf16.mxu1 %v5114_v3  ;;  %v2463_v29 = vpop.f32.mrb[112].mxu0 }
0x1068   :  { %v4812_v63 = vpack.c.bf16 %v2490_v16, %v2489_v4  ;;  %v2491_v21 = vmul.f32 %v6537_v15, %v2463_v29  ;;  %v4464_v49 = vpop.f32.mrb[113].mxu0 }
0x1069   :  { %v2468_v26 = vpop.f32.mrb[114].mxu0 }
0x106a   :  { %4813 = vmatpush1.bf16.msra.mxu1 %v4812_v63  ;;  %v2492_v37 = vmul.f32 %v6543_v27, %v2468_v26  ;;  %v4467_v38 = vpop.f32.mrb[115].mxu0 }
0x106b   :  { %4814 = vmatprep.subr.bf16.mxu1 %v5114_v3  ;;  %v2473_v17 = vpop.f32.mrb[116].mxu0 }
0x106c   :  { %v4815_v42 = vpack.c.bf16 %v2492_v37, %v2491_v21  ;;  %v4470_v51 = vpop.f32.mrb[117].mxu0  ;;  %v2493_v12 = vmul.f32 %v6552_v61, %v2473_v17 }
0x106e   :  { %4816 = vmatpush1.bf16.msra.mxu1 %v4815_v42 }
0x106f   :  { %2878 = vmatprep.subr.mxu1 %v6953_v36 }
0x1072   :  { %2879 = vmatpush1.msra.mxu1 %v2493_v12 }
0x1073   :  { %4829 = vmatprep.subr.bf16.mxu1 %v5114_v3 }
0x10db   :  { %v2653_v15 = vpop.xlane.xlu0 %2652 }
0x10dc   :  { %v2671_v10 = vsub.f32 %v6579_v47, %v2653_v15  ;;  %v2672_v18 = vsub.f32 %v6574_v31, %v2653_v15 }
0x10de   :  { %v2681_v27 = vmul.f32 1.442695, %v2671_v10  ;;  %v2683_v5 = vmul.f32 1.442695, %v2672_v18 }
0x10df   :  { %v2657_v34 = vpop.xlane.xlu1 %2656 }
0x10e0   :  { %4982 = vpow2.f32 %v2681_v27  ;;  %v2673_v48 = vsub.f32 %v6592_v9, %v2657_v34  ;;  %v2674_v20 = vsub.f32 %v6587_v53, %v2657_v34 }
0x10e1   :  { %4984 = vpow2.f32 %v2683_v5 }
0x10e2   :  { %v2685_v61 = vmul.f32 1.442695, %v2673_v48  ;;  %v2687_v39 = vmul.f32 1.442695, %v2674_v20 }
0x10e3   :  { %v2661_v0 = vpop.xlane.xlu0 %2660 }
0x10e4   :  { %4986 = vpow2.f32 %v2685_v61  ;;  %v2675_v57 = vsub.f32 %v6605_v33, %v2661_v0  ;;  %v2676_v14 = vsub.f32 %v6600_v40, %v2661_v0 }
0x10e5   :  { %4988 = vpow2.f32 %v2687_v39 }
0x10e6   :  { %v2689_v47 = vmul.f32 1.442695, %v2675_v57  ;;  %v2691_v31 = vmul.f32 1.442695, %v2676_v14 }
0x10e7   :  { %v2665_v44 = vpop.xlane.xlu0 %2664 }
0x10e8   :  { %4990 = vpow2.f32 %v2689_v47  ;;  %v2677_v55 = vsub.f32 %v6618_v41, %v2665_v44  ;;  %v2678_v9 = vsub.f32 %v6613_v60, %v2665_v44 }
0x10e9   :  { %4992 = vpow2.f32 %v2691_v31 }
0x10ea   :  { %v4983_v53 = vpop.eup %4982  ;;  %v2693_v35 = vmul.f32 1.442695, %v2677_v55  ;;  %v2695_v1 = vmul.f32 1.442695, %v2678_v9 }
0x10eb   :  { %v4985_v25 = vpop.eup %4984  ;;  %v2670_v19 = vpop.xlane.xlu1 %2669 }
0x10ec   :  { %4994 = vpow2.f32 %v2693_v35  ;;  %v2679_v33 = vsub.f32 %v6625_v22, %v2670_v19  ;;  %v2680_v40 = vsub.f32 %v6631_v32, %v2670_v19  ;;  %3830 = vmatprep.mubr.msk.f32.mxu0 %vm1119_vm7, %v4985_v25 }
0x10ed   :  { %4996 = vpow2.f32 %v2695_v1  ;;  %2781 = vmatmul.mubr.f32.vlgmr.msra.gmra.mrb[118].mxu0 %v4983_v53 }
0x10ee   :  { %v4987_v2 = vpop.eup %4986  ;;  %v2697_v43 = vmul.f32 1.442695, %v2679_v33  ;;  %v2699_v41 = vmul.f32 1.442695, %v2680_v40  ;;  %4819 = vmatpush3.bf16.msra.mxu0 %v4818_v46 }
0x10ef   :  { %v4989_v28 = vpop.eup %4988  ;;  %4820 = vmatprep.subr.bf16.mxu0 %v5114_v3 }
0x10f0   :  { %4998 = vpow2.f32 %v2697_v43  ;;  %3831 = vmatprep.mubr.msk.f32.mxu0 %vm1119_vm7, %v4989_v28 }
0x10f1   :  { %5000 = vpow2.f32 %v2699_v41  ;;  %2787 = vmatmul.mubr.f32.gmra.mrb[120].mxu0 %v4987_v2 }
0x10f2   :  { %v4991_v60 = vpop.eup %4990  ;;  %4822 = vmatpush3.bf16.msra.mxu0 %v4821_v7 }
0x10f3   :  { %v4993_v58 = vpop.eup %4992  ;;  %4823 = vmatprep.subr.bf16.mxu0 %v5114_v3 }
0x10f4   :  { %3832 = vmatprep.mubr.msk.f32.mxu0 %vm1119_vm7, %v4993_v58 }
0x10f5   :  { %2793 = vmatmul.mubr.f32.gmra.mrb[122].mxu0 %v4991_v60 }
0x10f6   :  { %v4995_v22 = vpop.eup %4994 }
0x10f7   :  { %v4997_v32 = vpop.eup %4996 }
0x10f8   :  { %3833 = vmatprep.mubr.msk.f32.mxu0 %vm1119_vm7, %v4997_v32 }
0x10f9   :  { %2799 = vmatmul.mubr.f32.gmra.mrb[124].mxu0 %v4995_v22 }
0x10fa   :  { %v4999_v13 = vpop.eup %4998 }
0x10fb   :  { %v5001_v24 = vpop.eup %5000 }
0x10fc   :  { %3834 = vmatprep.mubr.msk.f32.mxu0 %vm1119_vm7, %v5001_v24 }
0x10fd   :  { %2805 = vmatmul.mubr.f32.gmra.mrb[126].mxu0 %v4999_v13 }
0x10fe   :  { %4479 = vmatprep.mubr.msk.f32.mxu0 %vm5115_vm0, %v6953_v36 }
0x11c0   :  { %v2782_v4 = vpop.f32.mrb[118].mxu0 }
0x11c1   :  { %5002 = vrcp.f32 %v2782_v4  ;;  %v2784_v8 = vpop.f32.mrb[119].mxu0 }
0x11c2   :  { %5004 = vrcp.f32 %v2784_v8 }
0x11c4   :  { %v2788_v50 = vpop.f32.mrb[120].mxu0 }
0x11c5   :  { %5006 = vrcp.f32 %v2788_v50  ;;  %v2790_v16 = vpop.f32.mrb[121].mxu0 }
0x11c6   :  { %5008 = vrcp.f32 %v2790_v16 }
0x11c8   :  { %v2794_v52 = vpop.f32.mrb[122].mxu0 }
0x11c9   :  { %5010 = vrcp.f32 %v2794_v52  ;;  %v2796_v29 = vpop.f32.mrb[123].mxu0 }
0x11ca   :  { %5012 = vrcp.f32 %v2796_v29 }
0x11cb   :  { %v5003_v63 = vpop.eup %5002 }
0x11cc   :  { %v5005_v21 = vpop.eup %5004  ;;  %v2800_v49 = vpop.f32.mrb[124].mxu0  ;;  %v2821_v38 = vmul.f32 %v5003_v63, %v4983_v53 }
0x11cd   :  { %5014 = vrcp.f32 %v2800_v49  ;;  %v2802_v26 = vpop.f32.mrb[125].mxu0  ;;  %v2822_v37 = vmul.f32 %v5005_v21, %v4985_v25 }
0x11ce   :  { %5016 = vrcp.f32 %v2802_v26 }
0x11cf   :  { %v5007_v17 = vpop.eup %5006  ;;  %3835 = vmatprep.mubr.msk.f32.mxu1 %vm1119_vm7, %v2822_v37 }
0x11d0   :  { %v5009_v42 = vpop.eup %5008  ;;  %v2806_v51 = vpop.f32.mrb[126].mxu0  ;;  %2911 = vmatmul.mubr.f32.vlgmr.msra.gmra.mrb[118].mxu1 %v2821_v38  ;;  %v2823_v10 = vmul.f32 %v5007_v17, %v4987_v2  ;;  %v3850_v2 = vld [vmem:[%s6902_s15 + $0x1] ss:$0 sm:$0xff]  ;;  %s3647_s15 = sshll.u32 %s5120_s7, 4  ;;  %s3648_s15 = int_to_ptr.vmem [resolvable:$true] %s3647_s15 }
0x11d1   :  { %5018 = vrcp.f32 %v2806_v51  ;;  %v2808_v12 = vpop.f32.mrb[127].mxu0  ;;  %v2824_v15 = vmul.f32 %v5009_v42, %v4989_v28  ;;  %p5095_p1 = scmp.lt.s32.totalorder %s3648_s15, %s3648_s15 }
0x11d2   :  { %5020 = vrcp.f32 %v2808_v12 }
0x11d3   :  { %v5011_v18 = vpop.eup %5010  ;;  %3836 = vmatprep.mubr.msk.f32.mxu1 %vm1119_vm7, %v2824_v15 }
0x11d4   :  { %v5013_v27 = vpop.eup %5012  ;;  %2916 = vmatmul.mubr.f32.gmra.mrb[120].mxu1 %v2823_v10  ;;  %v2825_v34 = vmul.f32 %v5011_v18, %v4991_v60 }
0x11d5   :  { %v2826_v5 = vmul.f32 %v5013_v27, %v4993_v58 }
0x11d7   :  { %v5015_v48 = vpop.eup %5014  ;;  %3837 = vmatprep.mubr.msk.f32.mxu1 %vm1119_vm7, %v2826_v5 }
0x11d8   :  { %v5017_v20 = vpop.eup %5016  ;;  %2921 = vmatmul.mubr.f32.gmra.mrb[122].mxu1 %v2825_v34  ;;  %v2827_v39 = vmul.f32 %v5015_v48, %v4995_v22 }
0x11d9   :  { %v2828_v61 = vmul.f32 %v5017_v20, %v4997_v32 }
0x11db   :  { %v5019_v0 = vpop.eup %5018  ;;  %3838 = vmatprep.mubr.msk.f32.mxu1 %vm1119_vm7, %v2828_v61 }
0x11dc   :  { %v5021_v57 = vpop.eup %5020  ;;  %2926 = vmatmul.mubr.f32.gmra.mrb[124].mxu1 %v2827_v39  ;;  %v2829_v47 = vmul.f32 %v5019_v0, %v4999_v13 }
0x11dd   :  { %v2830_v14 = vmul.f32 %v5021_v57, %v5001_v24 }
0x11df   :  { %3839 = vmatprep.mubr.msk.f32.mxu1 %vm1119_vm7, %v2830_v14 }
0x11e0   :  { %2931 = vmatmul.mubr.f32.gmra.mrb[126].mxu1 %v2829_v47  ;;  %v3855_v47 = vld [vmem:[%s6905_s18 + $0x20] sm:$0xff] }
0x11e1   :  { %4533 = vmatprep.mubr.msk.f32.mxu1 %vm5115_vm0, %v6953_v36 }
0x12a3   :  { %v2912_v31 = vpop.f32.mrb[118].mxu1 }
0x12a4   :  { %v2914_v44 = vpop.f32.mrb[119].mxu1  ;;  %4480 = vmatmul.mubr.msk.f32.vlgmr.msra.gmra.mrb[128].mxu0 %vm323_vm2, %v2912_v31  ;;  %v3856_v31 = vld [vmem:[%s6905_s18 + $0x28] sm:$0xff] }
0x12a5   :  { %4482 = vmatprep.mubr.msk.f32.mxu0 %vm5115_vm0, %v6953_v36  ;;  %v4824_v44 = vpack.c.bf16 %v3856_v31, %v3855_v47 }
0x12a7   :  { %v2917_v55 = vpop.f32.mrb[120].mxu1  ;;  %4825 = vmatpush3.bf16.msra.mxu0 %v4824_v44 }
0x12a8   :  { %v2919_v9 = vpop.f32.mrb[121].mxu1  ;;  %4483 = vmatmul.mubr.msk.f32.gmra.mrb[130].mxu0 %vm323_vm2, %v2917_v55  ;;  %4826 = vmatprep.subr.bf16.mxu0 %v5114_v3  ;;  %v3857_v55 = vld [vmem:[%s6905_s18 + $0x30] sm:$0xff] }
0x12a9   :  { %4485 = vmatprep.mubr.msk.f32.mxu0 %vm5115_vm0, %v6953_v36  ;;  %v3858_v9 = vld [vmem:[%s6905_s18 + $0x38] sm:$0xff]  ;;  %s6956_s18 = sld [smem:[#allocation13_spill]] }
0x12ab   :  { %v2922_v53 = vpop.f32.mrb[122].mxu1 }
0x12ac   :  { %v2924_v35 = vpop.f32.mrb[123].mxu1  ;;  %4486 = vmatmul.mubr.msk.f32.gmra.mrb[132].mxu0 %vm323_vm2, %v2922_v53  ;;  %v4827_v53 = vpack.c.bf16 %v3858_v9, %v3857_v55 }
0x12ad   :  { %4488 = vmatprep.mubr.msk.f32.mxu0 %vm5115_vm0, %v6953_v36 }
0x12ae   :  { %4828 = vmatpush3.bf16.msra.mxu0 %v4827_v53 }
0x12af   :  { %v2927_v1 = vpop.f32.mrb[124].mxu1  ;;  %4841 = vmatprep.subr.bf16.mxu0 %v5114_v3 }
0x12b0   :  { %v2929_v25 = vpop.f32.mrb[125].mxu1  ;;  %4489 = vmatmul.mubr.msk.f32.gmra.mrb[134].mxu0 %vm323_vm2, %v2927_v1 }
0x12b1   :  { %4491 = vmatprep.mubr.msk.f32.mxu0 %vm5115_vm0, %v6953_v36 }
0x12b3   :  { %v2932_v19 = vpop.f32.mrb[126].mxu1 }
0x12b4   :  { %v2934_v33 = vpop.f32.mrb[127].mxu1  ;;  %4492 = vmatmul.mubr.msk.f32.gmra.mrb[136].mxu0 %vm323_vm2, %v2932_v19 }
0x12b5   :  { %4502 = vmatprep.mubr.msk.f32.mxu0 %vm5115_vm0, %v6953_v36 }
0x1377   :  { %v3022_v40 = vpop.f32.mrb[128].mxu0 }
0x1378   :  { %v3046_v43 = vadd.f32 %v3022_v40, %v6155_v45  ;;  %v4481_v41 = vpop.f32.mrb[129].mxu0 }
0x137a   :  { %v6720_v28 = vadd.f32 %v3850_v2, %v3046_v43 }
0x137b   :  { %v3027_v60 = vpop.f32.mrb[130].mxu0 }
0x137c   :  { %v3047_v58 = vadd.f32 %v3027_v60, %v6160_v6  ;;  %v4484_v22 = vpop.f32.mrb[131].mxu0  ;;  %v3068_v32 = vsel %vm323_vm2, %v6720_v28, 0.0 }
0x137d   :  { %3069 = vadd.xlane.f32.xlu0 %v3068_v32  ;;  %v3853_v32 = vld [vmem:[%s6903_s16 + $0x1] ss:$0 sm:$0xff] }
0x137e   :  { %v6725_v13 = vadd.f32 %v3850_v2, %v3047_v58 }
0x137f   :  { %v3032_v24 = vpop.f32.mrb[132].mxu0 }
0x1380   :  { %v3048_v59 = vadd.f32 %v3032_v24, %v6165_v30  ;;  %v4487_v11 = vpop.f32.mrb[133].mxu0  ;;  %v3071_v45 = vsel %vm323_vm2, %v6725_v13, 0.0 }
0x1381   :  { %3072 = vadd.xlane.f32.xlu1 %v3071_v45  ;;  %v3854_v45 = vld [vmem:[%s6904_s17 + $0x1] ss:$0 sm:$0xff] }
0x1382   :  { %v6730_v23 = vadd.f32 %v3850_v2, %v3048_v59 }
0x1383   :  { %v3037_v46 = vpop.f32.mrb[134].mxu0 }
0x1384   :  { %v3049_v6 = vadd.f32 %v3037_v46, %v6170_v56  ;;  %v4490_v62 = vpop.f32.mrb[135].mxu0  ;;  %v3074_v7 = vsel %vm323_vm2, %v6730_v23, 0.0 }
0x1385   :  { %3075 = vadd.xlane.f32.xlu0 %v3074_v7 }
0x1386   :  { %v6735_v4 = vadd.f32 %v3850_v2, %v3049_v6 }
0x1387   :  { %v3042_v8 = vpop.f32.mrb[136].mxu0 }
0x1388   :  { %v3050_v30 = vadd.f32 %v3042_v8, %v6175_v54  ;;  %v4493_v50 = vpop.f32.mrb[137].mxu0  ;;  %v3077_v16 = vsel %vm323_vm2, %v6735_v4, 0.0 }
0x1389   :  { %3078 = vadd.xlane.f32.xlu1 %v3077_v16 }
0x138a   :  { %v6740_v52 = vadd.f32 %v3850_v2, %v3050_v30 }
0x138c   :  { %v3080_v56 = vsel %vm336_vm3, %v6740_v52, 0.0 }
0x138d   :  { %3081 = vadd.xlane.f32.xlu0 %v3080_v56 }
0x140a   :  { %v3070_v29 = vpop.xlane.xlu0 %3069 }
0x140b   :  { %v3083_v63 = vmul.f32 0.03125, %v3070_v29 }
0x140d   :  { %v3088_v21 = vsub.f32 %v6720_v28, %v3083_v63 }
0x140e   :  { %v3073_v49 = vpop.xlane.xlu1 %3072 }
0x140f   :  { %v3084_v26 = vmul.f32 0.03125, %v3073_v49  ;;  %v3093_v37 = vmul.f32 %v3088_v21, %v3088_v21 }
0x1411   :  { %v3089_v54 = vsub.f32 %v6725_v13, %v3084_v26  ;;  %v3098_v38 = vsel %vm323_vm2, %v3093_v37, 0.0 }
0x1412   :  { %v3076_v17 = vpop.xlane.xlu0 %3075  ;;  %3099 = vadd.xlane.f32.xlu1 %v3098_v38 }
0x1413   :  { %v3085_v42 = vmul.f32 0.03125, %v3076_v17  ;;  %v3094_v51 = vmul.f32 %v3089_v54, %v3089_v54 }
0x1415   :  { %v3090_v12 = vsub.f32 %v6730_v23, %v3085_v42  ;;  %v3101_v15 = vsel %vm323_vm2, %v3094_v51, 0.0 }
0x1416   :  { %v3079_v10 = vpop.xlane.xlu1 %3078  ;;  %3102 = vadd.xlane.f32.xlu0 %v3101_v15  ;;  %v3867_v15 = vld [vmem:[%s6907_s20 + $0x48] sm:$0xff] }
0x1417   :  { %v3086_v18 = vmul.f32 0.03125, %v3079_v10  ;;  %v3095_v27 = vmul.f32 %v3090_v12, %v3090_v12 }
0x1419   :  { %v3091_v5 = vsub.f32 %v6735_v4, %v3086_v18  ;;  %v3104_v34 = vsel %vm323_vm2, %v3095_v27, 0.0  ;;  %v3868_v18 = vld [vmem:[%s6907_s20 + $0x50] sm:$0xff]  ;;  %v3869_v27 = vld [vmem:[%s6907_s20 + $0x58] sm:$0xff] }
0x141a   :  { %3105 = vadd.xlane.f32.xlu1 %v3104_v34  ;;  %v3082_v48 = vpop.xlane.xlu0 %3081  ;;  %v3870_v34 = vld [vmem:[%s6907_s20 + $0x60] sm:$0xff] }
0x141b   :  { %v3087_v20 = vmul.f32 0.03125, %v3082_v48  ;;  %v3096_v61 = vmul.f32 %v3091_v5, %v3091_v5  ;;  %v3871_v48 = vld [vmem:[%s6907_s20 + $0x68] sm:$0xff] }
0x141d   :  { %v3092_v39 = vsub.f32 %v6740_v52, %v3087_v20  ;;  %v3107_v0 = vsel %vm323_vm2, %v3096_v61, 0.0  ;;  %v4836_v20 = vpack.c.bf16 %v3871_v48, %v3870_v34  ;;  %v3872_v61 = vld [vmem:[%s6907_s20 + $0x70] sm:$0xff] }
0x141e   :  { %3108 = vadd.xlane.f32.xlu0 %v3107_v0 }
0x141f   :  { %v3097_v57 = vmul.f32 %v3092_v39, %v3092_v39 }
0x1421   :  { %v3110_v14 = vsel %vm336_vm3, %v3097_v57, 0.0  ;;  %v3860_v57 = vld [vmem:[%s6906_s19 + $0x1] ss:$0 sm:$0xff] }
0x1422   :  { %3111 = vadd.xlane.f32.xlu1 %v3110_v14 }
0x149f   :  { %v3100_v35 = vpop.xlane.xlu1 %3099 }
0x14a0   :  { %v3113_v1 = vmul.f32 0.03125, %v3100_v35 }
0x14a2   :  { %v3118_v25 = vadd.f32 1e-05, %v3113_v1 }
0x14a3   :  { %v3103_v19 = vpop.xlane.xlu0 %3102 }
0x14a4   :  { %5022 = vrsqrt.f32 %v3118_v25  ;;  %v3114_v33 = vmul.f32 0.03125, %v3103_v19 }
0x14a6   :  { %v3119_v40 = vadd.f32 1e-05, %v3114_v33 }
0x14a7   :  { %v3106_v2 = vpop.xlane.xlu1 %3105 }
0x14a8   :  { %5024 = vrsqrt.f32 %v3119_v40  ;;  %v3115_v43 = vmul.f32 0.03125, %v3106_v2 }
0x14aa   :  { %v3120_v41 = vadd.f32 1e-05, %v3115_v43 }
0x14ab   :  { %v3109_v60 = vpop.xlane.xlu0 %3108 }
0x14ac   :  { %5026 = vrsqrt.f32 %v3120_v41  ;;  %v3116_v58 = vmul.f32 0.03125, %v3109_v60 }
0x14ae   :  { %v5023_v22 = vpop.eup %5022  ;;  %v3121_v24 = vadd.f32 1e-05, %v3116_v58 }
0x14af   :  { %v3128_v59 = vmul.f32 %v5023_v22, %v3088_v21  ;;  %v3112_v11 = vpop.xlane.xlu1 %3111 }
0x14b0   :  { %5028 = vrsqrt.f32 %v3121_v24  ;;  %v3117_v46 = vmul.f32 0.03125, %v3112_v11 }
0x14b1   :  { %v3139_v6 = vmul.f32 %v3853_v32, %v3128_v59 }
0x14b2   :  { %v5025_v62 = vpop.eup %5024  ;;  %v3122_v7 = vadd.f32 1e-05, %v3117_v46 }
0x14b3   :  { %v3150_v8 = vadd.f32 %v3854_v45, %v3139_v6  ;;  %v3129_v30 = vmul.f32 %v5025_v62, %v3089_v54 }
0x14b4   :  { %5030 = vrsqrt.f32 %v3122_v7 }
0x14b5   :  { %4503 = vmatmul.mubr.msk.f32.vlgmr.msra.gmra.mrb[138].mxu0 %vm323_vm2, %v3150_v8  ;;  %v3140_v50 = vmul.f32 %v3853_v32, %v3129_v30 }
0x14b6   :  { %v5027_v16 = vpop.eup %5026  ;;  %4505 = vmatprep.mubr.msk.f32.mxu0 %vm5115_vm0, %v6953_v36 }
0x14b7   :  { %v3151_v56 = vadd.f32 %v3854_v45, %v3140_v50  ;;  %v3130_v29 = vmul.f32 %v5027_v16, %v3090_v12  ;;  %v3866_v12 = vld [vmem:[%s6907_s20 + $0x40] sm:$0xff] }
0x14b8   :  { %v4830_v10 = vpack.c.bf16 %v3867_v15, %v3866_v12 }
0x14b9   :  { %4506 = vmatmul.mubr.msk.f32.gmra.mrb[140].mxu0 %vm323_vm2, %v3151_v56  ;;  %v3141_v63 = vmul.f32 %v3853_v32, %v3130_v29 }
0x14ba   :  { %v5029_v21 = vpop.eup %5028  ;;  %4508 = vmatprep.mubr.msk.f32.mxu0 %vm5115_vm0, %v6953_v36  ;;  %4831 = vmatpush3.bf16.msra.mxu1 %v4830_v10 }
0x14bb   :  { %v3152_v49 = vadd.f32 %v3854_v45, %v3141_v63  ;;  %v3131_v26 = vmul.f32 %v5029_v21, %v3091_v5  ;;  %4832 = vmatprep.subr.bf16.mxu1 %v5114_v3  ;;  %v4833_v5 = vpack.c.bf16 %v3869_v27, %v3868_v18 }
0x14bd   :  { %4509 = vmatmul.mubr.msk.f32.gmra.mrb[142].mxu0 %vm323_vm2, %v3152_v49  ;;  %v3142_v37 = vmul.f32 %v3853_v32, %v3131_v26 }
0x14be   :  { %v5031_v54 = vpop.eup %5030  ;;  %4511 = vmatprep.mubr.msk.f32.mxu0 %vm5115_vm0, %v6953_v36  ;;  %4834 = vmatpush3.bf16.msra.mxu1 %v4833_v5 }
0x14bf   :  { %v3153_v38 = vadd.f32 %v3854_v45, %v3142_v37  ;;  %v3132_v17 = vmul.f32 %v5031_v54, %v3092_v39  ;;  %4835 = vmatprep.subr.bf16.mxu1 %v5114_v3  ;;  %v3873_v39 = vld [vmem:[%s6907_s20 + $0x78] sm:$0xff] }
0x14c0   :  { %v4839_v0 = vpack.c.bf16 %v3873_v39, %v3872_v61 }
0x14c1   :  { %4512 = vmatmul.mubr.msk.f32.gmra.mrb[144].mxu0 %vm323_vm2, %v3153_v38  ;;  %v3143_v42 = vmul.f32 %v3853_v32, %v3132_v17 }
0x14c2   :  { %4514 = vmatprep.mubr.msk.f32.mxu0 %vm5115_vm0, %v6953_v36  ;;  %4837 = vmatpush3.bf16.msra.mxu1 %v4836_v20 }
0x14c3   :  { %v3154_v51 = vadd.f32 %v3854_v45, %v3143_v42  ;;  %4838 = vmatprep.subr.bf16.mxu1 %v5114_v3 }
0x14c5   :  { %4515 = vmatmul.mubr.msk.f32.gmra.mrb[146].mxu0 %vm323_vm2, %v3154_v51 }
0x14c6   :  { %4558 = vmatprep.mubr.msk.f32.mxu0 %vm5115_vm0, %v6953_v36  ;;  %4840 = vmatpush3.bf16.msra.mxu1 %v4839_v0 }
0x14c7   :  { %4847 = vmatprep.subr.bf16.mxu1 %v5114_v3 }
0x1588   :  { %v3249_v14 = vpop.f32.mrb[138].mxu0 }
0x1589   :  { %v3250_v47 = vadd.f32 %v3860_v57, %v3249_v14  ;;  %v4504_v31 = vpop.f32.mrb[139].mxu0 }
0x158b   :  { %v3273_v44 = vmul.f32 %v3250_v47, %v3250_v47 }
0x158c   :  { %v3254_v55 = vpop.f32.mrb[140].mxu0 }
0x158d   :  { %v3278_v9 = vmul.f32 %v3273_v44, %v3250_v47  ;;  %v3255_v53 = vadd.f32 %v3860_v57, %v3254_v55  ;;  %v4507_v35 = vpop.f32.mrb[141].mxu0 }
0x158f   :  { %v3283_v1 = vmul.f32 0.044715, %v3278_v9  ;;  %v3274_v25 = vmul.f32 %v3255_v53, %v3255_v53 }
0x1590   :  { %v3259_v19 = vpop.f32.mrb[142].mxu0 }
0x1591   :  { %v3288_v33 = vadd.f32 %v3283_v1, %v3250_v47  ;;  %v3279_v40 = vmul.f32 %v3274_v25, %v3255_v53  ;;  %v3260_v2 = vadd.f32 %v3860_v57, %v3259_v19  ;;  %v4510_v43 = vpop.f32.mrb[143].mxu0 }
0x1593   :  { %v3293_v41 = vmul.f32 0.7978846, %v3288_v33  ;;  %v3284_v60 = vmul.f32 0.044715, %v3279_v40  ;;  %v3275_v58 = vmul.f32 %v3260_v2, %v3260_v2 }
0x1594   :  { %v3264_v22 = vpop.f32.mrb[144].mxu0 }
0x1595   :  { %5032 = vtanh.f32 %v3293_v41  ;;  %v3289_v32 = vadd.f32 %v3284_v60, %v3255_v53  ;;  %v3280_v24 = vmul.f32 %v3275_v58, %v3260_v2  ;;  %v3265_v59 = vadd.f32 %v3860_v57, %v3264_v22  ;;  %v4513_v11 = vpop.f32.mrb[145].mxu0 }
0x1597   :  { %v3294_v45 = vmul.f32 0.7978846, %v3289_v32  ;;  %v3285_v46 = vmul.f32 0.044715, %v3280_v24  ;;  %v3276_v6 = vmul.f32 %v3265_v59, %v3265_v59 }
0x1598   :  { %v3269_v62 = vpop.f32.mrb[146].mxu0 }
0x1599   :  { %5034 = vtanh.f32 %v3294_v45  ;;  %v3290_v7 = vadd.f32 %v3285_v46, %v3260_v2  ;;  %v3281_v8 = vmul.f32 %v3276_v6, %v3265_v59  ;;  %v3270_v30 = vadd.f32 %v3860_v57, %v3269_v62  ;;  %v4516_v50 = vpop.f32.mrb[147].mxu0 }
0x159a   :  { %v3557_v50 = vld [vmem:[%s6911_s24 + $0x8] sm:$0xff] }
0x159b   :  { %v3295_v16 = vmul.f32 0.7978846, %v3290_v7  ;;  %v3286_v56 = vmul.f32 0.044715, %v3281_v8  ;;  %v3277_v29 = vmul.f32 %v3270_v30, %v3270_v30 }
0x159d   :  { %5036 = vtanh.f32 %v3295_v16  ;;  %v3291_v63 = vadd.f32 %v3286_v56, %v3265_v59  ;;  %v3282_v21 = vmul.f32 %v3277_v29, %v3270_v30  ;;  %v3558_v56 = vld [vmem:[%s6911_s24 + $0x10] sm:$0xff]  ;;  %v3559_v29 = vld [vmem:[%s6911_s24 + $0x18] sm:$0xff] }
0x159f   :  { %v5033_v49 = vpop.eup %5032  ;;  %v3296_v26 = vmul.f32 0.7978846, %v3291_v63  ;;  %v3287_v37 = vmul.f32 0.044715, %v3282_v21  ;;  %v4851_v63 = vpack.c.bf16 %v3559_v29, %v3558_v56 }
0x15a0   :  { %v3303_v54 = vadd.f32 1.0, %v5033_v49 }
0x15a1   :  { %5038 = vtanh.f32 %v3296_v26  ;;  %v3292_v38 = vadd.f32 %v3287_v37, %v3270_v30 }
0x15a2   :  { %v3308_v17 = vmul.f32 0.5, %v3303_v54  ;;  %v3883_v54 = vld [vmem:[%s6909_s22] ss:$0 sm:$0xff]  ;;  %s5090_s22 = scalar_lea.vmem %s3648_s15, 32 }
0x15a3   :  { %v5035_v42 = vpop.eup %5034  ;;  %v3297_v51 = vmul.f32 0.7978846, %v3292_v38  ;;  %v3884_v38 = vld [vmem:[%s6910_s23] ss:$0 sm:$0xff]  ;;  %p5091_p0 = scmp.ne.s32.totalorder %s3648_s15, %s5090_s22  ;;  %p5096_p2 = scmp.lt.s32.totalorder %s5090_s22, %s5090_s22 }
0x15a4   :  { %v3313_v12 = vmul.f32 %v3308_v17, %v3250_v47  ;;  %v3304_v15 = vadd.f32 1.0, %v5035_v42 }
0x15a5   :  { %5040 = vtanh.f32 %v3297_v51  ;;  %v3885_v51 = vld [vmem:[%s6912_s25] ss:$0 sm:$0xff]  ;;  %p5097_p3 = por %p5096_p2, %p5095_p1 }
0x15a6   :  { %4534 = vmatmul.mubr.msk.f32.vlgmr.msra.gmra.mrb[128].mxu1 %vm1791_vm9, %v3313_v12  ;;  %v3309_v10 = vmul.f32 0.5, %v3304_v15 }
0x15a7   :  { %v5037_v18 = vpop.eup %5036  ;;  %4536 = vmatprep.mubr.msk.f32.mxu1 %vm5115_vm0, %v6953_v36  ;;  %p5098_p4 = pnand %p5097_p3, %p5091_p0 }
0x15a8   :  { %v3314_v27 = vmul.f32 %v3309_v10, %v3255_v53  ;;  %v3305_v5 = vadd.f32 1.0, %v5037_v18  ;;  %v3880_v53 = vld [vmem:[%s6908_s21 + $0x1] ss:$0 sm:$0xff] }
0x15aa   :  { %4537 = vmatmul.mubr.msk.f32.gmra.mrb[130].mxu1 %vm1791_vm9, %v3314_v27  ;;  %v3310_v34 = vmul.f32 0.5, %v3305_v5 }
0x15ab   :  { %v5039_v48 = vpop.eup %5038  ;;  %4539 = vmatprep.mubr.msk.f32.mxu1 %vm5115_vm0, %v6953_v36 }
0x15ac   :  { %v3315_v20 = vmul.f32 %v3310_v34, %v3260_v2  ;;  %v3306_v61 = vadd.f32 1.0, %v5039_v48 }
0x15ae   :  { %4540 = vmatmul.mubr.msk.f32.gmra.mrb[132].mxu1 %vm1791_vm9, %v3315_v20  ;;  %v3311_v39 = vmul.f32 0.5, %v3306_v61 }
0x15af   :  { %v5041_v0 = vpop.eup %5040  ;;  %4542 = vmatprep.mubr.msk.f32.mxu1 %vm5115_vm0, %v6953_v36 }
0x15b0   :  { %v3316_v57 = vmul.f32 %v3311_v39, %v3265_v59  ;;  %v3307_v14 = vadd.f32 1.0, %v5041_v0 }
0x15b2   :  { %4543 = vmatmul.mubr.msk.f32.gmra.mrb[134].mxu1 %vm1791_vm9, %v3316_v57  ;;  %v3312_v47 = vmul.f32 0.5, %v3307_v14 }
0x15b3   :  { %4545 = vmatprep.mubr.msk.f32.mxu1 %vm5115_vm0, %v6953_v36 }
0x15b4   :  { %v3317_v31 = vmul.f32 %v3312_v47, %v3270_v30  ;;  %v3556_v30 = vld [vmem:[%s6911_s24] sm:$0xff] }
0x15b5   :  { %v4848_v16 = vpack.c.bf16 %v3557_v50, %v3556_v30 }
0x15b6   :  { %4546 = vmatmul.mubr.msk.f32.gmra.mrb[136].mxu1 %vm1791_vm9, %v3317_v31 }
0x15b7   :  { %4569 = vmatprep.mubr.msk.f32.mxu1 %vm5115_vm0, %v6953_v36  ;;  %4849 = vmatpush3.bf16.msra.mxu1 %v4848_v16 }
0x15b8   :  { %4850 = vmatprep.subr.bf16.mxu1 %v5114_v3 }
0x15bb   :  { %4852 = vmatpush3.bf16.msra.mxu1 %v4851_v63 }
0x1679   :  { %v3408_v44 = vpop.f32.mrb[128].mxu1 }
0x167a   :  { %v4535_v55 = vpop.f32.mrb[129].mxu1  ;;  %v3432_v9 = vadd.f32 %v3408_v44, %v6720_v28 }
0x167c   :  { %v3445_v19 = vadd.f32 %v3880_v53, %v3432_v9 }
0x167d   :  { %v3413_v35 = vpop.f32.mrb[130].mxu1 }
0x167e   :  { %v3433_v1 = vadd.f32 %v3413_v35, %v6725_v13  ;;  %v4538_v25 = vpop.f32.mrb[131].mxu1 }
0x1680   :  { %v3446_v33 = vadd.f32 %v3880_v53, %v3433_v1 }
0x1681   :  { %v3418_v40 = vpop.f32.mrb[132].mxu1 }
0x1682   :  { %v4842_v2 = vpack.c.bf16 %v3446_v33, %v3445_v19  ;;  %v4541_v43 = vpop.f32.mrb[133].mxu1  ;;  %v3434_v41 = vadd.f32 %v3418_v40, %v6730_v23  ;;  %v3450_v23 = vld [vmem:[%s6956_s18] sm:$0x3] }
0x1684   :  { %4843 = vmatpush3.bf16.msra.mxu0 %v4842_v2  ;;  %v3447_v22 = vadd.f32 %v3880_v53, %v3434_v41 }
0x1685   :  { %v3423_v60 = vpop.f32.mrb[134].mxu1  ;;  %4844 = vmatprep.subr.bf16.mxu0 %v5114_v3 }
0x1686   :  { %v3435_v28 = vadd.f32 %v3423_v60, %v6735_v4  ;;  %v4544_v58 = vpop.f32.mrb[135].mxu1 }
0x1688   :  { %v3448_v32 = vadd.f32 %v3880_v53, %v3435_v28 }
0x1689   :  { %v3428_v24 = vpop.f32.mrb[136].mxu1 }
0x168a   :  { %v4845_v59 = vpack.c.bf16 %v3448_v32, %v3447_v22  ;;  %v3436_v13 = vadd.f32 %v3428_v24, %v6740_v52  ;;  %v4547_v11 = vpop.f32.mrb[137].mxu1 }
0x168c   :  { %4846 = vmatpush3.bf16.msra.mxu0 %v4845_v59  ;;  %v3449_v45 = vadd.f32 %v3880_v53, %v3436_v13 }
0x168d   :  { %4556 = vmatprep.subr.mxu0 %v6953_v36 }
0x1690   :  { %4557 = vmatpush3.msk.msra.mxu0 %vm600_vm4, %v3449_v45 }
0x1691   :  { %4559 = vmatmul.mubr.msk.f32.vlgmr.msra.gmra.mrb[148].mxu0 %vm548_vm5, %v3450_v23 }
0x1764   :  { %v3523_v4 = vpop.f32.mrb[148].mxu0 }
0x1765   :  { %v3529_v46 = vsel %vm336_vm3, %v3523_v4, 0.0  ;;  %v4560_v6 = vpop.f32.mrb[149].mxu0 }
0x1766   :  { %3530 = vadd.xlane.f32.xlu0 %v3529_v46 }
0x17f3   :  { %v3531_v62 = vpop.xlane.xlu0 %3530 }
0x17f4   :  { %v3532_v52 = vmul.f32 0.03125, %v3531_v62 }
0x17f6   :  { %v3533_v7 = vsub.f32 %v3523_v4, %v3532_v52 }
0x17f8   :  { %v3534_v8 = vmul.f32 %v3533_v7, %v3533_v7 }
0x17fa   :  { %v3535_v36 = vsel %vm336_vm3, %v3534_v8, 0.0 }
0x17fb   :  { %3536 = vadd.xlane.f32.xlu1 %v3535_v36 }
0x1888   :  { %v3537_v21 = vpop.xlane.xlu1 %3536 }
0x1889   :  { %v3538_v49 = vmul.f32 0.03125, %v3537_v21 }
0x188b   :  { %v3539_v26 = vadd.f32 1e-05, %v3538_v49 }
0x188d   :  { %5042 = vrsqrt.f32 %v3539_v26 }
0x1897   :  { %v5043_v37 = vpop.eup %5042 }
0x1898   :  { %v3541_v3 = vmul.f32 %v5043_v37, %v3533_v7 }
0x189a   :  { %v3548_v17 = vmul.f32 %v3883_v54, %v3541_v3 }
0x189c   :  { %v3555_v42 = vadd.f32 %v3884_v38, %v3548_v17 }
0x189e   :  { %4570 = vmatmul.mubr.msk.f32.vlgmr.msra.gmra.mrb[138].mxu1 %vm323_vm2, %v3555_v42 }
0x1971   :  { %v3636_v12 = vpop.f32.mrb[138].mxu1 }
0x1972   :  { %v3637_v15 = vadd.f32 %v3885_v51, %v3636_v12  ;;  %v4571_v10 = vpop.f32.mrb[139].mxu1 }
0x1974   :  { %3640 = vst [vmem:[#allocation2] sm:$0x3] %v3637_v15 }
0x1975   :  { %5101 = shalt.err (!%p5098_p4)
}
0x1976   :  { %s5102_s10 = scalar_lea.hbm %s6913_s26, 32 }
0x1977   :  { %p5103_p5 = scmp.ne.s32.totalorder %s6913_s26, %s5102_s10  ;;  %p5106_p6 = scmp.lt.u32.totalorder %s5102_s10, %s6913_s26 }
0x1979   :  { %p5108_p7 = pnand %p5106_p6, %p5103_p5 }
0x197b   :  { %5111 = shalt.err (!%p5108_p7)
}
0x197c   :  { %3650 = dma.vmem_to_hbm [thread:$0]  %s3648_s15, 32, %s6913_s26, [#allocation3]  }
0x197d   :  { %5112 = dma.done.wait [#allocation3], 32  }
0x197e   :  { %5113 = vsyncadd [#allocation3], 4294967264 }
0x197f   :  { %3654 = vsyncpa [#allocation3], 1 }

</bundles_post_ra>
